<compile_context>
chip_gen: v5e
topology: v5e:2x2
jax: 0.10.0
libtpu: 0.0.40
codegen_flags: <defaults>
</compile_context>

<pallas_src>
import jax
import jax.numpy as jnp
from jax import lax
from jax.experimental import pallas as pl
from jax.experimental.pallas import tpu as pltpu

INPUT_SIZE = 34
HIDDEN = 64
NUM_LAYERS = 2
NUM_CLASSES = 2
_SUBLANE = 8


# ----------------------------------------------------------------------------
# Fused Pallas kernel: 2-layer LSTM (wavefront) over the full sequence + fc
# ----------------------------------------------------------------------------
def _fused_lstm_fc_kernel(x_ref, wih0_ref, b0_ref, wcomb_ref, b1_ref,
                          wfc_ref, bfc_ref, out_ref,
                          gx0_sc, h01_sc, c0_sc, c1_sc):
    """One batch block.  x_ref: (T*bb, D), row t*bb + b_local.

    Weight columns are pre-permuted to gate order (i, f, o, g).
    wcomb_ref = [[W_hh0, W_ih1], [0, W_hh1]], shape (2H, 8H), bf16.
    h01_sc holds [h0 | h1] (bf16, one 128-lane slab).
    """
    bb, H = c0_sc.shape
    T = gx0_sc.shape[0] // bb
    H4 = 4 * H

    # Hoisted layer-0 input projection: one big MXU matmul off the serial
    # chain, with the (b_ih0 + b_hh0) bias folded in.  bf16 in, f32 out.
    gx0_sc[...] = (
        jnp.dot(x_ref[...].astype(jnp.bfloat16), wih0_ref[...],
                preferred_element_type=jnp.float32)
        + b0_ref[...])

    # Loop-invariant broadcast hoisted (JAX does not CSE broadcast_in_dim).
    b1f = jnp.broadcast_to(b1_ref[...], (bb, H4))

    def _act(gates):
        # Gate columns are (i, f, o, g): contiguous sigmoid over the first 3H
        # lanes (EUP), tanh on the trailing H lanes.  Slices are 64-lane
        # aligned; check the bundle dump for stray vrot if tuning on v6e.
        s = jax.nn.sigmoid(gates[:, :3 * H])
        return (s[:, 0 * H:1 * H], s[:, 1 * H:2 * H], s[:, 2 * H:3 * H],
                jnp.tanh(gates[:, 3 * H:]))

    # ---- prologue: layer-0 step 0 (h0(-1) = c0(-1) = 0 -> no recurrent dot).
    i0, f0, o0, g0 = _act(gx0_sc[pl.ds(0, bb), :])
    c0 = i0 * g0
    h0 = o0 * jnp.tanh(c0)
    c0_sc[...] = c0
    c1_sc[...] = jnp.zeros_like(c1_sc)
    h01_sc[...] = jnp.zeros_like(h01_sc)          # h1(-1) = 0
    h01_sc[:, :H] = h0.astype(jnp.bfloat16)

    # ---- wavefront loop: iteration t = layer-1 step t + layer-0 step t+1,
    # both from a single (bb, 2H) x (2H, 8H) MXU dot over [h0(t) | h1(t-1)].
    def step(t, carry):
        comb = jnp.dot(h01_sc[...], wcomb_ref[...],
                       preferred_element_type=jnp.float32)
        # layer 1, step t
        i1, f1, o1, g1 = _act(comb[:, H4:] + b1f)
        c1 = f1 * c1_sc[...] + i1 * g1
        h1 = o1 * jnp.tanh(c1)
        c1_sc[...] = c1
        h01_sc[:, H:] = h1.astype(jnp.bfloat16)
        # layer 0, step t+1 (x-gates precomputed; comb[:, :4H] = h0(t) @ W_hh0)
        row = pl.multiple_of((t + 1) * bb, 8)
        i0, f0, o0, g0 = _act(gx0_sc[pl.ds(row, bb), :] + comb[:, :H4])
        c0 = f0 * c0_sc[...] + i0 * g0
        h0 = o0 * jnp.tanh(c0)
        c0_sc[...] = c0
        h01_sc[:, :H] = h0.astype(jnp.bfloat16)
        return carry

    unroll = (T - 1) if T <= 16 else 4
    lax.fori_loop(0, T - 1, step, 0, unroll=max(unroll, 1))

    # ---- epilogue: layer-1 step T-1, then the fused fc head on h1(T-1).
    comb = jnp.dot(h01_sc[...], wcomb_ref[...],
                   preferred_element_type=jnp.float32)
    i1, f1, o1, g1 = _act(comb[:, H4:] + b1f)
    c1 = f1 * c1_sc[...] + i1 * g1
    h1 = o1 * jnp.tanh(c1)
    out_ref[...] = (
        jnp.dot(h1, wfc_ref[...], preferred_element_type=jnp.float32)
        + bfc_ref[...])


# ----------------------------------------------------------------------------
# Wrapper
# ----------------------------------------------------------------------------
def _reorder_ifog(w):
    """Permute PyTorch gate order (i, f, g, o) -> (i, f, o, g) along 4H axis."""
    i, f, g, o = jnp.split(w, 4, axis=-1)
    return jnp.concatenate([i, f, o, g], axis=-1)


@jax.jit
def accident_lstm_forward(x_btd, params):
    """x_btd: (B, T, 34) batch-first, as in the PyTorch module. Returns (B, 2)."""
    B, T, D = x_btd.shape
    H, C = HIDDEN, NUM_CLASSES

    # Batch blocking: one 8-row block for tiny batches; two blocks (>= 8 rows
    # each) when B > 8 so the "parallel" grid axis can use both v7x cores.
    if B <= _SUBLANE:
        bb, nb = _SUBLANE, 1
    else:
        bb = ((B + 2 * _SUBLANE - 1) // (2 * _SUBLANE)) * _SUBLANE  # ceil(B/2) -> x8
        nb = 2
    Bp = nb * bb

    x_p = jnp.pad(x_btd, ((0, Bp - B), (0, 0), (0, 0)))
    # Per-batch-block time-major layout: within block j, row t*bb + b_local.
    x2d = (x_p.reshape(nb, bb, T, D)
              .transpose(0, 2, 1, 3)
              .reshape(nb * T * bb, D))

    # Weight layout plumbing (tiny, one-time): gate-column permutation, the
    # stacked wavefront weight, bf16 casts for the MXU inputs.
    wih0 = _reorder_ifog(params["w_ih0"]).astype(jnp.bfloat16)
    b0 = _reorder_ifog(params["b0"])
    whh0 = _reorder_ifog(params["w_hh0"])
    wih1 = _reorder_ifog(params["w_ih1"])
    whh1 = _reorder_ifog(params["w_hh1"])
    b1 = _reorder_ifog(params["b1"])
    # [h0(t) | h1(t-1)] @ [[W_hh0, W_ih1], [0, W_hh1]]
    #   -> [ layer-0 recurrent gates for t+1 | layer-1 gates for t ]
    w_comb = jnp.concatenate(
        [jnp.concatenate([whh0, wih1], axis=1),
         jnp.concatenate([jnp.zeros((H, 4 * H), jnp.float32), whh1], axis=1)],
        axis=0).astype(jnp.bfloat16)

    # VMEM budget sized from the actual resident buffers (+ headroom).
    x_blk_bytes = T * bb * 128 * 4          # D=34 lane-pads to 128, f32
    gx0_bytes = T * bb * 4 * H * 4
    vmem_limit = int(2 * x_blk_bytes + gx0_bytes + (6 << 20))
    vmem_limit = min(max(vmem_limit, 8 << 20), 96 << 20)

    out = pl.pallas_call(
        _fused_lstm_fc_kernel,
        out_shape=jax.ShapeDtypeStruct((Bp, C), jnp.float32),
        grid_spec=pltpu.PrefetchScalarGridSpec(
            num_scalar_prefetch=0,
            grid=(nb,),
            in_specs=[
                pl.BlockSpec((T * bb, D), lambda j: (j, 0)),     # x (per-block time-major)
                pl.BlockSpec((D, 4 * H), lambda j: (0, 0)),      # W_ih0 (bf16)
                pl.BlockSpec((1, 4 * H), lambda j: (0, 0)),      # b_ih0 + b_hh0
                pl.BlockSpec((2 * H, 8 * H), lambda j: (0, 0)),  # [[W_hh0,W_ih1],[0,W_hh1]] (bf16)
                pl.BlockSpec((1, 4 * H), lambda j: (0, 0)),      # b_ih1 + b_hh1
                pl.BlockSpec((H, C), lambda j: (0, 0)),          # W_fc
                pl.BlockSpec((1, C), lambda j: (0, 0)),          # b_fc
            ],
            out_specs=pl.BlockSpec((bb, C), lambda j: (j, 0)),
            scratch_shapes=[
                pltpu.VMEM((T * bb, 4 * H), jnp.float32),        # precomputed x-gates (layer 0)
                pltpu.VMEM((bb, 2 * H), jnp.bfloat16),           # [h0 | h1]
                pltpu.VMEM((bb, H), jnp.float32),                # c0
                pltpu.VMEM((bb, H), jnp.float32),                # c1
            ]),
        compiler_params=pltpu.CompilerParams(
            dimension_semantics=("parallel",),
            vmem_limit_bytes=vmem_limit),
    )(x2d, wih0, b0, w_comb, b1, params["w_fc"], params["b_fc"])
    return out[:B]


# ----------------------------------------------------------------------------
# Params (match nn.LSTM(34, 64, 2) + nn.Linear(64, 2); stored pre-transposed)
# ----------------------------------------------------------------------------
def init_params(key):
    k = 1.0 / jnp.sqrt(jnp.float32(HIDDEN))
    keys = jax.random.split(key, 10)

    def u(rk, shape):
        return jax.random.uniform(rk, shape, jnp.float32, -k, k)

    return {
        # layer 0: PyTorch weight_ih_l0 is (4H, 34) -> stored transposed (34, 4H)
        "w_ih0": u(keys[0], (INPUT_SIZE, 4 * HIDDEN)),
        "w_hh0": u(keys[1], (HIDDEN, 4 * HIDDEN)),
        "b0": (u(keys[2], (1, 4 * HIDDEN)) + u(keys[3], (1, 4 * HIDDEN))),  # b_ih + b_hh
        # layer 1: input is layer-0 hidden (64)
        "w_ih1": u(keys[4], (HIDDEN, 4 * HIDDEN)),
        "w_hh1": u(keys[5], (HIDDEN, 4 * HIDDEN)),
        "b1": (u(keys[6], (1, 4 * HIDDEN)) + u(keys[7], (1, 4 * HIDDEN))),
        # fc
        "w_fc": u(keys[8], (HIDDEN, NUM_CLASSES)),
        "b_fc": u(keys[9], (1, NUM_CLASSES)),
    }


# ----------------------------------------------------------------------------
# Pure-JAX f32 reference (PyTorch gate order i,f,g,o; correctness check only)
# ----------------------------------------------------------------------------
def _ref_forward(x, params):
    def layer(xs, w_ih, w_hh, b):
        B, T, _ = xs.shape
        H = w_hh.shape[0]
        h = jnp.zeros((B, H), jnp.float32)
        c = jnp.zeros((B, H), jnp.float32)
        outs = []
        for t in range(T):
            gates = xs[:, t, :] @ w_ih + h @ w_hh + b
            i = jax.nn.sigmoid(gates[:, :H])
            f = jax.nn.sigmoid(gates[:, H:2 * H])
            g = jnp.tanh(gates[:, 2 * H:3 * H])
            o = jax.nn.sigmoid(gates[:, 3 * H:])
            c = f * c + i * g
            h = o * jnp.tanh(c)
            outs.append(h)
        return jnp.stack(outs, axis=1)

    h0 = layer(x, params["w_ih0"], params["w_hh0"], params["b0"][0])
    h1 = layer(h0, params["w_ih1"], params["w_hh1"], params["b1"][0])
    return h1[:, -1, :] @ params["w_fc"] + params["b_fc"][0]


if __name__ == "__main__":
    B, T = 2, 8
    key = jax.random.PRNGKey(0)
    k_x, k_p = jax.random.split(key)
    x = jax.random.normal(k_x, (B, T, INPUT_SIZE), jnp.float32)
    params = init_params(k_p)

    out = accident_lstm_forward(x, params)
    out = jax.block_until_ready(out)
    assert out.shape == (B, NUM_CLASSES), out.shape

    # bf16 MXU inputs -> loosened tolerance vs. the pure-f32 reference.
    ref = _ref_forward(x, params)
    assert jnp.allclose(out, ref, atol=2e-2, rtol=2e-2), (out, ref)

    print("KERNEL_OK")
</pallas_src>

<mosaic_0001>
module attributes {stable_mosaic.version = 11 : i64} {
  func.func @_fused_lstm_fc_kernel(%arg0: i32, %arg1: memref<64x34xf32, #tpu.memory_space<vmem>>, %arg2: memref<34x256xbf16, #tpu.memory_space<vmem>>, %arg3: memref<1x256xf32, #tpu.memory_space<vmem>>, %arg4: memref<128x512xbf16, #tpu.memory_space<vmem>>, %arg5: memref<1x256xf32, #tpu.memory_space<vmem>>, %arg6: memref<64x2xf32, #tpu.memory_space<vmem>>, %arg7: memref<1x2xf32, #tpu.memory_space<vmem>>, %arg8: memref<8x2xf32, #tpu.memory_space<vmem>>, %arg9: memref<64x256xf32, #tpu.memory_space<vmem>>, %arg10: memref<8x128xbf16, #tpu.memory_space<vmem>>, %arg11: memref<8x64xf32, #tpu.memory_space<vmem>>, %arg12: memref<8x64xf32, #tpu.memory_space<vmem>>) attributes {dimension_semantics = [#tpu.dimension_semantics<parallel>], iteration_bounds = array<i64: 1>, scalar_prefetch = 0 : i64, scratch_operands = 4 : i64, tpu.core_type = #tpu.core_type<tc>, window_params = [{transform_indices = @transform_0, window_bounds = array<i64: 64, 34>}, {pipeline_mode = #tpu.pipeline_mode<synchronous>, transform_indices = @transform_1, window_bounds = array<i64: 34, 256>}, {pipeline_mode = #tpu.pipeline_mode<synchronous>, transform_indices = @transform_2, window_bounds = array<i64: 1, 256>}, {pipeline_mode = #tpu.pipeline_mode<synchronous>, transform_indices = @transform_3, window_bounds = array<i64: 128, 512>}, {pipeline_mode = #tpu.pipeline_mode<synchronous>, transform_indices = @transform_4, window_bounds = array<i64: 1, 256>}, {pipeline_mode = #tpu.pipeline_mode<synchronous>, transform_indices = @transform_5, window_bounds = array<i64: 64, 2>}, {pipeline_mode = #tpu.pipeline_mode<synchronous>, transform_indices = @transform_6, window_bounds = array<i64: 1, 2>}, {transform_indices = @transform_7, window_bounds = array<i64: 8, 2>}]} {
    %c0 = arith.constant 0 : index
    %c0_0 = arith.constant 0 : index
    %0 = vector.load %arg1[%c0, %c0_0] : memref<64x34xf32, #tpu.memory_space<vmem>>, vector<64x34xf32>
    %1 = arith.truncf %0 : vector<64x34xf32> to vector<64x34xbf16>
    %c0_1 = arith.constant 0 : index
    %c0_2 = arith.constant 0 : index
    %2 = vector.load %arg2[%c0_1, %c0_2] : memref<34x256xbf16, #tpu.memory_space<vmem>>, vector<34x256xbf16>
    %cst = arith.constant dense<0.000000e+00> : vector<64x256xf32>
    %3 = tpu.matmul %1, %2, %cst {dimension_numbers = #tpu.dot_dimension_numbers<[1], [0], [0], [1], [0, 0, 1, 1], [], []>} : vector<64x34xbf16>, vector<34x256xbf16>, vector<64x256xf32> -> vector<64x256xf32>
    %c0_3 = arith.constant 0 : index
    %c0_4 = arith.constant 0 : index
    %4 = vector.load %arg3[%c0_3, %c0_4] : memref<1x256xf32, #tpu.memory_space<vmem>>, vector<1x256xf32>
    %5 = vector.broadcast %4 : vector<1x256xf32> to vector<64x256xf32>
    %6 = arith.addf %3, %5 : vector<64x256xf32>
    %c0_5 = arith.constant 0 : index
    %c0_6 = arith.constant 0 : index
    %7 = vector.load %arg9[%c0_5, %c0_6] : memref<64x256xf32, #tpu.memory_space<vmem>>, vector<64x256xf32>
    tpu.vector_store %arg9[%c0_5, %c0_6], %6 {strides = array<i32>} : memref<64x256xf32, #tpu.memory_space<vmem>>, vector<64x256xf32>,
    %c0_7 = arith.constant 0 : index
    %c0_8 = arith.constant 0 : index
    %8 = vector.load %arg5[%c0_7, %c0_8] : memref<1x256xf32, #tpu.memory_space<vmem>>, vector<1x256xf32>
    %9 = vector.shape_cast %8 : vector<1x256xf32> to vector<1x256xf32>
    %10 = vector.broadcast %9 : vector<1x256xf32> to vector<8x256xf32>
    %c0_9 = arith.constant 0 : index
    %c0_10 = arith.constant 0 : index
    %11 = vector.load %arg9[%c0_9, %c0_10] : memref<64x256xf32, #tpu.memory_space<vmem>>, vector<8x256xf32>
    %12 = vector.extract_strided_slice %11 {offsets = [0, 0], sizes = [8, 192], strides = [1, 1]} : vector<8x256xf32> to vector<8x192xf32>
    %13 = arith.negf %12 : vector<8x192xf32>
    %14 = math.exp %13 : vector<8x192xf32>
    %cst_11 = arith.constant 1.000000e+00 : f32
    %15 = vector.broadcast %cst_11 : f32 to vector<8x192xf32>
    %16 = arith.addf %15, %14 : vector<8x192xf32>
    %17 = arith.divf %15, %16 : vector<8x192xf32>
    %18 = vector.extract_strided_slice %17 {offsets = [0, 0], sizes = [8, 64], strides = [1, 1]} : vector<8x192xf32> to vector<8x64xf32>
    %19 = vector.extract_strided_slice %17 {offsets = [0, 128], sizes = [8, 64], strides = [1, 1]} : vector<8x192xf32> to vector<8x64xf32>
    %20 = vector.extract_strided_slice %11 {offsets = [0, 192], sizes = [8, 64], strides = [1, 1]} : vector<8x256xf32> to vector<8x64xf32>
    %21 = math.tanh %20 : vector<8x64xf32>
    %22 = arith.mulf %18, %21 : vector<8x64xf32>
    %23 = math.tanh %22 : vector<8x64xf32>
    %24 = arith.mulf %19, %23 : vector<8x64xf32>
    %c0_12 = arith.constant 0 : index
    %c0_13 = arith.constant 0 : index
    %25 = vector.load %arg11[%c0_12, %c0_13] : memref<8x64xf32, #tpu.memory_space<vmem>>, vector<8x64xf32>
    tpu.vector_store %arg11[%c0_12, %c0_13], %22 {strides = array<i32>} : memref<8x64xf32, #tpu.memory_space<vmem>>, vector<8x64xf32>,
    %cst_14 = arith.constant 0.000000e+00 : f32
    %26 = vector.broadcast %cst_14 : f32 to vector<8x64xf32>
    %c0_15 = arith.constant 0 : index
    %c0_16 = arith.constant 0 : index
    %27 = vector.load %arg12[%c0_15, %c0_16] : memref<8x64xf32, #tpu.memory_space<vmem>>, vector<8x64xf32>
    tpu.vector_store %arg12[%c0_15, %c0_16], %26 {strides = array<i32>} : memref<8x64xf32, #tpu.memory_space<vmem>>, vector<8x64xf32>,
    %cst_17 = arith.constant 0.000000e+00 : bf16
    %28 = vector.broadcast %cst_17 : bf16 to vector<8x128xbf16>
    %c0_18 = arith.constant 0 : index
    %c0_19 = arith.constant 0 : index
    %29 = vector.load %arg10[%c0_18, %c0_19] : memref<8x128xbf16, #tpu.memory_space<vmem>>, vector<8x128xbf16>
    tpu.vector_store %arg10[%c0_18, %c0_19], %28 {strides = array<i32>} : memref<8x128xbf16, #tpu.memory_space<vmem>>, vector<8x128xbf16>,
    %30 = arith.truncf %24 : vector<8x64xf32> to vector<8x64xbf16>
    %c0_20 = arith.constant 0 : index
    %c0_21 = arith.constant 0 : index
    %31 = vector.load %arg10[%c0_20, %c0_21] : memref<8x128xbf16, #tpu.memory_space<vmem>>, vector<8x64xbf16>
    tpu.vector_store %arg10[%c0_20, %c0_21], %30 {strides = array<i32>} : memref<8x128xbf16, #tpu.memory_space<vmem>>, vector<8x64xbf16>,
    %c0_i32 = arith.constant 0 : i32
    %c0_22 = arith.constant 0 : index
    %c0_23 = arith.constant 0 : index
    %32 = vector.load %arg10[%c0_22, %c0_23] : memref<8x128xbf16, #tpu.memory_space<vmem>>, vector<8x128xbf16>
    %c0_24 = arith.constant 0 : index
    %c0_25 = arith.constant 0 : index
    %33 = vector.load %arg4[%c0_24, %c0_25] : memref<128x512xbf16, #tpu.memory_space<vmem>>, vector<128x512xbf16>
    %cst_26 = arith.constant dense<0.000000e+00> : vector<8x512xf32>
    %34 = tpu.matmul %32, %33, %cst_26 {dimension_numbers = #tpu.dot_dimension_numbers<[1], [0], [0], [1], [0, 0, 1, 1], [], []>} : vector<8x128xbf16>, vector<128x512xbf16>, vector<8x512xf32> -> vector<8x512xf32>
    %35 = vector.extract_strided_slice %34 {offsets = [0, 256], sizes = [8, 256], strides = [1, 1]} : vector<8x512xf32> to vector<8x256xf32>
    %36 = arith.addf %35, %10 : vector<8x256xf32>
    %37 = vector.extract_strided_slice %36 {offsets = [0, 0], sizes = [8, 192], strides = [1, 1]} : vector<8x256xf32> to vector<8x192xf32>
    %38 = arith.negf %37 : vector<8x192xf32>
    %39 = math.exp %38 : vector<8x192xf32>
    %cst_27 = arith.constant 1.000000e+00 : f32
    %40 = vector.broadcast %cst_27 : f32 to vector<8x192xf32>
    %41 = arith.addf %40, %39 : vector<8x192xf32>
    %42 = arith.divf %40, %41 : vector<8x192xf32>
    %43 = vector.extract_strided_slice %42 {offsets = [0, 0], sizes = [8, 64], strides = [1, 1]} : vector<8x192xf32> to vector<8x64xf32>
    %44 = vector.extract_strided_slice %42 {offsets = [0, 64], sizes = [8, 64], strides = [1, 1]} : vector<8x192xf32> to vector<8x64xf32>
    %45 = vector.extract_strided_slice %42 {offsets = [0, 128], sizes = [8, 64], strides = [1, 1]} : vector<8x192xf32> to vector<8x64xf32>
    %46 = vector.extract_strided_slice %36 {offsets = [0, 192], sizes = [8, 64], strides = [1, 1]} : vector<8x256xf32> to vector<8x64xf32>
    %47 = math.tanh %46 : vector<8x64xf32>
    %c0_28 = arith.constant 0 : index
    %c0_29 = arith.constant 0 : index
    %48 = vector.load %arg12[%c0_28, %c0_29] : memref<8x64xf32, #tpu.memory_space<vmem>>, vector<8x64xf32>
    %49 = arith.mulf %44, %48 : vector<8x64xf32>
    %50 = arith.mulf %43, %47 : vector<8x64xf32>
    %51 = arith.addf %49, %50 : vector<8x64xf32>
    %52 = math.tanh %51 : vector<8x64xf32>
    %53 = arith.mulf %45, %52 : vector<8x64xf32>
    %c0_30 = arith.constant 0 : index
    %c0_31 = arith.constant 0 : index
    %54 = vector.load %arg12[%c0_30, %c0_31] : memref<8x64xf32, #tpu.memory_space<vmem>>, vector<8x64xf32>
    tpu.vector_store %arg12[%c0_30, %c0_31], %51 {strides = array<i32>} : memref<8x64xf32, #tpu.memory_space<vmem>>, vector<8x64xf32>,
    %55 = arith.truncf %53 : vector<8x64xf32> to vector<8x64xbf16>
    %c0_32 = arith.constant 0 : index
    %c64 = arith.constant 64 : index
    %56 = vector.load %arg10[%c0_32, %c64] : memref<8x128xbf16, #tpu.memory_space<vmem>>, vector<8x64xbf16>
    tpu.vector_store %arg10[%c0_32, %c64], %55 {strides = array<i32>} : memref<8x128xbf16, #tpu.memory_space<vmem>>, vector<8x64xbf16>,
    %c1_i32 = arith.constant 1 : i32
    %57 = arith.addi %c0_i32, %c1_i32 : i32
    %c8_i32 = arith.constant 8 : i32
    %58 = arith.muli %57, %c8_i32 : i32
    %59 = tpu.assume_multiple %58, 8 : i32
    %60 = arith.index_cast %59 : i32 to index
    %c0_33 = arith.constant 0 : index
    %61 = vector.load %arg9[%60, %c0_33] : memref<64x256xf32, #tpu.memory_space<vmem>>, vector<8x256xf32>
    %62 = vector.extract_strided_slice %34 {offsets = [0, 0], sizes = [8, 256], strides = [1, 1]} : vector<8x512xf32> to vector<8x256xf32>
    %63 = arith.addf %61, %62 : vector<8x256xf32>
    %64 = vector.extract_strided_slice %63 {offsets = [0, 0], sizes = [8, 192], strides = [1, 1]} : vector<8x256xf32> to vector<8x192xf32>
    %65 = arith.negf %64 : vector<8x192xf32>
    %66 = math.exp %65 : vector<8x192xf32>
    %cst_34 = arith.constant 1.000000e+00 : f32
    %67 = vector.broadcast %cst_34 : f32 to vector<8x192xf32>
    %68 = arith.addf %67, %66 : vector<8x192xf32>
    %69 = arith.divf %67, %68 : vector<8x192xf32>
    %70 = vector.extract_strided_slice %69 {offsets = [0, 0], sizes = [8, 64], strides = [1, 1]} : vector<8x192xf32> to vector<8x64xf32>
    %71 = vector.extract_strided_slice %69 {offsets = [0, 64], sizes = [8, 64], strides = [1, 1]} : vector<8x192xf32> to vector<8x64xf32>
    %72 = vector.extract_strided_slice %69 {offsets = [0, 128], sizes = [8, 64], strides = [1, 1]} : vector<8x192xf32> to vector<8x64xf32>
    %73 = vector.extract_strided_slice %63 {offsets = [0, 192], sizes = [8, 64], strides = [1, 1]} : vector<8x256xf32> to vector<8x64xf32>
    %74 = math.tanh %73 : vector<8x64xf32>
    %c0_35 = arith.constant 0 : index
    %c0_36 = arith.constant 0 : index
    %75 = vector.load %arg11[%c0_35, %c0_36] : memref<8x64xf32, #tpu.memory_space<vmem>>, vector<8x64xf32>
    %76 = arith.mulf %71, %75 : vector<8x64xf32>
    %77 = arith.mulf %70, %74 : vector<8x64xf32>
    %78 = arith.addf %76, %77 : vector<8x64xf32>
    %79 = math.tanh %78 : vector<8x64xf32>
    %80 = arith.mulf %72, %79 : vector<8x64xf32>
    %c0_37 = arith.constant 0 : index
    %c0_38 = arith.constant 0 : index
    %81 = vector.load %arg11[%c0_37, %c0_38] : memref<8x64xf32, #tpu.memory_space<vmem>>, vector<8x64xf32>
    tpu.vector_store %arg11[%c0_37, %c0_38], %78 {strides = array<i32>} : memref<8x64xf32, #tpu.memory_space<vmem>>, vector<8x64xf32>,
    %82 = arith.truncf %80 : vector<8x64xf32> to vector<8x64xbf16>
    %c0_39 = arith.constant 0 : index
    %c0_40 = arith.constant 0 : index
    %83 = vector.load %arg10[%c0_39, %c0_40] : memref<8x128xbf16, #tpu.memory_space<vmem>>, vector<8x64xbf16>
    tpu.vector_store %arg10[%c0_39, %c0_40], %82 {strides = array<i32>} : memref<8x128xbf16, #tpu.memory_space<vmem>>, vector<8x64xbf16>,
    %c1_i32_41 = arith.constant 1 : i32
    %c0_42 = arith.constant 0 : index
    %c0_43 = arith.constant 0 : index
    %84 = vector.load %arg10[%c0_42, %c0_43] : memref<8x128xbf16, #tpu.memory_space<vmem>>, vector<8x128xbf16>
    %c0_44 = arith.constant 0 : index
    %c0_45 = arith.constant 0 : index
    %85 = vector.load %arg4[%c0_44, %c0_45] : memref<128x512xbf16, #tpu.memory_space<vmem>>, vector<128x512xbf16>
    %cst_46 = arith.constant dense<0.000000e+00> : vector<8x512xf32>
    %86 = tpu.matmul %84, %85, %cst_46 {dimension_numbers = #tpu.dot_dimension_numbers<[1], [0], [0], [1], [0, 0, 1, 1], [], []>} : vector<8x128xbf16>, vector<128x512xbf16>, vector<8x512xf32> -> vector<8x512xf32>
    %87 = vector.extract_strided_slice %86 {offsets = [0, 256], sizes = [8, 256], strides = [1, 1]} : vector<8x512xf32> to vector<8x256xf32>
    %88 = arith.addf %87, %10 : vector<8x256xf32>
    %89 = vector.extract_strided_slice %88 {offsets = [0, 0], sizes = [8, 192], strides = [1, 1]} : vector<8x256xf32> to vector<8x192xf32>
    %90 = arith.negf %89 : vector<8x192xf32>
    %91 = math.exp %90 : vector<8x192xf32>
    %cst_47 = arith.constant 1.000000e+00 : f32
    %92 = vector.broadcast %cst_47 : f32 to vector<8x192xf32>
    %93 = arith.addf %92, %91 : vector<8x192xf32>
    %94 = arith.divf %92, %93 : vector<8x192xf32>
    %95 = vector.extract_strided_slice %94 {offsets = [0, 0], sizes = [8, 64], strides = [1, 1]} : vector<8x192xf32> to vector<8x64xf32>
    %96 = vector.extract_strided_slice %94 {offsets = [0, 64], sizes = [8, 64], strides = [1, 1]} : vector<8x192xf32> to vector<8x64xf32>
    %97 = vector.extract_strided_slice %94 {offsets = [0, 128], sizes = [8, 64], strides = [1, 1]} : vector<8x192xf32> to vector<8x64xf32>
    %98 = vector.extract_strided_slice %88 {offsets = [0, 192], sizes = [8, 64], strides = [1, 1]} : vector<8x256xf32> to vector<8x64xf32>
    %99 = math.tanh %98 : vector<8x64xf32>
    %c0_48 = arith.constant 0 : index
    %c0_49 = arith.constant 0 : index
    %100 = vector.load %arg12[%c0_48, %c0_49] : memref<8x64xf32, #tpu.memory_space<vmem>>, vector<8x64xf32>
    %101 = arith.mulf %96, %100 : vector<8x64xf32>
    %102 = arith.mulf %95, %99 : vector<8x64xf32>
    %103 = arith.addf %101, %102 : vector<8x64xf32>
    %104 = math.tanh %103 : vector<8x64xf32>
    %105 = arith.mulf %97, %104 : vector<8x64xf32>
    %c0_50 = arith.constant 0 : index
    %c0_51 = arith.constant 0 : index
    %106 = vector.load %arg12[%c0_50, %c0_51] : memref<8x64xf32, #tpu.memory_space<vmem>>, vector<8x64xf32>
    tpu.vector_store %arg12[%c0_50, %c0_51], %103 {strides = array<i32>} : memref<8x64xf32, #tpu.memory_space<vmem>>, vector<8x64xf32>,
    %107 = arith.truncf %105 : vector<8x64xf32> to vector<8x64xbf16>
    %c0_52 = arith.constant 0 : index
    %c64_53 = arith.constant 64 : index
    %108 = vector.load %arg10[%c0_52, %c64_53] : memref<8x128xbf16, #tpu.memory_space<vmem>>, vector<8x64xbf16>
    tpu.vector_store %arg10[%c0_52, %c64_53], %107 {strides = array<i32>} : memref<8x128xbf16, #tpu.memory_space<vmem>>, vector<8x64xbf16>,
    %c1_i32_54 = arith.constant 1 : i32
    %109 = arith.addi %c1_i32_41, %c1_i32_54 : i32
    %c8_i32_55 = arith.constant 8 : i32
    %110 = arith.muli %109, %c8_i32_55 : i32
    %111 = tpu.assume_multiple %110, 8 : i32
    %112 = arith.index_cast %111 : i32 to index
    %c0_56 = arith.constant 0 : index
    %113 = vector.load %arg9[%112, %c0_56] : memref<64x256xf32, #tpu.memory_space<vmem>>, vector<8x256xf32>
    %114 = vector.extract_strided_slice %86 {offsets = [0, 0], sizes = [8, 256], strides = [1, 1]} : vector<8x512xf32> to vector<8x256xf32>
    %115 = arith.addf %113, %114 : vector<8x256xf32>
    %116 = vector.extract_strided_slice %115 {offsets = [0, 0], sizes = [8, 192], strides = [1, 1]} : vector<8x256xf32> to vector<8x192xf32>
    %117 = arith.negf %116 : vector<8x192xf32>
    %118 = math.exp %117 : vector<8x192xf32>
    %cst_57 = arith.constant 1.000000e+00 : f32
    %119 = vector.broadcast %cst_57 : f32 to vector<8x192xf32>
    %120 = arith.addf %119, %118 : vector<8x192xf32>
    %121 = arith.divf %119, %120 : vector<8x192xf32>
    %122 = vector.extract_strided_slice %121 {offsets = [0, 0], sizes = [8, 64], strides = [1, 1]} : vector<8x192xf32> to vector<8x64xf32>
    %123 = vector.extract_strided_slice %121 {offsets = [0, 64], sizes = [8, 64], strides = [1, 1]} : vector<8x192xf32> to vector<8x64xf32>
    %124 = vector.extract_strided_slice %121 {offsets = [0, 128], sizes = [8, 64], strides = [1, 1]} : vector<8x192xf32> to vector<8x64xf32>
    %125 = vector.extract_strided_slice %115 {offsets = [0, 192], sizes = [8, 64], strides = [1, 1]} : vector<8x256xf32> to vector<8x64xf32>
    %126 = math.tanh %125 : vector<8x64xf32>
    %c0_58 = arith.constant 0 : index
    %c0_59 = arith.constant 0 : index
    %127 = vector.load %arg11[%c0_58, %c0_59] : memref<8x64xf32, #tpu.memory_space<vmem>>, vector<8x64xf32>
    %128 = arith.mulf %123, %127 : vector<8x64xf32>
    %129 = arith.mulf %122, %126 : vector<8x64xf32>
    %130 = arith.addf %128, %129 : vector<8x64xf32>
    %131 = math.tanh %130 : vector<8x64xf32>
    %132 = arith.mulf %124, %131 : vector<8x64xf32>
    %c0_60 = arith.constant 0 : index
    %c0_61 = arith.constant 0 : index
    %133 = vector.load %arg11[%c0_60, %c0_61] : memref<8x64xf32, #tpu.memory_space<vmem>>, vector<8x64xf32>
    tpu.vector_store %arg11[%c0_60, %c0_61], %130 {strides = array<i32>} : memref<8x64xf32, #tpu.memory_space<vmem>>, vector<8x64xf32>,
    %134 = arith.truncf %132 : vector<8x64xf32> to vector<8x64xbf16>
    %c0_62 = arith.constant 0 : index
    %c0_63 = arith.constant 0 : index
    %135 = vector.load %arg10[%c0_62, %c0_63] : memref<8x128xbf16, #tpu.memory_space<vmem>>, vector<8x64xbf16>
    tpu.vector_store %arg10[%c0_62, %c0_63], %134 {strides = array<i32>} : memref<8x128xbf16, #tpu.memory_space<vmem>>, vector<8x64xbf16>,
    %c2_i32 = arith.constant 2 : i32
    %c0_64 = arith.constant 0 : index
    %c0_65 = arith.constant 0 : index
    %136 = vector.load %arg10[%c0_64, %c0_65] : memref<8x128xbf16, #tpu.memory_space<vmem>>, vector<8x128xbf16>
    %c0_66 = arith.constant 0 : index
    %c0_67 = arith.constant 0 : index
    %137 = vector.load %arg4[%c0_66, %c0_67] : memref<128x512xbf16, #tpu.memory_space<vmem>>, vector<128x512xbf16>
    %cst_68 = arith.constant dense<0.000000e+00> : vector<8x512xf32>
    %138 = tpu.matmul %136, %137, %cst_68 {dimension_numbers = #tpu.dot_dimension_numbers<[1], [0], [0], [1], [0, 0, 1, 1], [], []>} : vector<8x128xbf16>, vector<128x512xbf16>, vector<8x512xf32> -> vector<8x512xf32>
    %139 = vector.extract_strided_slice %138 {offsets = [0, 256], sizes = [8, 256], strides = [1, 1]} : vector<8x512xf32> to vector<8x256xf32>
    %140 = arith.addf %139, %10 : vector<8x256xf32>
    %141 = vector.extract_strided_slice %140 {offsets = [0, 0], sizes = [8, 192], strides = [1, 1]} : vector<8x256xf32> to vector<8x192xf32>
    %142 = arith.negf %141 : vector<8x192xf32>
    %143 = math.exp %142 : vector<8x192xf32>
    %cst_69 = arith.constant 1.000000e+00 : f32
    %144 = vector.broadcast %cst_69 : f32 to vector<8x192xf32>
    %145 = arith.addf %144, %143 : vector<8x192xf32>
    %146 = arith.divf %144, %145 : vector<8x192xf32>
    %147 = vector.extract_strided_slice %146 {offsets = [0, 0], sizes = [8, 64], strides = [1, 1]} : vector<8x192xf32> to vector<8x64xf32>
    %148 = vector.extract_strided_slice %146 {offsets = [0, 64], sizes = [8, 64], strides = [1, 1]} : vector<8x192xf32> to vector<8x64xf32>
    %149 = vector.extract_strided_slice %146 {offsets = [0, 128], sizes = [8, 64], strides = [1, 1]} : vector<8x192xf32> to vector<8x64xf32>
    %150 = vector.extract_strided_slice %140 {offsets = [0, 192], sizes = [8, 64], strides = [1, 1]} : vector<8x256xf32> to vector<8x64xf32>
    %151 = math.tanh %150 : vector<8x64xf32>
    %c0_70 = arith.constant 0 : index
    %c0_71 = arith.constant 0 : index
    %152 = vector.load %arg12[%c0_70, %c0_71] : memref<8x64xf32, #tpu.memory_space<vmem>>, vector<8x64xf32>
    %153 = arith.mulf %148, %152 : vector<8x64xf32>
    %154 = arith.mulf %147, %151 : vector<8x64xf32>
    %155 = arith.addf %153, %154 : vector<8x64xf32>
    %156 = math.tanh %155 : vector<8x64xf32>
    %157 = arith.mulf %149, %156 : vector<8x64xf32>
    %c0_72 = arith.constant 0 : index
    %c0_73 = arith.constant 0 : index
    %158 = vector.load %arg12[%c0_72, %c0_73] : memref<8x64xf32, #tpu.memory_space<vmem>>, vector<8x64xf32>
    tpu.vector_store %arg12[%c0_72, %c0_73], %155 {strides = array<i32>} : memref<8x64xf32, #tpu.memory_space<vmem>>, vector<8x64xf32>,
    %159 = arith.truncf %157 : vector<8x64xf32> to vector<8x64xbf16>
    %c0_74 = arith.constant 0 : index
    %c64_75 = arith.constant 64 : index
    %160 = vector.load %arg10[%c0_74, %c64_75] : memref<8x128xbf16, #tpu.memory_space<vmem>>, vector<8x64xbf16>
    tpu.vector_store %arg10[%c0_74, %c64_75], %159 {strides = array<i32>} : memref<8x128xbf16, #tpu.memory_space<vmem>>, vector<8x64xbf16>,
    %c1_i32_76 = arith.constant 1 : i32
    %161 = arith.addi %c2_i32, %c1_i32_76 : i32
    %c8_i32_77 = arith.constant 8 : i32
    %162 = arith.muli %161, %c8_i32_77 : i32
    %163 = tpu.assume_multiple %162, 8 : i32
    %164 = arith.index_cast %163 : i32 to index
    %c0_78 = arith.constant 0 : index
    %165 = vector.load %arg9[%164, %c0_78] : memref<64x256xf32, #tpu.memory_space<vmem>>, vector<8x256xf32>
    %166 = vector.extract_strided_slice %138 {offsets = [0, 0], sizes = [8, 256], strides = [1, 1]} : vector<8x512xf32> to vector<8x256xf32>
    %167 = arith.addf %165, %166 : vector<8x256xf32>
    %168 = vector.extract_strided_slice %167 {offsets = [0, 0], sizes = [8, 192], strides = [1, 1]} : vector<8x256xf32> to vector<8x192xf32>
    %169 = arith.negf %168 : vector<8x192xf32>
    %170 = math.exp %169 : vector<8x192xf32>
    %cst_79 = arith.constant 1.000000e+00 : f32
    %171 = vector.broadcast %cst_79 : f32 to vector<8x192xf32>
    %172 = arith.addf %171, %170 : vector<8x192xf32>
    %173 = arith.divf %171, %172 : vector<8x192xf32>
    %174 = vector.extract_strided_slice %173 {offsets = [0, 0], sizes = [8, 64], strides = [1, 1]} : vector<8x192xf32> to vector<8x64xf32>
    %175 = vector.extract_strided_slice %173 {offsets = [0, 64], sizes = [8, 64], strides = [1, 1]} : vector<8x192xf32> to vector<8x64xf32>
    %176 = vector.extract_strided_slice %173 {offsets = [0, 128], sizes = [8, 64], strides = [1, 1]} : vector<8x192xf32> to vector<8x64xf32>
    %177 = vector.extract_strided_slice %167 {offsets = [0, 192], sizes = [8, 64], strides = [1, 1]} : vector<8x256xf32> to vector<8x64xf32>
    %178 = math.tanh %177 : vector<8x64xf32>
    %c0_80 = arith.constant 0 : index
    %c0_81 = arith.constant 0 : index
    %179 = vector.load %arg11[%c0_80, %c0_81] : memref<8x64xf32, #tpu.memory_space<vmem>>, vector<8x64xf32>
    %180 = arith.mulf %175, %179 : vector<8x64xf32>
    %181 = arith.mulf %174, %178 : vector<8x64xf32>
    %182 = arith.addf %180, %181 : vector<8x64xf32>
    %183 = math.tanh %182 : vector<8x64xf32>
    %184 = arith.mulf %176, %183 : vector<8x64xf32>
    %c0_82 = arith.constant 0 : index
    %c0_83 = arith.constant 0 : index
    %185 = vector.load %arg11[%c0_82, %c0_83] : memref<8x64xf32, #tpu.memory_space<vmem>>, vector<8x64xf32>
    tpu.vector_store %arg11[%c0_82, %c0_83], %182 {strides = array<i32>} : memref<8x64xf32, #tpu.memory_space<vmem>>, vector<8x64xf32>,
    %186 = arith.truncf %184 : vector<8x64xf32> to vector<8x64xbf16>
    %c0_84 = arith.constant 0 : index
    %c0_85 = arith.constant 0 : index
    %187 = vector.load %arg10[%c0_84, %c0_85] : memref<8x128xbf16, #tpu.memory_space<vmem>>, vector<8x64xbf16>
    tpu.vector_store %arg10[%c0_84, %c0_85], %186 {strides = array<i32>} : memref<8x128xbf16, #tpu.memory_space<vmem>>, vector<8x64xbf16>,
    %c3_i32 = arith.constant 3 : i32
    %c0_86 = arith.constant 0 : index
    %c0_87 = arith.constant 0 : index
    %188 = vector.load %arg10[%c0_86, %c0_87] : memref<8x128xbf16, #tpu.memory_space<vmem>>, vector<8x128xbf16>
    %c0_88 = arith.constant 0 : index
    %c0_89 = arith.constant 0 : index
    %189 = vector.load %arg4[%c0_88, %c0_89] : memref<128x512xbf16, #tpu.memory_space<vmem>>, vector<128x512xbf16>
    %cst_90 = arith.constant dense<0.000000e+00> : vector<8x512xf32>
    %190 = tpu.matmul %188, %189, %cst_90 {dimension_numbers = #tpu.dot_dimension_numbers<[1], [0], [0], [1], [0, 0, 1, 1], [], []>} : vector<8x128xbf16>, vector<128x512xbf16>, vector<8x512xf32> -> vector<8x512xf32>
    %191 = vector.extract_strided_slice %190 {offsets = [0, 256], sizes = [8, 256], strides = [1, 1]} : vector<8x512xf32> to vector<8x256xf32>
    %192 = arith.addf %191, %10 : vector<8x256xf32>
    %193 = vector.extract_strided_slice %192 {offsets = [0, 0], sizes = [8, 192], strides = [1, 1]} : vector<8x256xf32> to vector<8x192xf32>
    %194 = arith.negf %193 : vector<8x192xf32>
    %195 = math.exp %194 : vector<8x192xf32>
    %cst_91 = arith.constant 1.000000e+00 : f32
    %196 = vector.broadcast %cst_91 : f32 to vector<8x192xf32>
    %197 = arith.addf %196, %195 : vector<8x192xf32>
    %198 = arith.divf %196, %197 : vector<8x192xf32>
    %199 = vector.extract_strided_slice %198 {offsets = [0, 0], sizes = [8, 64], strides = [1, 1]} : vector<8x192xf32> to vector<8x64xf32>
    %200 = vector.extract_strided_slice %198 {offsets = [0, 64], sizes = [8, 64], strides = [1, 1]} : vector<8x192xf32> to vector<8x64xf32>
    %201 = vector.extract_strided_slice %198 {offsets = [0, 128], sizes = [8, 64], strides = [1, 1]} : vector<8x192xf32> to vector<8x64xf32>
    %202 = vector.extract_strided_slice %192 {offsets = [0, 192], sizes = [8, 64], strides = [1, 1]} : vector<8x256xf32> to vector<8x64xf32>
    %203 = math.tanh %202 : vector<8x64xf32>
    %c0_92 = arith.constant 0 : index
    %c0_93 = arith.constant 0 : index
    %204 = vector.load %arg12[%c0_92, %c0_93] : memref<8x64xf32, #tpu.memory_space<vmem>>, vector<8x64xf32>
    %205 = arith.mulf %200, %204 : vector<8x64xf32>
    %206 = arith.mulf %199, %203 : vector<8x64xf32>
    %207 = arith.addf %205, %206 : vector<8x64xf32>
    %208 = math.tanh %207 : vector<8x64xf32>
    %209 = arith.mulf %201, %208 : vector<8x64xf32>
    %c0_94 = arith.constant 0 : index
    %c0_95 = arith.constant 0 : index
    %210 = vector.load %arg12[%c0_94, %c0_95] : memref<8x64xf32, #tpu.memory_space<vmem>>, vector<8x64xf32>
    tpu.vector_store %arg12[%c0_94, %c0_95], %207 {strides = array<i32>} : memref<8x64xf32, #tpu.memory_space<vmem>>, vector<8x64xf32>,
    %211 = arith.truncf %209 : vector<8x64xf32> to vector<8x64xbf16>
    %c0_96 = arith.constant 0 : index
    %c64_97 = arith.constant 64 : index
    %212 = vector.load %arg10[%c0_96, %c64_97] : memref<8x128xbf16, #tpu.memory_space<vmem>>, vector<8x64xbf16>
    tpu.vector_store %arg10[%c0_96, %c64_97], %211 {strides = array<i32>} : memref<8x128xbf16, #tpu.memory_space<vmem>>, vector<8x64xbf16>,
    %c1_i32_98 = arith.constant 1 : i32
    %213 = arith.addi %c3_i32, %c1_i32_98 : i32
    %c8_i32_99 = arith.constant 8 : i32
    %214 = arith.muli %213, %c8_i32_99 : i32
    %215 = tpu.assume_multiple %214, 8 : i32
    %216 = arith.index_cast %215 : i32 to index
    %c0_100 = arith.constant 0 : index
    %217 = vector.load %arg9[%216, %c0_100] : memref<64x256xf32, #tpu.memory_space<vmem>>, vector<8x256xf32>
    %218 = vector.extract_strided_slice %190 {offsets = [0, 0], sizes = [8, 256], strides = [1, 1]} : vector<8x512xf32> to vector<8x256xf32>
    %219 = arith.addf %217, %218 : vector<8x256xf32>
    %220 = vector.extract_strided_slice %219 {offsets = [0, 0], sizes = [8, 192], strides = [1, 1]} : vector<8x256xf32> to vector<8x192xf32>
    %221 = arith.negf %220 : vector<8x192xf32>
    %222 = math.exp %221 : vector<8x192xf32>
    %cst_101 = arith.constant 1.000000e+00 : f32
    %223 = vector.broadcast %cst_101 : f32 to vector<8x192xf32>
    %224 = arith.addf %223, %222 : vector<8x192xf32>
    %225 = arith.divf %223, %224 : vector<8x192xf32>
    %226 = vector.extract_strided_slice %225 {offsets = [0, 0], sizes = [8, 64], strides = [1, 1]} : vector<8x192xf32> to vector<8x64xf32>
    %227 = vector.extract_strided_slice %225 {offsets = [0, 64], sizes = [8, 64], strides = [1, 1]} : vector<8x192xf32> to vector<8x64xf32>
    %228 = vector.extract_strided_slice %225 {offsets = [0, 128], sizes = [8, 64], strides = [1, 1]} : vector<8x192xf32> to vector<8x64xf32>
    %229 = vector.extract_strided_slice %219 {offsets = [0, 192], sizes = [8, 64], strides = [1, 1]} : vector<8x256xf32> to vector<8x64xf32>
    %230 = math.tanh %229 : vector<8x64xf32>
    %c0_102 = arith.constant 0 : index
    %c0_103 = arith.constant 0 : index
    %231 = vector.load %arg11[%c0_102, %c0_103] : memref<8x64xf32, #tpu.memory_space<vmem>>, vector<8x64xf32>
    %232 = arith.mulf %227, %231 : vector<8x64xf32>
    %233 = arith.mulf %226, %230 : vector<8x64xf32>
    %234 = arith.addf %232, %233 : vector<8x64xf32>
    %235 = math.tanh %234 : vector<8x64xf32>
    %236 = arith.mulf %228, %235 : vector<8x64xf32>
    %c0_104 = arith.constant 0 : index
    %c0_105 = arith.constant 0 : index
    %237 = vector.load %arg11[%c0_104, %c0_105] : memref<8x64xf32, #tpu.memory_space<vmem>>, vector<8x64xf32>
    tpu.vector_store %arg11[%c0_104, %c0_105], %234 {strides = array<i32>} : memref<8x64xf32, #tpu.memory_space<vmem>>, vector<8x64xf32>,
    %238 = arith.truncf %236 : vector<8x64xf32> to vector<8x64xbf16>
    %c0_106 = arith.constant 0 : index
    %c0_107 = arith.constant 0 : index
    %239 = vector.load %arg10[%c0_106, %c0_107] : memref<8x128xbf16, #tpu.memory_space<vmem>>, vector<8x64xbf16>
    tpu.vector_store %arg10[%c0_106, %c0_107], %238 {strides = array<i32>} : memref<8x128xbf16, #tpu.memory_space<vmem>>, vector<8x64xbf16>,
    %c4_i32 = arith.constant 4 : i32
    %c0_108 = arith.constant 0 : index
    %c0_109 = arith.constant 0 : index
    %240 = vector.load %arg10[%c0_108, %c0_109] : memref<8x128xbf16, #tpu.memory_space<vmem>>, vector<8x128xbf16>
    %c0_110 = arith.constant 0 : index
    %c0_111 = arith.constant 0 : index
    %241 = vector.load %arg4[%c0_110, %c0_111] : memref<128x512xbf16, #tpu.memory_space<vmem>>, vector<128x512xbf16>
    %cst_112 = arith.constant dense<0.000000e+00> : vector<8x512xf32>
    %242 = tpu.matmul %240, %241, %cst_112 {dimension_numbers = #tpu.dot_dimension_numbers<[1], [0], [0], [1], [0, 0, 1, 1], [], []>} : vector<8x128xbf16>, vector<128x512xbf16>, vector<8x512xf32> -> vector<8x512xf32>
    %243 = vector.extract_strided_slice %242 {offsets = [0, 256], sizes = [8, 256], strides = [1, 1]} : vector<8x512xf32> to vector<8x256xf32>
    %244 = arith.addf %243, %10 : vector<8x256xf32>
    %245 = vector.extract_strided_slice %244 {offsets = [0, 0], sizes = [8, 192], strides = [1, 1]} : vector<8x256xf32> to vector<8x192xf32>
    %246 = arith.negf %245 : vector<8x192xf32>
    %247 = math.exp %246 : vector<8x192xf32>
    %cst_113 = arith.constant 1.000000e+00 : f32
    %248 = vector.broadcast %cst_113 : f32 to vector<8x192xf32>
    %249 = arith.addf %248, %247 : vector<8x192xf32>
    %250 = arith.divf %248, %249 : vector<8x192xf32>
    %251 = vector.extract_strided_slice %250 {offsets = [0, 0], sizes = [8, 64], strides = [1, 1]} : vector<8x192xf32> to vector<8x64xf32>
    %252 = vector.extract_strided_slice %250 {offsets = [0, 64], sizes = [8, 64], strides = [1, 1]} : vector<8x192xf32> to vector<8x64xf32>
    %253 = vector.extract_strided_slice %250 {offsets = [0, 128], sizes = [8, 64], strides = [1, 1]} : vector<8x192xf32> to vector<8x64xf32>
    %254 = vector.extract_strided_slice %244 {offsets = [0, 192], sizes = [8, 64], strides = [1, 1]} : vector<8x256xf32> to vector<8x64xf32>
    %255 = math.tanh %254 : vector<8x64xf32>
    %c0_114 = arith.constant 0 : index
    %c0_115 = arith.constant 0 : index
    %256 = vector.load %arg12[%c0_114, %c0_115] : memref<8x64xf32, #tpu.memory_space<vmem>>, vector<8x64xf32>
    %257 = arith.mulf %252, %256 : vector<8x64xf32>
    %258 = arith.mulf %251, %255 : vector<8x64xf32>
    %259 = arith.addf %257, %258 : vector<8x64xf32>
    %260 = math.tanh %259 : vector<8x64xf32>
    %261 = arith.mulf %253, %260 : vector<8x64xf32>
    %c0_116 = arith.constant 0 : index
    %c0_117 = arith.constant 0 : index
    %262 = vector.load %arg12[%c0_116, %c0_117] : memref<8x64xf32, #tpu.memory_space<vmem>>, vector<8x64xf32>
    tpu.vector_store %arg12[%c0_116, %c0_117], %259 {strides = array<i32>} : memref<8x64xf32, #tpu.memory_space<vmem>>, vector<8x64xf32>,
    %263 = arith.truncf %261 : vector<8x64xf32> to vector<8x64xbf16>
    %c0_118 = arith.constant 0 : index
    %c64_119 = arith.constant 64 : index
    %264 = vector.load %arg10[%c0_118, %c64_119] : memref<8x128xbf16, #tpu.memory_space<vmem>>, vector<8x64xbf16>
    tpu.vector_store %arg10[%c0_118, %c64_119], %263 {strides = array<i32>} : memref<8x128xbf16, #tpu.memory_space<vmem>>, vector<8x64xbf16>,
    %c1_i32_120 = arith.constant 1 : i32
    %265 = arith.addi %c4_i32, %c1_i32_120 : i32
    %c8_i32_121 = arith.constant 8 : i32
    %266 = arith.muli %265, %c8_i32_121 : i32
    %267 = tpu.assume_multiple %266, 8 : i32
    %268 = arith.index_cast %267 : i32 to index
    %c0_122 = arith.constant 0 : index
    %269 = vector.load %arg9[%268, %c0_122] : memref<64x256xf32, #tpu.memory_space<vmem>>, vector<8x256xf32>
    %270 = vector.extract_strided_slice %242 {offsets = [0, 0], sizes = [8, 256], strides = [1, 1]} : vector<8x512xf32> to vector<8x256xf32>
    %271 = arith.addf %269, %270 : vector<8x256xf32>
    %272 = vector.extract_strided_slice %271 {offsets = [0, 0], sizes = [8, 192], strides = [1, 1]} : vector<8x256xf32> to vector<8x192xf32>
    %273 = arith.negf %272 : vector<8x192xf32>
    %274 = math.exp %273 : vector<8x192xf32>
    %cst_123 = arith.constant 1.000000e+00 : f32
    %275 = vector.broadcast %cst_123 : f32 to vector<8x192xf32>
    %276 = arith.addf %275, %274 : vector<8x192xf32>
    %277 = arith.divf %275, %276 : vector<8x192xf32>
    %278 = vector.extract_strided_slice %277 {offsets = [0, 0], sizes = [8, 64], strides = [1, 1]} : vector<8x192xf32> to vector<8x64xf32>
    %279 = vector.extract_strided_slice %277 {offsets = [0, 64], sizes = [8, 64], strides = [1, 1]} : vector<8x192xf32> to vector<8x64xf32>
    %280 = vector.extract_strided_slice %277 {offsets = [0, 128], sizes = [8, 64], strides = [1, 1]} : vector<8x192xf32> to vector<8x64xf32>
    %281 = vector.extract_strided_slice %271 {offsets = [0, 192], sizes = [8, 64], strides = [1, 1]} : vector<8x256xf32> to vector<8x64xf32>
    %282 = math.tanh %281 : vector<8x64xf32>
    %c0_124 = arith.constant 0 : index
    %c0_125 = arith.constant 0 : index
    %283 = vector.load %arg11[%c0_124, %c0_125] : memref<8x64xf32, #tpu.memory_space<vmem>>, vector<8x64xf32>
    %284 = arith.mulf %279, %283 : vector<8x64xf32>
    %285 = arith.mulf %278, %282 : vector<8x64xf32>
    %286 = arith.addf %284, %285 : vector<8x64xf32>
    %287 = math.tanh %286 : vector<8x64xf32>
    %288 = arith.mulf %280, %287 : vector<8x64xf32>
    %c0_126 = arith.constant 0 : index
    %c0_127 = arith.constant 0 : index
    %289 = vector.load %arg11[%c0_126, %c0_127] : memref<8x64xf32, #tpu.memory_space<vmem>>, vector<8x64xf32>
    tpu.vector_store %arg11[%c0_126, %c0_127], %286 {strides = array<i32>} : memref<8x64xf32, #tpu.memory_space<vmem>>, vector<8x64xf32>,
    %290 = arith.truncf %288 : vector<8x64xf32> to vector<8x64xbf16>
    %c0_128 = arith.constant 0 : index
    %c0_129 = arith.constant 0 : index
    %291 = vector.load %arg10[%c0_128, %c0_129] : memref<8x128xbf16, #tpu.memory_space<vmem>>, vector<8x64xbf16>
    tpu.vector_store %arg10[%c0_128, %c0_129], %290 {strides = array<i32>} : memref<8x128xbf16, #tpu.memory_space<vmem>>, vector<8x64xbf16>,
    %c5_i32 = arith.constant 5 : i32
    %c0_130 = arith.constant 0 : index
    %c0_131 = arith.constant 0 : index
    %292 = vector.load %arg10[%c0_130, %c0_131] : memref<8x128xbf16, #tpu.memory_space<vmem>>, vector<8x128xbf16>
    %c0_132 = arith.constant 0 : index
    %c0_133 = arith.constant 0 : index
    %293 = vector.load %arg4[%c0_132, %c0_133] : memref<128x512xbf16, #tpu.memory_space<vmem>>, vector<128x512xbf16>
    %cst_134 = arith.constant dense<0.000000e+00> : vector<8x512xf32>
    %294 = tpu.matmul %292, %293, %cst_134 {dimension_numbers = #tpu.dot_dimension_numbers<[1], [0], [0], [1], [0, 0, 1, 1], [], []>} : vector<8x128xbf16>, vector<128x512xbf16>, vector<8x512xf32> -> vector<8x512xf32>
    %295 = vector.extract_strided_slice %294 {offsets = [0, 256], sizes = [8, 256], strides = [1, 1]} : vector<8x512xf32> to vector<8x256xf32>
    %296 = arith.addf %295, %10 : vector<8x256xf32>
    %297 = vector.extract_strided_slice %296 {offsets = [0, 0], sizes = [8, 192], strides = [1, 1]} : vector<8x256xf32> to vector<8x192xf32>
    %298 = arith.negf %297 : vector<8x192xf32>
    %299 = math.exp %298 : vector<8x192xf32>
    %cst_135 = arith.constant 1.000000e+00 : f32
    %300 = vector.broadcast %cst_135 : f32 to vector<8x192xf32>
    %301 = arith.addf %300, %299 : vector<8x192xf32>
    %302 = arith.divf %300, %301 : vector<8x192xf32>
    %303 = vector.extract_strided_slice %302 {offsets = [0, 0], sizes = [8, 64], strides = [1, 1]} : vector<8x192xf32> to vector<8x64xf32>
    %304 = vector.extract_strided_slice %302 {offsets = [0, 64], sizes = [8, 64], strides = [1, 1]} : vector<8x192xf32> to vector<8x64xf32>
    %305 = vector.extract_strided_slice %302 {offsets = [0, 128], sizes = [8, 64], strides = [1, 1]} : vector<8x192xf32> to vector<8x64xf32>
    %306 = vector.extract_strided_slice %296 {offsets = [0, 192], sizes = [8, 64], strides = [1, 1]} : vector<8x256xf32> to vector<8x64xf32>
    %307 = math.tanh %306 : vector<8x64xf32>
    %c0_136 = arith.constant 0 : index
    %c0_137 = arith.constant 0 : index
    %308 = vector.load %arg12[%c0_136, %c0_137] : memref<8x64xf32, #tpu.memory_space<vmem>>, vector<8x64xf32>
    %309 = arith.mulf %304, %308 : vector<8x64xf32>
    %310 = arith.mulf %303, %307 : vector<8x64xf32>
    %311 = arith.addf %309, %310 : vector<8x64xf32>
    %312 = math.tanh %311 : vector<8x64xf32>
    %313 = arith.mulf %305, %312 : vector<8x64xf32>
    %c0_138 = arith.constant 0 : index
    %c0_139 = arith.constant 0 : index
    %314 = vector.load %arg12[%c0_138, %c0_139] : memref<8x64xf32, #tpu.memory_space<vmem>>, vector<8x64xf32>
    tpu.vector_store %arg12[%c0_138, %c0_139], %311 {strides = array<i32>} : memref<8x64xf32, #tpu.memory_space<vmem>>, vector<8x64xf32>,
    %315 = arith.truncf %313 : vector<8x64xf32> to vector<8x64xbf16>
    %c0_140 = arith.constant 0 : index
    %c64_141 = arith.constant 64 : index
    %316 = vector.load %arg10[%c0_140, %c64_141] : memref<8x128xbf16, #tpu.memory_space<vmem>>, vector<8x64xbf16>
    tpu.vector_store %arg10[%c0_140, %c64_141], %315 {strides = array<i32>} : memref<8x128xbf16, #tpu.memory_space<vmem>>, vector<8x64xbf16>,
    %c1_i32_142 = arith.constant 1 : i32
    %317 = arith.addi %c5_i32, %c1_i32_142 : i32
    %c8_i32_143 = arith.constant 8 : i32
    %318 = arith.muli %317, %c8_i32_143 : i32
    %319 = tpu.assume_multiple %318, 8 : i32
    %320 = arith.index_cast %319 : i32 to index
    %c0_144 = arith.constant 0 : index
    %321 = vector.load %arg9[%320, %c0_144] : memref<64x256xf32, #tpu.memory_space<vmem>>, vector<8x256xf32>
    %322 = vector.extract_strided_slice %294 {offsets = [0, 0], sizes = [8, 256], strides = [1, 1]} : vector<8x512xf32> to vector<8x256xf32>
    %323 = arith.addf %321, %322 : vector<8x256xf32>
    %324 = vector.extract_strided_slice %323 {offsets = [0, 0], sizes = [8, 192], strides = [1, 1]} : vector<8x256xf32> to vector<8x192xf32>
    %325 = arith.negf %324 : vector<8x192xf32>
    %326 = math.exp %325 : vector<8x192xf32>
    %cst_145 = arith.constant 1.000000e+00 : f32
    %327 = vector.broadcast %cst_145 : f32 to vector<8x192xf32>
    %328 = arith.addf %327, %326 : vector<8x192xf32>
    %329 = arith.divf %327, %328 : vector<8x192xf32>
    %330 = vector.extract_strided_slice %329 {offsets = [0, 0], sizes = [8, 64], strides = [1, 1]} : vector<8x192xf32> to vector<8x64xf32>
    %331 = vector.extract_strided_slice %329 {offsets = [0, 64], sizes = [8, 64], strides = [1, 1]} : vector<8x192xf32> to vector<8x64xf32>
    %332 = vector.extract_strided_slice %329 {offsets = [0, 128], sizes = [8, 64], strides = [1, 1]} : vector<8x192xf32> to vector<8x64xf32>
    %333 = vector.extract_strided_slice %323 {offsets = [0, 192], sizes = [8, 64], strides = [1, 1]} : vector<8x256xf32> to vector<8x64xf32>
    %334 = math.tanh %333 : vector<8x64xf32>
    %c0_146 = arith.constant 0 : index
    %c0_147 = arith.constant 0 : index
    %335 = vector.load %arg11[%c0_146, %c0_147] : memref<8x64xf32, #tpu.memory_space<vmem>>, vector<8x64xf32>
    %336 = arith.mulf %331, %335 : vector<8x64xf32>
    %337 = arith.mulf %330, %334 : vector<8x64xf32>
    %338 = arith.addf %336, %337 : vector<8x64xf32>
    %339 = math.tanh %338 : vector<8x64xf32>
    %340 = arith.mulf %332, %339 : vector<8x64xf32>
    %c0_148 = arith.constant 0 : index
    %c0_149 = arith.constant 0 : index
    %341 = vector.load %arg11[%c0_148, %c0_149] : memref<8x64xf32, #tpu.memory_space<vmem>>, vector<8x64xf32>
    tpu.vector_store %arg11[%c0_148, %c0_149], %338 {strides = array<i32>} : memref<8x64xf32, #tpu.memory_space<vmem>>, vector<8x64xf32>,
    %342 = arith.truncf %340 : vector<8x64xf32> to vector<8x64xbf16>
    %c0_150 = arith.constant 0 : index
    %c0_151 = arith.constant 0 : index
    %343 = vector.load %arg10[%c0_150, %c0_151] : memref<8x128xbf16, #tpu.memory_space<vmem>>, vector<8x64xbf16>
    tpu.vector_store %arg10[%c0_150, %c0_151], %342 {strides = array<i32>} : memref<8x128xbf16, #tpu.memory_space<vmem>>, vector<8x64xbf16>,
    %c6_i32 = arith.constant 6 : i32
    %c0_152 = arith.constant 0 : index
    %c0_153 = arith.constant 0 : index
    %344 = vector.load %arg10[%c0_152, %c0_153] : memref<8x128xbf16, #tpu.memory_space<vmem>>, vector<8x128xbf16>
    %c0_154 = arith.constant 0 : index
    %c0_155 = arith.constant 0 : index
    %345 = vector.load %arg4[%c0_154, %c0_155] : memref<128x512xbf16, #tpu.memory_space<vmem>>, vector<128x512xbf16>
    %cst_156 = arith.constant dense<0.000000e+00> : vector<8x512xf32>
    %346 = tpu.matmul %344, %345, %cst_156 {dimension_numbers = #tpu.dot_dimension_numbers<[1], [0], [0], [1], [0, 0, 1, 1], [], []>} : vector<8x128xbf16>, vector<128x512xbf16>, vector<8x512xf32> -> vector<8x512xf32>
    %347 = vector.extract_strided_slice %346 {offsets = [0, 256], sizes = [8, 256], strides = [1, 1]} : vector<8x512xf32> to vector<8x256xf32>
    %348 = arith.addf %347, %10 : vector<8x256xf32>
    %349 = vector.extract_strided_slice %348 {offsets = [0, 0], sizes = [8, 192], strides = [1, 1]} : vector<8x256xf32> to vector<8x192xf32>
    %350 = arith.negf %349 : vector<8x192xf32>
    %351 = math.exp %350 : vector<8x192xf32>
    %cst_157 = arith.constant 1.000000e+00 : f32
    %352 = vector.broadcast %cst_157 : f32 to vector<8x192xf32>
    %353 = arith.addf %352, %351 : vector<8x192xf32>
    %354 = arith.divf %352, %353 : vector<8x192xf32>
    %355 = vector.extract_strided_slice %354 {offsets = [0, 0], sizes = [8, 64], strides = [1, 1]} : vector<8x192xf32> to vector<8x64xf32>
    %356 = vector.extract_strided_slice %354 {offsets = [0, 64], sizes = [8, 64], strides = [1, 1]} : vector<8x192xf32> to vector<8x64xf32>
    %357 = vector.extract_strided_slice %354 {offsets = [0, 128], sizes = [8, 64], strides = [1, 1]} : vector<8x192xf32> to vector<8x64xf32>
    %358 = vector.extract_strided_slice %348 {offsets = [0, 192], sizes = [8, 64], strides = [1, 1]} : vector<8x256xf32> to vector<8x64xf32>
    %359 = math.tanh %358 : vector<8x64xf32>
    %c0_158 = arith.constant 0 : index
    %c0_159 = arith.constant 0 : index
    %360 = vector.load %arg12[%c0_158, %c0_159] : memref<8x64xf32, #tpu.memory_space<vmem>>, vector<8x64xf32>
    %361 = arith.mulf %356, %360 : vector<8x64xf32>
    %362 = arith.mulf %355, %359 : vector<8x64xf32>
    %363 = arith.addf %361, %362 : vector<8x64xf32>
    %364 = math.tanh %363 : vector<8x64xf32>
    %365 = arith.mulf %357, %364 : vector<8x64xf32>
    %c0_160 = arith.constant 0 : index
    %c0_161 = arith.constant 0 : index
    %366 = vector.load %arg12[%c0_160, %c0_161] : memref<8x64xf32, #tpu.memory_space<vmem>>, vector<8x64xf32>
    tpu.vector_store %arg12[%c0_160, %c0_161], %363 {strides = array<i32>} : memref<8x64xf32, #tpu.memory_space<vmem>>, vector<8x64xf32>,
    %367 = arith.truncf %365 : vector<8x64xf32> to vector<8x64xbf16>
    %c0_162 = arith.constant 0 : index
    %c64_163 = arith.constant 64 : index
    %368 = vector.load %arg10[%c0_162, %c64_163] : memref<8x128xbf16, #tpu.memory_space<vmem>>, vector<8x64xbf16>
    tpu.vector_store %arg10[%c0_162, %c64_163], %367 {strides = array<i32>} : memref<8x128xbf16, #tpu.memory_space<vmem>>, vector<8x64xbf16>,
    %c1_i32_164 = arith.constant 1 : i32
    %369 = arith.addi %c6_i32, %c1_i32_164 : i32
    %c8_i32_165 = arith.constant 8 : i32
    %370 = arith.muli %369, %c8_i32_165 : i32
    %371 = tpu.assume_multiple %370, 8 : i32
    %372 = arith.index_cast %371 : i32 to index
    %c0_166 = arith.constant 0 : index
    %373 = vector.load %arg9[%372, %c0_166] : memref<64x256xf32, #tpu.memory_space<vmem>>, vector<8x256xf32>
    %374 = vector.extract_strided_slice %346 {offsets = [0, 0], sizes = [8, 256], strides = [1, 1]} : vector<8x512xf32> to vector<8x256xf32>
    %375 = arith.addf %373, %374 : vector<8x256xf32>
    %376 = vector.extract_strided_slice %375 {offsets = [0, 0], sizes = [8, 192], strides = [1, 1]} : vector<8x256xf32> to vector<8x192xf32>
    %377 = arith.negf %376 : vector<8x192xf32>
    %378 = math.exp %377 : vector<8x192xf32>
    %cst_167 = arith.constant 1.000000e+00 : f32
    %379 = vector.broadcast %cst_167 : f32 to vector<8x192xf32>
    %380 = arith.addf %379, %378 : vector<8x192xf32>
    %381 = arith.divf %379, %380 : vector<8x192xf32>
    %382 = vector.extract_strided_slice %381 {offsets = [0, 0], sizes = [8, 64], strides = [1, 1]} : vector<8x192xf32> to vector<8x64xf32>
    %383 = vector.extract_strided_slice %381 {offsets = [0, 64], sizes = [8, 64], strides = [1, 1]} : vector<8x192xf32> to vector<8x64xf32>
    %384 = vector.extract_strided_slice %381 {offsets = [0, 128], sizes = [8, 64], strides = [1, 1]} : vector<8x192xf32> to vector<8x64xf32>
    %385 = vector.extract_strided_slice %375 {offsets = [0, 192], sizes = [8, 64], strides = [1, 1]} : vector<8x256xf32> to vector<8x64xf32>
    %386 = math.tanh %385 : vector<8x64xf32>
    %c0_168 = arith.constant 0 : index
    %c0_169 = arith.constant 0 : index
    %387 = vector.load %arg11[%c0_168, %c0_169] : memref<8x64xf32, #tpu.memory_space<vmem>>, vector<8x64xf32>
    %388 = arith.mulf %383, %387 : vector<8x64xf32>
    %389 = arith.mulf %382, %386 : vector<8x64xf32>
    %390 = arith.addf %388, %389 : vector<8x64xf32>
    %391 = math.tanh %390 : vector<8x64xf32>
    %392 = arith.mulf %384, %391 : vector<8x64xf32>
    %c0_170 = arith.constant 0 : index
    %c0_171 = arith.constant 0 : index
    %393 = vector.load %arg11[%c0_170, %c0_171] : memref<8x64xf32, #tpu.memory_space<vmem>>, vector<8x64xf32>
    tpu.vector_store %arg11[%c0_170, %c0_171], %390 {strides = array<i32>} : memref<8x64xf32, #tpu.memory_space<vmem>>, vector<8x64xf32>,
    %394 = arith.truncf %392 : vector<8x64xf32> to vector<8x64xbf16>
    %c0_172 = arith.constant 0 : index
    %c0_173 = arith.constant 0 : index
    %395 = vector.load %arg10[%c0_172, %c0_173] : memref<8x128xbf16, #tpu.memory_space<vmem>>, vector<8x64xbf16>
    tpu.vector_store %arg10[%c0_172, %c0_173], %394 {strides = array<i32>} : memref<8x128xbf16, #tpu.memory_space<vmem>>, vector<8x64xbf16>,
    %c7_i32 = arith.constant 7 : i32
    %c0_174 = arith.constant 0 : index
    %c0_175 = arith.constant 0 : index
    %396 = vector.load %arg10[%c0_174, %c0_175] : memref<8x128xbf16, #tpu.memory_space<vmem>>, vector<8x128xbf16>
    %c0_176 = arith.constant 0 : index
    %c0_177 = arith.constant 0 : index
    %397 = vector.load %arg4[%c0_176, %c0_177] : memref<128x512xbf16, #tpu.memory_space<vmem>>, vector<128x512xbf16>
    %cst_178 = arith.constant dense<0.000000e+00> : vector<8x512xf32>
    %398 = tpu.matmul %396, %397, %cst_178 {dimension_numbers = #tpu.dot_dimension_numbers<[1], [0], [0], [1], [0, 0, 1, 1], [], []>} : vector<8x128xbf16>, vector<128x512xbf16>, vector<8x512xf32> -> vector<8x512xf32>
    %399 = vector.extract_strided_slice %398 {offsets = [0, 256], sizes = [8, 256], strides = [1, 1]} : vector<8x512xf32> to vector<8x256xf32>
    %400 = arith.addf %399, %10 : vector<8x256xf32>
    %401 = vector.extract_strided_slice %400 {offsets = [0, 0], sizes = [8, 192], strides = [1, 1]} : vector<8x256xf32> to vector<8x192xf32>
    %402 = arith.negf %401 : vector<8x192xf32>
    %403 = math.exp %402 : vector<8x192xf32>
    %cst_179 = arith.constant 1.000000e+00 : f32
    %404 = vector.broadcast %cst_179 : f32 to vector<8x192xf32>
    %405 = arith.addf %404, %403 : vector<8x192xf32>
    %406 = arith.divf %404, %405 : vector<8x192xf32>
    %407 = vector.extract_strided_slice %406 {offsets = [0, 0], sizes = [8, 64], strides = [1, 1]} : vector<8x192xf32> to vector<8x64xf32>
    %408 = vector.extract_strided_slice %406 {offsets = [0, 64], sizes = [8, 64], strides = [1, 1]} : vector<8x192xf32> to vector<8x64xf32>
    %409 = vector.extract_strided_slice %406 {offsets = [0, 128], sizes = [8, 64], strides = [1, 1]} : vector<8x192xf32> to vector<8x64xf32>
    %410 = vector.extract_strided_slice %400 {offsets = [0, 192], sizes = [8, 64], strides = [1, 1]} : vector<8x256xf32> to vector<8x64xf32>
    %411 = math.tanh %410 : vector<8x64xf32>
    %c0_180 = arith.constant 0 : index
    %c0_181 = arith.constant 0 : index
    %412 = vector.load %arg12[%c0_180, %c0_181] : memref<8x64xf32, #tpu.memory_space<vmem>>, vector<8x64xf32>
    %413 = arith.mulf %408, %412 : vector<8x64xf32>
    %414 = arith.mulf %407, %411 : vector<8x64xf32>
    %415 = arith.addf %413, %414 : vector<8x64xf32>
    %416 = math.tanh %415 : vector<8x64xf32>
    %417 = arith.mulf %409, %416 : vector<8x64xf32>
    %c0_182 = arith.constant 0 : index
    %c0_183 = arith.constant 0 : index
    %418 = vector.load %arg6[%c0_182, %c0_183] : memref<64x2xf32, #tpu.memory_space<vmem>>, vector<64x2xf32>
    %cst_184 = arith.constant dense<0.000000e+00> : vector<8x2xf32>
    %419 = tpu.matmul %417, %418, %cst_184 {dimension_numbers = #tpu.dot_dimension_numbers<[1], [0], [0], [1], [0, 0, 1, 1], [], []>} : vector<8x64xf32>, vector<64x2xf32>, vector<8x2xf32> -> vector<8x2xf32>
    %c0_185 = arith.constant 0 : index
    %c0_186 = arith.constant 0 : index
    %420 = vector.load %arg7[%c0_185, %c0_186] : memref<1x2xf32, #tpu.memory_space<vmem>>, vector<1x2xf32>
    %421 = vector.broadcast %420 : vector<1x2xf32> to vector<8x2xf32>
    %422 = arith.addf %419, %421 : vector<8x2xf32>
    %c0_187 = arith.constant 0 : index
    %c0_188 = arith.constant 0 : index
    %423 = vector.load %arg8[%c0_187, %c0_188] : memref<8x2xf32, #tpu.memory_space<vmem>>, vector<8x2xf32>
    tpu.vector_store %arg8[%c0_187, %c0_188], %422 {strides = array<i32>} : memref<8x2xf32, #tpu.memory_space<vmem>>, vector<8x2xf32>,
    return
  }
  func.func @transform_0(%arg0: i32) -> (i32, i32) {
    %c0_i32 = arith.constant 0 : i32
    %c0_i32_0 = arith.constant 0 : i32
    return %arg0, %c0_i32 : i32, i32
  }
  func.func @transform_1(%arg0: i32) -> (i32, i32) {
    %c0_i32 = arith.constant 0 : i32
    %c0_i32_0 = arith.constant 0 : i32
    %c0_i32_1 = arith.constant 0 : i32
    return %c0_i32, %c0_i32_0 : i32, i32
  }
  func.func @transform_2(%arg0: i32) -> (i32, i32) {
    %c0_i32 = arith.constant 0 : i32
    %c0_i32_0 = arith.constant 0 : i32
    %c0_i32_1 = arith.constant 0 : i32
    return %c0_i32, %c0_i32_0 : i32, i32
  }
  func.func @transform_3(%arg0: i32) -> (i32, i32) {
    %c0_i32 = arith.constant 0 : i32
    %c0_i32_0 = arith.constant 0 : i32
    %c0_i32_1 = arith.constant 0 : i32
    return %c0_i32, %c0_i32_0 : i32, i32
  }
  func.func @transform_4(%arg0: i32) -> (i32, i32) {
    %c0_i32 = arith.constant 0 : i32
    %c0_i32_0 = arith.constant 0 : i32
    %c0_i32_1 = arith.constant 0 : i32
    return %c0_i32, %c0_i32_0 : i32, i32
  }
  func.func @transform_5(%arg0: i32) -> (i32, i32) {
    %c0_i32 = arith.constant 0 : i32
    %c0_i32_0 = arith.constant 0 : i32
    %c0_i32_1 = arith.constant 0 : i32
    return %c0_i32, %c0_i32_0 : i32, i32
  }
  func.func @transform_6(%arg0: i32) -> (i32, i32) {
    %c0_i32 = arith.constant 0 : i32
    %c0_i32_0 = arith.constant 0 : i32
    %c0_i32_1 = arith.constant 0 : i32
    return %c0_i32, %c0_i32_0 : i32, i32
  }
  func.func @transform_7(%arg0: i32) -> (i32, i32) {
    %c0_i32 = arith.constant 0 : i32
    %c0_i32_0 = arith.constant 0 : i32
    return %arg0, %c0_i32 : i32, i32
  }
}

</mosaic_0001>

<bundles_post_ra>
// kernel: accident_lstm_forward.1
= control target key start
LH: loop header
LB: loop body
LE: loop exit
PB: predicated region body
PF: predicated region fallthrough
CT: control target
= control target key end

     0   :  { %vm88_vm0 = vcmask 1040384   ;;  %vm75_vm1 = vcmask 277504   ;;  %v4680_v47 = vmov 0   ;;  %s4681_s23 = smov 64   ;;  %vm223_vm6 = vcmask 523264   ;;  %s6682_s1 = inlined_call_operand.vmem [shape: bf16[34,256], index: 1, kind: input, shape index: {}]   ;;  %s6683_s0 = inlined_call_operand.vmem [shape: f32[64,34], index: 0, kind: input, shape index: {}]   ;;  %s6684_s3 = inlined_call_operand.vmem [shape: bf16[128,512], index: 3, kind: input, shape index: {}]   ;;  %s6685_s2 = inlined_call_operand.vmem [shape: f32[1,256], index: 2, kind: input, shape index: {}]   ;;  %s6686_s4 = inlined_call_operand.vmem [shape: f32[1,256], index: 4, kind: input, shape index: {}]   ;;  %s6687_s5 = inlined_call_operand.vmem [shape: f32[64,2], index: 5, kind: input, shape index: {}]   ;;  %s6688_s6 = inlined_call_operand.vmem [shape: f32[1,2], index: 6, kind: input, shape index: {}]   ;;  %s6689_s7 = inlined_call_operand.vmem [shape: f32[8,2], index: 7, kind: output, shape index: {}]  }
   0x1   :  { %v43_v0 = vld [vmem:[%s6682_s1 + $0x20] sm:$0x11]  ;;  %v4242_v3 = vld [vmem:[%s6682_s1 + $0x14] sm:$0xf]  ;;  %v3235_v5 = vld [vmem:[%s6682_s1 + $0x18] sm:$0xf0] }
   0x2   :  { %v64_v1 = vunpack.c.h.b16 %v43_v0  ;;  %v63_v2 = vunpack.c.l.b16 %v43_v0  ;;  %v3233_v7 = vld [vmem:[%s6682_s1 + $0x10] sm:$0xf]  ;;  %v4243_v8 = vld [vmem:[%s6682_s1 + $0x14] sm:$0xf0]  ;;  %v3238_v11 = vor.u32 %v4242_v3, %v3235_v5  ;;  %v4240_v12 = vld [vmem:[%s6682_s1 + $0x4] sm:$0xf] }
   0x3   :  { %v3234_v13 = vor.u32 %v4243_v8, %v3233_v7  ;;  %v3227_v14 = vld [vmem:[%s6682_s1 + $0x8] sm:$0xf0]  ;;  %v3225_v15 = vld [vmem:[%s6682_s1] sm:$0xf]  ;;  %v4241_v16 = vld [vmem:[%s6682_s1 + $0x4] sm:$0xf0] }
   0x4   :  { %v70_v4 = vpack.c.b16 %v64_v1, %v64_v1  ;;  %v69_v6 = vpack.c.b16 %v63_v2, %v63_v2  ;;  %v3230_v17 = vor.u32 %v4240_v12, %v3227_v14  ;;  %v27_v18 = vld [vmem:[%s6683_s0] sm:$0xff]  ;;  %v28_v19 = vld [vmem:[%s6683_s0 + $0x8] sm:$0xff]  ;;  %v3226_v20 = vor.u32 %v4241_v16, %v3225_v15  ;;  %v4274_v23 = vld [vmem:[%s6684_s3 + $0xec] sm:$0xf0]  ;;  %226 = vst [vmem:[#allocation3] sm:$0xf] %v4680_v47 }
   0x5   :  { %v35_v21 = vpack.c.bf16 %v28_v19, %v27_v18  ;;  %v3363_v22 = vld [vmem:[%s6684_s3 + $0xe0] sm:$0xf]  ;;  %v4272_v25 = vld [vmem:[%s6684_s3 + $0xe4] sm:$0xf]  ;;  %v3365_v26 = vld [vmem:[%s6684_s3 + $0xf0] sm:$0xf0] }
   0x6   :  { %v93_v9 = vsel %vm88_vm0, %v70_v4, 0  ;;  %v90_v10 = vsel %vm88_vm0, %v69_v6, 0  ;;  %v3364_v24 = vor.u32 %v4274_v23, %v3363_v22  ;;  %v3347_v27 = vld [vmem:[%s6684_s3 + $0xc0] sm:$0xf]  ;;  %v3368_v28 = vor.u32 %v4272_v25, %v3365_v26  ;;  %v4270_v29 = vld [vmem:[%s6684_s3 + $0xcc] sm:$0xf0] }
   0x7   :  { %129 = vmatpush.bf16.msra.mxu1 %v93_v9  ;;  %100 = vmatpush.bf16.msra.mxu0 %v90_v10  ;;  %v4268_v30 = vld [vmem:[%s6684_s3 + $0xc4] sm:$0xf]  ;;  %v3349_v31 = vld [vmem:[%s6684_s3 + $0xd0] sm:$0xf0]  ;;  %v44_v32 = vld [vmem:[%s6685_s2] sm:$0x3]  ;;  %v3348_v33 = vor.u32 %v4270_v29, %v3347_v27 }
   0x8   :  { %423 = vmatpush.bf16.msra.mxu2 %v3364_v24  ;;  %436 = vmatpush.bf16.msra.mxu3 %v3368_v28  ;;  %v3352_v34 = vor.u32 %v4268_v30, %v3349_v31  ;;  %v3331_v35 = vld [vmem:[%s6684_s3 + $0xa0] sm:$0xf]  ;;  %v4266_v36 = vld [vmem:[%s6684_s3 + $0xac] sm:$0xf0]  ;;  %v4264_v37 = vld [vmem:[%s6684_s3 + $0xa4] sm:$0xf] }
   0x9   :  { %v3333_v38 = vld [vmem:[%s6684_s3 + $0xb0] sm:$0xf0]  ;;  %v4797_v39 = vperm.slane %v44_v32, 1  ;;  %v3332_v40 = vor.u32 %v4266_v36, %v3331_v35  ;;  %v3315_v42 = vld [vmem:[%s6684_s3 + $0x80] sm:$0xf]  ;;  %v4837_v0 = vperm.slane %v44_v32, 0 }
   0xa   :  { %v3336_v41 = vor.u32 %v4264_v37, %v3333_v38  ;;  %v4262_v43 = vld [vmem:[%s6684_s3 + $0x8c] sm:$0xf0]  ;;  %v4260_v45 = vld [vmem:[%s6684_s3 + $0x84] sm:$0xf]  ;;  %v3317_v46 = vld [vmem:[%s6684_s3 + $0x90] sm:$0xf0] }
   0xb   :  { %130 = vmatpush.bf16.msra.mxu1 %v3238_v11  ;;  %101 = vmatpush.bf16.msra.mxu0 %v3234_v13  ;;  %v3316_v49 = vor.u32 %v4262_v43, %v3315_v42  ;;  %v3320_v50 = vor.u32 %v4260_v45, %v3317_v46  ;;  %v3299_v51 = vld [vmem:[%s6684_s3 + $0x60] sm:$0xf]  ;;  %v4258_v52 = vld [vmem:[%s6684_s3 + $0x6c] sm:$0xf0]  ;;  %v4256_v53 = vld [vmem:[%s6684_s3 + $0x64] sm:$0xf] }
   0xc   :  { %424 = vmatpush.bf16.msra.mxu2 %v3348_v33  ;;  %437 = vmatpush.bf16.msra.mxu3 %v3352_v34  ;;  %v3301_v54 = vld [vmem:[%s6684_s3 + $0x70] sm:$0xf0]  ;;  %v3300_v55 = vor.u32 %v4258_v52, %v3299_v51  ;;  %v3283_v57 = vld [vmem:[%s6684_s3 + $0x40] sm:$0xf]  ;;  %v4254_v58 = vld [vmem:[%s6684_s3 + $0x4c] sm:$0xf0] }
   0xd   :  { %v3304_v56 = vor.u32 %v4256_v53, %v3301_v54  ;;  %v4252_v59 = vld [vmem:[%s6684_s3 + $0x44] sm:$0xf]  ;;  %v3285_v60 = vld [vmem:[%s6684_s3 + $0x50] sm:$0xf0]  ;;  %v3284_v62 = vor.u32 %v4254_v58, %v3283_v57  ;;  %v3267_v6 = vld [vmem:[%s6684_s3 + $0x20] sm:$0xf] }
   0xe   :  { %v3288_v63 = vor.u32 %v4252_v59, %v3285_v60  ;;  %v4250_v7 = vld [vmem:[%s6684_s3 + $0x2c] sm:$0xf0]  ;;  %v4248_v8 = vld [vmem:[%s6684_s3 + $0x24] sm:$0xf]  ;;  %v3269_v11 = vld [vmem:[%s6684_s3 + $0x30] sm:$0xf0] }
   0xf   :  { %131 = vmatpush.bf16.msra.mxu1 %v3230_v17  ;;  %102 = vmatpush.bf16.msra.mxu0 %v3226_v20  ;;  %v3268_v10 = vor.u32 %v4250_v7, %v3267_v6  ;;  %v3272_v12 = vor.u32 %v4248_v8, %v3269_v11  ;;  %v3251_v13 = vld [vmem:[%s6684_s3] sm:$0xf]  ;;  %v4246_v14 = vld [vmem:[%s6684_s3 + $0xc] sm:$0xf0]  ;;  %v4244_v15 = vld [vmem:[%s6684_s3 + $0x4] sm:$0xf] }
  0x10   :  { %425 = vmatpush.bf16.msra.mxu2 %v3332_v40  ;;  %438 = vmatpush.bf16.msra.mxu3 %v3336_v41  ;;  %v3252_v16 = vor.u32 %v4246_v14, %v3251_v13  ;;  %v3253_v17 = vld [vmem:[%s6684_s3 + $0x10] sm:$0xf0]  ;;  %v3371_v18 = vld [vmem:[%s6684_s3 + $0xe8] sm:$0xf]  ;;  %v4275_v19 = vld [vmem:[%s6684_s3 + $0xf4] sm:$0xf0] }
  0x11   :  { %v3256_v20 = vor.u32 %v4244_v15, %v3253_v17  ;;  %v4273_v22 = vld [vmem:[%s6684_s3 + $0xec] sm:$0xf]  ;;  %v3373_v23 = vld [vmem:[%s6684_s3 + $0xf8] sm:$0xf0]  ;;  %v3355_v26 = vld [vmem:[%s6684_s3 + $0xc8] sm:$0xf] }
  0x12   :  { %3243 = vmatmul.msk.bf16.vlgmr.msra.gmra.mxu1 %vm75_vm1, %v35_v21  ;;  %3239 = vmatmul.msk.bf16.vlgmr.msra.gmra.mxu0 %vm75_vm1, %v35_v21  ;;  %v3372_v21 = vor.u32 %v4275_v19, %v3371_v18  ;;  %v3376_v25 = vor.u32 %v4273_v22, %v3373_v23  ;;  %v4271_v27 = vld [vmem:[%s6684_s3 + $0xd4] sm:$0xf0]  ;;  %v4269_v28 = vld [vmem:[%s6684_s3 + $0xcc] sm:$0xf]  ;;  %v3357_v31 = vld [vmem:[%s6684_s3 + $0xd8] sm:$0xf0] }
  0x13   :  { %v3356_v30 = vor.u32 %v4271_v27, %v3355_v26  ;;  %v3360_v33 = vor.u32 %v4269_v28, %v3357_v31  ;;  %v3339_v34 = vld [vmem:[%s6684_s3 + $0xa8] sm:$0xf]  ;;  %v4267_v35 = vld [vmem:[%s6684_s3 + $0xb4] sm:$0xf0]  ;;  %v4265_v36 = vld [vmem:[%s6684_s3 + $0xac] sm:$0xf] }
  0x14   :  { %426 = vmatpush.bf16.msra.mxu2 %v3316_v49  ;;  %439 = vmatpush.bf16.msra.mxu3 %v3320_v50  ;;  %v3340_v38 = vor.u32 %v4267_v35, %v3339_v34  ;;  %v3341_v40 = vld [vmem:[%s6684_s3 + $0xb8] sm:$0xf0]  ;;  %v3323_v42 = vld [vmem:[%s6684_s3 + $0x88] sm:$0xf]  ;;  %v4263_v43 = vld [vmem:[%s6684_s3 + $0x94] sm:$0xf0] }
  0x15   :  { %v3344_v41 = vor.u32 %v4265_v36, %v3341_v40  ;;  %v3324_v46 = vor.u32 %v4263_v43, %v3323_v42  ;;  %v3325_v47 = vld [vmem:[%s6684_s3 + $0x98] sm:$0xf0]  ;;  %v3307_v50 = vld [vmem:[%s6684_s3 + $0x68] sm:$0xf]  ;;  %v4259_v51 = vld [vmem:[%s6684_s3 + $0x74] sm:$0xf0] }
  0x16   :  { %v4257_v52 = vld [vmem:[%s6684_s3 + $0x6c] sm:$0xf]  ;;  %v3308_v54 = vor.u32 %v4259_v51, %v3307_v50  ;;  %v3291_v58 = vld [vmem:[%s6684_s3 + $0x48] sm:$0xf]  ;;  %v4255_v59 = vld [vmem:[%s6684_s3 + $0x54] sm:$0xf0] }
  0x17   :  { %v4253_v60 = vld [vmem:[%s6684_s3 + $0x4c] sm:$0xf]  ;;  %v3277_v7 = vld [vmem:[%s6684_s3 + $0x38] sm:$0xf0]  ;;  %v3259_v14 = vld [vmem:[%s6684_s3 + $0x8] sm:$0xf] }
  0x18   :  { %427 = vmatpush.bf16.msra.mxu2 %v3300_v55  ;;  %440 = vmatpush.bf16.msra.mxu3 %v3304_v56  ;;  %v3309_v55 = vld [vmem:[%s6684_s3 + $0x78] sm:$0xf0]  ;;  %v4249_v6 = vld [vmem:[%s6684_s3 + $0x2c] sm:$0xf]  ;;  %v4247_v15 = vld [vmem:[%s6684_s3 + $0x14] sm:$0xf0] }
  0x19   :  { %v3312_v57 = vor.u32 %v4257_v52, %v3309_v55  ;;  %v3280_v13 = vor.u32 %v4249_v6, %v3277_v7  ;;  %v3261_v17 = vld [vmem:[%s6684_s3 + $0x18] sm:$0xf0]  ;;  %v3260_v19 = vor.u32 %v4247_v15, %v3259_v14  ;;  %vm228_vm11 = vcmask 519168  }
  0x1c   :  { %428 = vmatpush.bf16.msra.mxu2 %v3284_v62  ;;  %441 = vmatpush.bf16.msra.mxu3 %v3288_v63  ;;  %v3293_v62 = vld [vmem:[%s6684_s3 + $0x58] sm:$0xf0] }
  0x20   :  { %429 = vmatpush.bf16.msra.mxu2 %v3268_v10  ;;  %442 = vmatpush.bf16.msra.mxu3 %v3272_v12 }
  0x24   :  { %430 = vmatpush.bf16.msra.mxu2 %v3252_v16  ;;  %443 = vmatpush.bf16.msra.mxu3 %v3256_v20  ;;  %v4245_v16 = vld [vmem:[%s6684_s3 + $0xc] sm:$0xf] }
  0x25   :  { %v3264_v22 = vor.u32 %v4245_v16, %v3261_v17 }
  0x28   :  { %449 = vmatpush.bf16.msrb.mxu2 %v3372_v21  ;;  %462 = vmatpush.bf16.msrb.mxu3 %v3376_v25 }
  0x2c   :  { %450 = vmatpush.bf16.msrb.mxu2 %v3356_v30  ;;  %463 = vmatpush.bf16.msrb.mxu3 %v3360_v33  ;;  %v4682_v30 = vmov 0.0  }
  0x2d   :  { %225 = vst.msk [vmem:[#allocation5] sm:$0xff] %vm223_vm6, %v4682_v30 }
  0x30   :  { %451 = vmatpush.bf16.msrb.mxu2 %v3340_v38  ;;  %464 = vmatpush.bf16.msrb.mxu3 %v3344_v41 }
  0x34   :  { %452 = vmatpush.bf16.msrb.mxu2 %v3324_v46  ;;  %v516_v35 = vld [vmem:[#allocation5] sm:$0xff] }
  0x35   :  { %518 = vrot.lane.b32.xlu1 %v516_v35, %s4681_s23 }
  0x38   :  { %453 = vmatpush.bf16.msrb.mxu2 %v3308_v54 }
  0x8f   :  { %v133_v44 = vpop.f32.mrf.mxu1  ;;  %v104_v1 = vpop.f32.mrf.mxu0 }
  0x90   :  { %v134_v48 = vadd.f32 %v133_v44, %v4797_v39  ;;  %v105_v2 = vadd.f32 %v104_v1, %v4837_v0  ;;  %v4261_v44 = vld [vmem:[%s6684_s3 + $0x8c] sm:$0xf]  ;;  %v3296_v1 = vor.u32 %v4253_v60, %v3293_v62 }
  0x92   :  { %4488 = vtanh.f32 %v134_v48  ;;  %v3247_v3 = vmul.f32 -1.442695, %v105_v2  ;;  %v3248_v4 = vmul.f32 -1.442695, %v134_v48  ;;  %v3328_v48 = vor.u32 %v4261_v44, %v3325_v47  ;;  %v3275_v2 = vld [vmem:[%s6684_s3 + $0x28] sm:$0xf] }
  0x94   :  { %4490 = vpow2.f32 %v3247_v3  ;;  %465 = vmatpush.bf16.msrb.mxu3 %v3328_v48  ;;  %v4251_v3 = vld [vmem:[%s6684_s3 + $0x34] sm:$0xf0] }
  0x95   :  { %4492 = vpow2.f32 %v3248_v4  ;;  %v3276_v11 = vor.u32 %v4251_v3, %v3275_v2 }
  0x97   :  { %v135_v36 = vpop.f32.mrf.mxu1 }
  0x98   :  { %v4489_v61 = vpop.eup %4488  ;;  %466 = vmatpush.bf16.msrb.mxu3 %v3312_v57 }
  0x99   :  { %217 = vrot.lane.b32.xlu0 %v4489_v61, %s4681_s23  ;;  %v3292_v61 = vor.u32 %v4255_v59, %v3291_v58 }
  0x9a   :  { %v4491_v5 = vpop.eup %4490 }
  0x9b   :  { %v4849_v9 = vadd.f32 1.0, %v4491_v5  ;;  %v4493_v24 = vpop.eup %4492  ;;  %454 = vmatpush.bf16.msrb.mxu2 %v3292_v61 }
  0x9c   :  { %v4888_v29 = vadd.f32 1.0, %v4493_v24  ;;  %467 = vmatpush.bf16.msrb.mxu3 %v3296_v1 }
  0x9d   :  { %4494 = vrcp.f32 %v4849_v9  ;;  %vm190_vm2 = vweird.f32 %v4849_v9  ;;  %v196_v63 = vand.u32 2147483648, %v4849_v9  ;;  %v194_v5 = vand.u32 2147483647, %v4849_v9 }
  0x9e   :  { %4496 = vrcp.f32 %v4888_v29  ;;  %v211_v25 = vand.u32 2147483648, %v4888_v29  ;;  %vm205_vm8 = vweird.f32 %v4888_v29  ;;  %v209_v26 = vand.u32 2147483647, %v4888_v29 }
  0x9f   :  { %v197_v12 = vor.u32 1.1754944e-38, %v196_v63  ;;  %vm195_vm5 = vcmp.eq.f32.partialorder %v194_v5, 8.507059e+37  ;;  %455 = vmatpush.bf16.msrb.mxu2 %v3276_v11 }
  0xa0   :  { %468 = vmatpush.bf16.msrb.mxu3 %v3280_v13  ;;  %v212_v28 = vor.u32 1.1754944e-38, %v211_v25  ;;  %vm210_vm10 = vcmp.eq.f32.partialorder %v209_v26, 8.507059e+37 }
  0xa3   :  { %v4893_v32 = vpop.eup %4494  ;;  %456 = vmatpush.bf16.msrb.mxu2 %v3260_v19 }
  0xa4   :  { %v186_v37 = vmul.f32 %v4893_v32, %v4849_v9  ;;  %v4922_v49 = vpop.eup %4496  ;;  %vm191_vm3 = vweird.f32 %v4893_v32  ;;  %469 = vmatpush.bf16.msrb.mxu3 %v3264_v22 }
  0xa5   :  { %v201_v56 = vmul.f32 %v4922_v49, %v4888_v29  ;;  %vm4970_vm4 = vmor %vm190_vm2, %vm191_vm3  ;;  %vm206_vm7 = vweird.f32 %v4922_v49 }
  0xa6   :  { %v187_v45 = vsub.f32 1.0, %v186_v37  ;;  %vm207_vm9 = vmor %vm205_vm8, %vm206_vm7  ;;  %v136_v37 = vadd.f32 %v135_v36, %v4797_v39 }
  0xa7   :  { %v202_v8 = vsub.f32 1.0, %v201_v56  ;;  %v519_v5 = vpop.permute.xlu1 %518 }
  0xa8   :  { %v188_v53 = vmul.f32 %v4893_v32, %v187_v45  ;;  %v169_v45 = vld [vmem:[%s6686_s4] sm:$0x3] }
  0xa9   :  { %v203_v18 = vmul.f32 %v4922_v49, %v202_v8  ;;  %v5008_v46 = vperm.slane %v169_v45, 1  ;;  %v5016_v57 = vperm.slane %v169_v45, 0  ;;  %v29_v45 = vld [vmem:[%s6683_s0 + $0x10] sm:$0xff] }
  0xaa   :  { %v189_v4 = vadd.f32 %v4893_v32, %v188_v53  ;;  %v106_v53 = vpop.f32.mrf.mxu0 }
  0xab   :  { %v204_v24 = vadd.f32 %v4922_v49, %v203_v18  ;;  %v107_v54 = vadd.f32 %v106_v53, %v4837_v0  ;;  %v4304_v53 = vld [vmem:[%s6684_s3 + $0xe4] sm:$0xf] }
  0xac   :  { %v193_v9 = vsel %vm4970_vm4, %v4893_v32, %v189_v4 }
  0xad   :  { %v198_v21 = vsel %vm195_vm5, %v197_v12, %v193_v9  ;;  %v208_v27 = vsel %vm207_vm9, %v4922_v49, %v204_v24 }
  0xae   :  { %v213_v32 = vsel %vm210_vm10, %v212_v28, %v208_v27 }
 0x10b   :  { %v218_v20 = vpop.permute.xlu0 %217 }
 0x10c   :  { %v220_v23 = vmul.f32 %v218_v20, %v198_v21 }
 0x10e   :  { %4498 = vtanh.f32 %v220_v23  ;;  %224 = vst.msk [vmem:[#allocation4] sm:$0xff] %vm223_vm6, %v220_v23 }
 0x114   :  { %v4499_v31 = vpop.eup %4498 }
 0x115   :  { %v222_v33 = vmul.f32 %v4499_v31, %v213_v32  ;;  %v596_v26 = vld [vmem:[#allocation4] sm:$0xff] }
 0x117   :  { %v227_v34 = vpack.c.bf16 %v222_v33, %v222_v33 }
 0x119   :  { %229 = vst.msk [vmem:[#allocation3] sm:$0xf] %vm228_vm11, %v227_v34 }
 0x120   :  { %v230_v29 = vld [vmem:[#allocation3] sm:$0xf] }
 0x121   :  { %431 = vmatmul.bf16.vlgmr.msra.gmra.mxu2 %v230_v29  ;;  %444 = vmatmul.bf16.vlgmr.msra.gmra.mxu3 %v230_v29 }
 0x131   :  { %457 = vmatmul.bf16.vlgmr.msrb.gmra.mxu2 %v230_v29  ;;  %470 = vmatmul.bf16.vlgmr.msrb.gmra.mxu3 %v230_v29 }
 0x1a4   :  { %v432_v38 = vpop.f32.mrf.mxu2  ;;  %v445_v40 = vpop.f32.mrf.mxu3 }
 0x1a5   :  { %v5001_v41 = vadd.f32 %v445_v40, %v136_v37  ;;  %v555_v55 = vadd.f32 %v432_v38, %v107_v54  ;;  %v3497_v54 = vld [vmem:[%s6684_s3 + $0xf0] sm:$0xf0] }
 0x1a7   :  { %4500 = vtanh.f32 %v5001_v41  ;;  %v3379_v56 = vmul.f32 -1.442695, %v555_v55  ;;  %v3503_v55 = vld [vmem:[%s6684_s3 + $0xe8] sm:$0xf] }
 0x1ac   :  { %v434_v42 = vpop.f32.mrf.mxu2  ;;  %v447_v43 = vpop.f32.mrf.mxu3 }
 0x1ad   :  { %v4501_v44 = vpop.eup %4500 }
 0x1ae   :  { %603 = vrot.lane.b32.xlu1 %v4501_v44, %s4681_s23 }
 0x1b4   :  { %v458_v47 = vpop.f32.mrf.mxu2  ;;  %v471_v48 = vpop.f32.mrf.mxu3 }
 0x1b5   :  { %v5011_v49 = vadd.f32 %v471_v48, %v5008_v46  ;;  %v475_v59 = vadd.f32 %v458_v47, %v5016_v57  ;;  %v30_v47 = vld [vmem:[%s6683_s0 + $0x18] sm:$0xff] }
 0x1b7   :  { %4502 = vtanh.f32 %v5011_v49  ;;  %v3377_v61 = vmul.f32 -1.442695, %v475_v59  ;;  %v3378_v36 = vmul.f32 -1.442695, %v5011_v49  ;;  %v36_v49 = vpack.c.bf16 %v30_v47, %v29_v45  ;;  %v4307_v59 = vld [vmem:[%s6684_s3 + $0xf4] sm:$0xf0] }
 0x1b8   :  { %4504 = vpow2.f32 %v3379_v56  ;;  %v4289_v56 = vld [vmem:[%s6684_s3 + $0x6c] sm:$0xf] }
 0x1b9   :  { %3240 = vmatmul.msk.bf16.gmra.mxu0 %vm75_vm1, %v36_v49  ;;  %3244 = vmatmul.msk.bf16.gmra.mxu1 %vm75_vm1, %v36_v49  ;;  %v4290_v49 = vld [vmem:[%s6684_s3 + $0x6c] sm:$0xf0] }
 0x1bc   :  { %v460_v50 = vpop.f32.mrf.mxu2  ;;  %v473_v51 = vpop.f32.mrf.mxu3 }
 0x1bd   :  { %v4503_v52 = vpop.eup %4502  ;;  %v3495_v50 = vld [vmem:[%s6684_s3 + $0xe0] sm:$0xf]  ;;  %v4306_v51 = vld [vmem:[%s6684_s3 + $0xec] sm:$0xf0] }
 0x1be   :  { %523 = vrot.lane.b32.xlu0 %v4503_v52, %s4681_s23  ;;  %v4505_v58 = vpop.eup %4504  ;;  %v3496_v52 = vor.u32 %v4306_v51, %v3495_v50 }
 0x1bf   :  { %v563_v60 = vadd.f32 1.0, %v4505_v58  ;;  %v3500_v58 = vor.u32 %v4304_v53, %v3497_v54 }
 0x1c0   :  { %818 = vmatpush.bf16.msrb.mxu0 %v3496_v52 }
 0x1c1   :  { %4506 = vrcp.f32 %v563_v60  ;;  %v576_v8 = vand.u32 2147483648, %v563_v60  ;;  %vm570_vm13 = vweird.f32 %v563_v60  ;;  %v574_v10 = vand.u32 2147483647, %v563_v60  ;;  %831 = vmatpush.bf16.msrb.mxu1 %v3500_v58  ;;  %v3441_v58 = vld [vmem:[%s6684_s3 + $0x78] sm:$0xf0] }
 0x1c2   :  { %4508 = vpow2.f32 %v3377_v61  ;;  %v3505_v61 = vld [vmem:[%s6684_s3 + $0xf8] sm:$0xf0] }
 0x1c3   :  { %v577_v13 = vor.u32 1.1754944e-38, %v576_v8  ;;  %vm575_vm15 = vcmp.eq.f32.partialorder %v574_v10, 8.507059e+37  ;;  %v4303_v8 = vld [vmem:[%s6684_s3 + $0xd4] sm:$0xf0] }
 0x1c7   :  { %v4507_v62 = vpop.eup %4506 }
 0x1c8   :  { %v4509_v63 = vpop.eup %4508  ;;  %v566_v1 = vmul.f32 %v4507_v62, %v563_v60  ;;  %vm571_vm12 = vweird.f32 %v4507_v62  ;;  %v4305_v60 = vld [vmem:[%s6684_s3 + $0xec] sm:$0xf] }
 0x1c9   :  { %v483_v2 = vadd.f32 1.0, %v4509_v63  ;;  %vm572_vm14 = vmor %vm570_vm13, %vm571_vm12  ;;  %v3504_v63 = vor.u32 %v4307_v59, %v3503_v55  ;;  %v4291_v55 = vld [vmem:[%s6684_s3 + $0x74] sm:$0xf0] }
 0x1ca   :  { %v567_v3 = vsub.f32 1.0, %v566_v1  ;;  %v3508_v1 = vor.u32 %v4305_v60, %v3505_v61 }
 0x1cb   :  { %4510 = vrcp.f32 %v483_v2  ;;  %v496_v19 = vand.u32 2147483648, %v483_v2  ;;  %vm490_vm2 = vweird.f32 %v483_v2  ;;  %v494_v20 = vand.u32 2147483647, %v483_v2  ;;  %844 = vmatpush.bf16.msra.mxu2 %v3504_v63  ;;  %v4286_v63 = vld [vmem:[%s6684_s3 + $0x4c] sm:$0xf0] }
 0x1cc   :  { %v568_v4 = vmul.f32 %v4507_v62, %v567_v3  ;;  %v4302_v3 = vld [vmem:[%s6684_s3 + $0xcc] sm:$0xf0]  ;;  %857 = vmatpush.bf16.msra.mxu3 %v3508_v1 }
 0x1cd   :  { %v497_v22 = vor.u32 1.1754944e-38, %v496_v19  ;;  %vm495_vm4 = vcmp.eq.f32.partialorder %v494_v20, 8.507059e+37  ;;  %v3471_v20 = vld [vmem:[%s6684_s3 + $0xa8] sm:$0xf] }
 0x1ce   :  { %v569_v6 = vadd.f32 %v4507_v62, %v568_v4  ;;  %v4300_v4 = vld [vmem:[%s6684_s3 + $0xc4] sm:$0xf] }
 0x1d0   :  { %v573_v12 = vsel %vm572_vm14, %v4507_v62, %v569_v6  ;;  %v3481_v6 = vld [vmem:[%s6684_s3 + $0xd0] sm:$0xf0]  ;;  %vm548_vm14 = vcmask 1043968  }
 0x1d1   :  { %v4511_v7 = vpop.eup %4510  ;;  %v578_v15 = vsel %vm575_vm15, %v577_v13, %v573_v12  ;;  %v3484_v10 = vor.u32 %v4300_v4, %v3481_v6  ;;  %v4301_v12 = vld [vmem:[%s6684_s3 + $0xcc] sm:$0xf]  ;;  %v3489_v13 = vld [vmem:[%s6684_s3 + $0xd8] sm:$0xf0]  ;;  %v4284_v4 = vld [vmem:[%s6684_s3 + $0x44] sm:$0xf] }
 0x1d2   :  { %v486_v11 = vmul.f32 %v4511_v7, %v483_v2  ;;  %vm491_vm0 = vweird.f32 %v4511_v7  ;;  %v3479_v2 = vld [vmem:[%s6684_s3 + $0xc0] sm:$0xf]  ;;  %v3423_v6 = vld [vmem:[%s6684_s3 + $0x48] sm:$0xf] }
 0x1d3   :  { %vm492_vm3 = vmor %vm490_vm2, %vm491_vm0  ;;  %832 = vmatpush.bf16.msrb.mxu1 %v3484_v10  ;;  %v3425_v10 = vld [vmem:[%s6684_s3 + $0x58] sm:$0xf0] }
 0x1d4   :  { %v487_v9 = vsub.f32 1.0, %v486_v11 }
 0x1d6   :  { %v488_v17 = vmul.f32 %v4511_v7, %v487_v9  ;;  %v4298_v9 = vld [vmem:[%s6684_s3 + $0xac] sm:$0xf0] }
 0x1d8   :  { %v489_v18 = vadd.f32 %v4511_v7, %v488_v17  ;;  %v3465_v17 = vld [vmem:[%s6684_s3 + $0xb0] sm:$0xf0] }
 0x1da   :  { %v493_v21 = vsel %vm492_vm3, %v4511_v7, %v489_v18  ;;  %v3487_v7 = vld [vmem:[%s6684_s3 + $0xc8] sm:$0xf] }
 0x1db   :  { %v498_v23 = vsel %vm495_vm4, %v497_v22, %v493_v21  ;;  %v3488_v11 = vor.u32 %v4303_v8, %v3487_v7  ;;  %v4299_v21 = vld [vmem:[%s6684_s3 + $0xb4] sm:$0xf0]  ;;  %v4297_v22 = vld [vmem:[%s6684_s3 + $0xac] sm:$0xf] }
 0x1dc   :  { %v521_v27 = vmul.f32 %v519_v5, %v498_v23  ;;  %v3480_v5 = vor.u32 %v4302_v3, %v3479_v2  ;;  %v3444_v3 = vor.u32 %v4289_v56, %v3441_v58  ;;  %v4287_v7 = vld [vmem:[%s6684_s3 + $0x54] sm:$0xf0]  ;;  %v4285_v8 = vld [vmem:[%s6684_s3 + $0x4c] sm:$0xf] }
 0x1dd   :  { %845 = vmatpush.bf16.msra.mxu2 %v3488_v11 }
 0x1de   :  { %819 = vmatpush.bf16.msrb.mxu0 %v3480_v5  ;;  %v3417_v5 = vld [vmem:[%s6684_s3 + $0x50] sm:$0xf0] }
 0x220   :  { %v604_v14 = vpop.permute.xlu1 %603 }
 0x221   :  { %v606_v16 = vmul.f32 %v604_v14, %v578_v15  ;;  %v3463_v14 = vld [vmem:[%s6684_s3 + $0xa0] sm:$0xf] }
 0x222   :  { %v3464_v19 = vor.u32 %v4298_v9, %v3463_v14  ;;  %v3428_v14 = vor.u32 %v4285_v8, %v3425_v10  ;;  %v33_v9 = vld [vmem:[%s6683_s0 + $0x30] sm:$0xff] }
 0x223   :  { %608 = vrot.lane.b32.xlu0 %v606_v16, %s4681_s23  ;;  %v4296_v16 = vld [vmem:[%s6684_s3 + $0xa4] sm:$0xf] }
 0x224   :  { %820 = vmatpush.bf16.msrb.mxu0 %v3464_v19  ;;  %v3380_v19 = vmul.f32 -1.442695, %v5001_v41  ;;  %v3401_v41 = vld [vmem:[%s6684_s3 + $0x30] sm:$0xf0] }
 0x230   :  { %v524_v24 = vpop.permute.xlu0 %523 }
 0x231   :  { %v526_v25 = vmul.f32 %v524_v24, %v498_v23  ;;  %v3468_v23 = vor.u32 %v4296_v16, %v3465_v17  ;;  %v3473_v24 = vld [vmem:[%s6684_s3 + $0xb8] sm:$0xf0] }
 0x232   :  { %v34_v16 = vld [vmem:[%s6683_s0 + $0x38] sm:$0xff] }
 0x233   :  { %528 = vrot.lane.b32.xlu2 %v526_v25, %s4681_s23  ;;  %v3447_v25 = vld [vmem:[%s6684_s3 + $0x80] sm:$0xf]  ;;  %833 = vmatpush.bf16.msrb.mxu1 %v3468_v23  ;;  %v4280_v23 = vld [vmem:[%s6684_s3 + $0x24] sm:$0xf] }
 0x23b   :  { %598 = vrot.lane.b32.xlu2 %v596_v26, %s4681_s23  ;;  %v4294_v26 = vld [vmem:[%s6684_s3 + $0x8c] sm:$0xf0] }
 0x28d   :  { %v529_v28 = vpop.permute.xlu2 %528 }
 0x28e   :  { %v531_v30 = vadd.f32 %v529_v28, %v521_v27  ;;  %v3472_v27 = vor.u32 %v4299_v21, %v3471_v20  ;;  %v3476_v28 = vor.u32 %v4297_v22, %v3473_v24  ;;  %v3399_v21 = vld [vmem:[%s6684_s3 + $0x20] sm:$0xf]  ;;  %v4282_v22 = vld [vmem:[%s6684_s3 + $0x2c] sm:$0xf0] }
 0x28f   :  { %v3400_v24 = vor.u32 %v4282_v22, %v3399_v21 }
 0x290   :  { %4512 = vtanh.f32 %v531_v30  ;;  %846 = vmatpush.bf16.msra.mxu2 %v3472_v27 }
 0x295   :  { %v599_v31 = vpop.permute.xlu2 %598  ;;  %v609_v34 = vpop.permute.xlu0 %608 }
 0x296   :  { %v4513_v32 = vpop.eup %4512  ;;  %v601_v33 = vmul.f32 %v599_v31, %v578_v15  ;;  %v3492_v15 = vor.u32 %v4301_v12, %v3489_v13  ;;  %v3449_v31 = vld [vmem:[%s6684_s3 + $0x90] sm:$0xf0]  ;;  %v3420_v12 = vor.u32 %v4284_v4, %v3417_v5  ;;  %v3424_v13 = vor.u32 %v4287_v7, %v3423_v6  ;;  %v138_v4 = vpop.f32.mrf.mxu1 }
 0x297   :  { %534 = vrot.lane.b32.xlu1 %v4513_v32, %s4681_s23  ;;  %v3455_v32 = vld [vmem:[%s6684_s3 + $0x88] sm:$0xf] }
 0x298   :  { %v5023_v35 = vadd.f32 %v609_v34, %v601_v33  ;;  %858 = vmatpush.bf16.msra.mxu3 %v3492_v15  ;;  %v4295_v33 = vld [vmem:[%s6684_s3 + $0x94] sm:$0xf0]  ;;  %v4293_v34 = vld [vmem:[%s6684_s3 + $0x8c] sm:$0xf] }
 0x299   :  { %v3456_v50 = vor.u32 %v4295_v33, %v3455_v32  ;;  %v3409_v32 = vld [vmem:[%s6684_s3 + $0x38] sm:$0xf0] }
 0x29a   :  { %4514 = vtanh.f32 %v5023_v35 }
 0x29b   :  { %4516 = vpow2.f32 %v3378_v36  ;;  %847 = vmatpush.bf16.msra.mxu2 %v3456_v50  ;;  %v4277_v50 = vld [vmem:[%s6684_s3 + $0xc] sm:$0xf] }
 0x29c   :  { %859 = vmatpush.bf16.msra.mxu3 %v3476_v28  ;;  %v3404_v28 = vor.u32 %v4280_v23, %v3401_v41  ;;  %v139_v23 = vadd.f32 %v138_v4, %v4797_v39 }
 0x29e   :  { %v5281_v6 = vpop.f32.mrf.mxu1 }
 0x29f   :  { %539 = vrot.lane.b32.xlu1 %v531_v30, %s4681_s23  ;;  %v4292_v30 = vld [vmem:[%s6684_s3 + $0x84] sm:$0xf] }
 0x2a0   :  { %v4515_v29 = vpop.eup %4514  ;;  %v3452_v47 = vor.u32 %v4292_v30, %v3449_v31  ;;  %v4281_v31 = vld [vmem:[%s6684_s3 + $0x2c] sm:$0xf] }
 0x2a1   :  { %614 = vrot.lane.b32.xlu2 %v4515_v29, %s4681_s23  ;;  %v4517_v37 = vpop.eup %4516  ;;  %v3457_v29 = vld [vmem:[%s6684_s3 + $0x98] sm:$0xf0]  ;;  %v3412_v33 = vor.u32 %v4281_v31, %v3409_v32 }
 0x2a2   :  { %v5029_v38 = vadd.f32 1.0, %v4517_v37  ;;  %v31_v37 = vld [vmem:[%s6683_s0 + $0x20] sm:$0xff]  ;;  %v3460_v51 = vor.u32 %v4293_v34, %v3457_v29  ;;  %834 = vmatpush.bf16.msrb.mxu1 %v3452_v47  ;;  %v4278_v29 = vld [vmem:[%s6684_s3 + $0xc] sm:$0xf0]  ;;  %v4279_v47 = vld [vmem:[%s6684_s3 + $0x14] sm:$0xf0] }
 0x2a3   :  { %v3383_v34 = vld [vmem:[%s6684_s3] sm:$0xf] }
 0x2a4   :  { %4518 = vrcp.f32 %v5029_v38  ;;  %v509_v44 = vand.u32 2147483647, %v5029_v38  ;;  %v511_v48 = vand.u32 2147483648, %v5029_v38  ;;  %vm505_vm7 = vweird.f32 %v5029_v38  ;;  %860 = vmatpush.bf16.msra.mxu3 %v3460_v51  ;;  %v3393_v51 = vld [vmem:[%s6684_s3 + $0x18] sm:$0xf0] }
 0x2a5   :  { %4520 = vpow2.f32 %v3380_v19 }
 0x2a6   :  { %vm510_vm9 = vcmp.eq.f32.partialorder %v509_v44, 8.507059e+37  ;;  %v512_v45 = vor.u32 1.1754944e-38, %v511_v48  ;;  %v4288_v44 = vld [vmem:[%s6684_s3 + $0x64] sm:$0xf]  ;;  %v3439_v48 = vld [vmem:[%s6684_s3 + $0x68] sm:$0xf] }
 0x2a7   :  { %v3440_v2 = vor.u32 %v4291_v55, %v3439_v48 }
 0x2a8   :  { %861 = vmatpush.bf16.msra.mxu3 %v3444_v3  ;;  %v109_v3 = vpop.f32.mrf.mxu0 }
 0x2a9   :  { %848 = vmatpush.bf16.msra.mxu2 %v3440_v2 }
 0x2aa   :  { %v5032_v40 = vpop.eup %4518 }
 0x2ab   :  { %v501_v42 = vmul.f32 %v5032_v40, %v5029_v38  ;;  %vm506_vm5 = vweird.f32 %v5032_v40  ;;  %v3433_v38 = vld [vmem:[%s6684_s3 + $0x70] sm:$0xf0] }
 0x2ac   :  { %vm5061_vm8 = vmor %vm505_vm7, %vm506_vm5  ;;  %v3436_v61 = vor.u32 %v4288_v44, %v3433_v38  ;;  %862 = vmatpush.bf16.msra.mxu3 %v3428_v14  ;;  %v3396_v44 = vor.u32 %v4277_v50, %v3393_v51 }
 0x2ad   :  { %v502_v43 = vsub.f32 1.0, %v501_v42  ;;  %v32_v42 = vld [vmem:[%s6683_s0 + $0x28] sm:$0xff]  ;;  %849 = vmatpush.bf16.msra.mxu2 %v3424_v13 }
 0x2ae   :  { %v37_v54 = vpack.c.bf16 %v32_v42, %v31_v37  ;;  %835 = vmatpush.bf16.msrb.mxu1 %v3436_v61  ;;  %v3384_v42 = vor.u32 %v4278_v29, %v3383_v34 }
 0x2af   :  { %v503_v62 = vmul.f32 %v5032_v40, %v502_v43  ;;  %v3448_v43 = vor.u32 %v4294_v26, %v3447_v25  ;;  %v3407_v25 = vld [vmem:[%s6684_s3 + $0x28] sm:$0xf]  ;;  %v4283_v26 = vld [vmem:[%s6684_s3 + $0x34] sm:$0xf0] }
 0x2b0   :  { %3241 = vmatmul.msk.bf16.gmra.mxu0 %vm75_vm1, %v37_v54  ;;  %3245 = vmatmul.msk.bf16.gmra.mxu1 %vm75_vm1, %v37_v54  ;;  %v3408_v30 = vor.u32 %v4283_v26, %v3407_v25  ;;  %v5279_v5 = vpop.f32.mrf.mxu0 }
 0x2b1   :  { %v504_v18 = vadd.f32 %v5032_v40, %v503_v62  ;;  %821 = vmatpush.bf16.msrb.mxu0 %v3448_v43  ;;  %v3415_v62 = vld [vmem:[%s6684_s3 + $0x40] sm:$0xf]  ;;  %863 = vmatpush.bf16.msra.mxu3 %v3412_v33  ;;  %v3385_v43 = vld [vmem:[%s6684_s3 + $0x10] sm:$0xf0] }
 0x2b2   :  { %v3416_v11 = vor.u32 %v4286_v63, %v3415_v62  ;;  %836 = vmatpush.bf16.msrb.mxu1 %v3420_v12  ;;  %850 = vmatpush.bf16.msra.mxu2 %v3408_v30 }
 0x2b3   :  { %v508_v36 = vsel %vm5061_vm8, %v5032_v40, %v504_v18  ;;  %v3431_v40 = vld [vmem:[%s6684_s3 + $0x60] sm:$0xf]  ;;  %v38_v18 = vpack.c.bf16 %v34_v16, %v33_v9  ;;  %v110_v9 = vadd.f32 %v109_v3, %v4837_v0 }
 0x2b4   :  { %v513_v52 = vsel %vm510_vm9, %v512_v45, %v508_v36  ;;  %v3432_v60 = vor.u32 %v4290_v49, %v3431_v40  ;;  %v4276_v36 = vld [vmem:[%s6684_s3 + $0x4] sm:$0xf]  ;;  %v3391_v45 = vld [vmem:[%s6684_s3 + $0x8] sm:$0xf] }
 0x2b5   :  { %v3388_v40 = vor.u32 %v4276_v36, %v3385_v43  ;;  %v3392_v49 = vor.u32 %v4279_v47, %v3391_v45  ;;  %864 = vmatpush.bf16.msra.mxu3 %v3396_v44 }
 0x2b6   :  { %822 = vmatpush.bf16.msrb.mxu0 %v3432_v60  ;;  %837 = vmatpush.bf16.msrb.mxu1 %v3404_v28 }
 0x2b7   :  { %851 = vmatpush.bf16.msra.mxu2 %v3392_v49 }
 0x2ba   :  { %823 = vmatpush.bf16.msrb.mxu0 %v3416_v11  ;;  %838 = vmatpush.bf16.msrb.mxu1 %v3388_v40 }
 0x2be   :  { %824 = vmatpush.bf16.msrb.mxu0 %v3400_v24 }
 0x2c0   :  { %3242 = vmatmul.msk.bf16.gmra.mxu0 %vm75_vm1, %v38_v18  ;;  %3246 = vmatmul.msk.bf16.gmra.mxu1 %vm75_vm1, %v38_v18 }
 0x2c2   :  { %825 = vmatpush.bf16.msrb.mxu0 %v3384_v42 }
 0x2fb   :  { %v615_v58 = vpop.permute.xlu2 %614 }
 0x309   :  { %v535_v53 = vpop.permute.xlu1 %534 }
 0x30a   :  { %v537_v59 = vmul.f32 %v535_v53, %v513_v52 }
 0x30c   :  { %v543_v1 = vpack.c.bf16 %v537_v59, %v537_v59 }
 0x30e   :  { %545 = vrot.lane.b32.xlu0 %v543_v1, %s4681_s23 }
 0x311   :  { %v540_v15 = vpop.permute.xlu1 %539 }
 0x312   :  { %542 = vst.msk [vmem:[#allocation5] sm:$0xff] %vm223_vm6, %v540_v15 }
 0x316   :  { %619 = vrot.lane.b32.xlu0 %v5023_v35, %s4681_s23  ;;  %v4521_v35 = vpop.eup %4520 }
 0x317   :  { %v564_v20 = vadd.f32 1.0, %v4521_v35 }
 0x319   :  { %v911_v17 = vld [vmem:[#allocation5] sm:$0xff]  ;;  %4522 = vrcp.f32 %v564_v20  ;;  %v591_v53 = vand.u32 2147483648, %v564_v20  ;;  %vm585_vm10 = vweird.f32 %v564_v20  ;;  %v589_v54 = vand.u32 2147483647, %v564_v20 }
 0x31a   :  { %913 = vrot.lane.b32.xlu1 %v911_v17, %s4681_s23 }
 0x31b   :  { %v592_v56 = vor.u32 1.1754944e-38, %v591_v53  ;;  %vm590_vm13 = vcmp.eq.f32.partialorder %v589_v54, 8.507059e+37 }
 0x31f   :  { %v4523_v27 = vpop.eup %4522 }
 0x320   :  { %v581_v37 = vmul.f32 %v4523_v27, %v564_v20  ;;  %vm586_vm1 = vweird.f32 %v4523_v27 }
 0x321   :  { %vm587_vm12 = vmor %vm585_vm10, %vm586_vm1 }
 0x322   :  { %v582_v38 = vsub.f32 1.0, %v581_v37 }
 0x324   :  { %v583_v48 = vmul.f32 %v4523_v27, %v582_v38 }
 0x326   :  { %v584_v52 = vadd.f32 %v4523_v27, %v583_v48 }
 0x328   :  { %v588_v55 = vsel %vm587_vm12, %v4523_v27, %v584_v52 }
 0x329   :  { %v593_v59 = vsel %vm590_vm13, %v592_v56, %v588_v55 }
 0x32a   :  { %v617_v60 = vmul.f32 %v615_v58, %v593_v59 }
 0x32c   :  { %v623_v61 = vpack.c.bf16 %v617_v60, %v617_v60 }
 0x32d   :  { %v5283_v7 = vpop.f32.mrf.mxu0  ;;  %v5285_v8 = vpop.f32.mrf.mxu1 }
 0x335   :  { %v5287_v10 = vpop.f32.mrf.mxu0  ;;  %v5289_v11 = vpop.f32.mrf.mxu1 }
 0x33d   :  { %v5291_v12 = vpop.f32.mrf.mxu0  ;;  %v5293_v13 = vpop.f32.mrf.mxu1 }
 0x345   :  { %v5295_v14 = vpop.f32.mrf.mxu0  ;;  %v5297_v15 = vpop.f32.mrf.mxu1 }
 0x380   :  { %v546_v62 = vpop.permute.xlu0 %545 }
 0x381   :  { %549 = vst.msk [vmem:[#allocation3] sm:$0xf] %vm548_vm14, %v546_v62 }
 0x382   :  { %624 = vst.msk [vmem:[#allocation3] sm:$0xf] %vm228_vm11, %v623_v61 }
 0x388   :  { %v620_v63 = vpop.permute.xlu0 %619 }
 0x389   :  { %v625_v1 = vld [vmem:[#allocation3] sm:$0xf]  ;;  %622 = vst.msk [vmem:[#allocation4] sm:$0xff] %vm223_vm6, %v620_v63 }
 0x38a   :  { %826 = vmatmul.bf16.vlgmr.msrb.gmra.mxu0 %v625_v1  ;;  %839 = vmatmul.bf16.vlgmr.msrb.gmra.mxu1 %v625_v1 }
 0x38b   :  { %852 = vmatmul.bf16.vlgmr.msra.gmra.mxu2 %v625_v1  ;;  %865 = vmatmul.bf16.vlgmr.msra.gmra.mxu3 %v625_v1 }
 0x38c   :  { %v914_v1 = vpop.permute.xlu1 %913 }
 0x390   :  { %v990_v2 = vld [vmem:[#allocation4] sm:$0xff] }
 0x391   :  { %992 = vrot.lane.b32.xlu1 %v990_v2, %s4681_s23 }
 0x403   :  { %v993_v2 = vpop.permute.xlu1 %992 }
 0x407   :  { %v827_v16 = vpop.f32.mrf.mxu0  ;;  %v840_v17 = vpop.f32.mrf.mxu1 }
 0x408   :  { %v949_v18 = vadd.f32 %v827_v16, %v110_v9  ;;  %v5305_v24 = vadd.f32 %v840_v17, %v139_v23 }
 0x40a   :  { %v3511_v31 = vmul.f32 -1.442695, %v949_v18 }
 0x40e   :  { %v853_v19 = vpop.f32.mrf.mxu2  ;;  %v866_v35 = vpop.f32.mrf.mxu3 }
 0x40f   :  { %v5301_v20 = vadd.f32 %v866_v35, %v5008_v46  ;;  %v829_v21 = vpop.f32.mrf.mxu0  ;;  %v842_v22 = vpop.f32.mrf.mxu1  ;;  %v870_v28 = vadd.f32 %v853_v19, %v5016_v57 }
 0x411   :  { %4524 = vtanh.f32 %v5301_v20  ;;  %v3509_v30 = vmul.f32 -1.442695, %v870_v28  ;;  %v3510_v21 = vmul.f32 -1.442695, %v5301_v20  ;;  %v3627_v20 = vld [vmem:[%s6684_s3 + $0xe0] sm:$0xf] }
 0x412   :  { %4526 = vtanh.f32 %v5305_v24 }
 0x413   :  { %4528 = vpow2.f32 %v3509_v30  ;;  %v4338_v30 = vld [vmem:[%s6684_s3 + $0xec] sm:$0xf0] }
 0x414   :  { %4530 = vpow2.f32 %v3511_v31  ;;  %v4336_v31 = vld [vmem:[%s6684_s3 + $0xe4] sm:$0xf] }
 0x416   :  { %v855_v41 = vpop.f32.mrf.mxu2  ;;  %v868_v25 = vpop.f32.mrf.mxu3 }
 0x417   :  { %v4525_v26 = vpop.eup %4524 }
 0x418   :  { %918 = vrot.lane.b32.xlu2 %v4525_v26, %s4681_s23  ;;  %v4527_v27 = vpop.eup %4526 }
 0x419   :  { %v4529_v32 = vpop.eup %4528 }
 0x41a   :  { %v878_v33 = vadd.f32 1.0, %v4529_v32  ;;  %v4531_v34 = vpop.eup %4530  ;;  %v3628_v32 = vor.u32 %v4338_v30, %v3627_v20  ;;  %v4325_v20 = vld [vmem:[%s6684_s3 + $0x8c] sm:$0xf]  ;;  %v3589_v30 = vld [vmem:[%s6684_s3 + $0x98] sm:$0xf0] }
 0x41b   :  { %v957_v29 = vadd.f32 1.0, %v4531_v34  ;;  %v3635_v34 = vld [vmem:[%s6684_s3 + $0xe8] sm:$0xf] }
 0x41c   :  { %4532 = vrcp.f32 %v878_v33  ;;  %v891_v50 = vand.u32 2147483648, %v878_v33  ;;  %vm885_vm0 = vweird.f32 %v878_v33  ;;  %v889_v51 = vand.u32 2147483647, %v878_v33  ;;  %1212 = vmatpush.bf16.msra.mxu0 %v3628_v32  ;;  %v4313_v32 = vld [vmem:[%s6684_s3 + $0x2c] sm:$0xf] }
 0x41d   :  { %4534 = vrcp.f32 %v957_v29  ;;  %v970_v56 = vand.u32 2147483648, %v957_v29  ;;  %vm964_vm5 = vweird.f32 %v957_v29  ;;  %v968_v58 = vand.u32 2147483647, %v957_v29 }
 0x41e   :  { %v892_v48 = vor.u32 1.1754944e-38, %v891_v50  ;;  %vm890_vm3 = vcmp.eq.f32.partialorder %v889_v51, 8.507059e+37  ;;  %v3613_v50 = vld [vmem:[%s6684_s3 + $0xd0] sm:$0xf0] }
 0x41f   :  { %v971_v60 = vor.u32 1.1754944e-38, %v970_v56  ;;  %vm969_vm8 = vcmp.eq.f32.partialorder %v968_v58, 8.507059e+37  ;;  %v3595_v56 = vld [vmem:[%s6684_s3 + $0xa0] sm:$0xf]  ;;  %v4330_v58 = vld [vmem:[%s6684_s3 + $0xac] sm:$0xf0] }
 0x420   :  { %997 = vrot.lane.b32.xlu2 %v4527_v27, %s4681_s23 }
 0x422   :  { %v4533_v36 = vpop.eup %4532 }
 0x423   :  { %v881_v37 = vmul.f32 %v4533_v36, %v878_v33  ;;  %v4535_v43 = vpop.eup %4534  ;;  %vm886_vm15 = vweird.f32 %v4533_v36  ;;  %v3629_v33 = vld [vmem:[%s6684_s3 + $0xf0] sm:$0xf0] }
 0x424   :  { %v960_v47 = vmul.f32 %v4535_v43, %v957_v29  ;;  %vm887_vm2 = vmor %vm885_vm0, %vm886_vm15  ;;  %vm965_vm4 = vweird.f32 %v4535_v43  ;;  %v4339_v29 = vld [vmem:[%s6684_s3 + $0xf4] sm:$0xf0] }
 0x425   :  { %v882_v42 = vsub.f32 1.0, %v881_v37  ;;  %vm966_vm7 = vmor %vm964_vm5, %vm965_vm4  ;;  %v3636_v37 = vor.u32 %v4339_v29, %v3635_v34 }
 0x426   :  { %v961_v49 = vsub.f32 1.0, %v960_v47 }
 0x427   :  { %v883_v45 = vmul.f32 %v4533_v36, %v882_v42  ;;  %v4337_v42 = vld [vmem:[%s6684_s3 + $0xec] sm:$0xf]  ;;  %1238 = vmatpush.bf16.msrb.mxu2 %v3636_v37 }
 0x428   :  { %v962_v38 = vmul.f32 %v4535_v43, %v961_v49  ;;  %v4332_v49 = vld [vmem:[%s6684_s3 + $0xc4] sm:$0xf] }
 0x429   :  { %v884_v40 = vadd.f32 %v4533_v36, %v883_v45  ;;  %v3611_v45 = vld [vmem:[%s6684_s3 + $0xc0] sm:$0xf] }
 0x42a   :  { %v963_v55 = vadd.f32 %v4535_v43, %v962_v38  ;;  %v3616_v38 = vor.u32 %v4332_v49, %v3613_v50 }
 0x42b   :  { %v888_v44 = vsel %vm887_vm2, %v4533_v36, %v884_v40  ;;  %v3632_v36 = vor.u32 %v4336_v31, %v3629_v33  ;;  %v4334_v40 = vld [vmem:[%s6684_s3 + $0xcc] sm:$0xf0] }
 0x42c   :  { %v893_v53 = vsel %vm890_vm3, %v892_v48, %v888_v44  ;;  %v967_v59 = vsel %vm966_vm7, %v4535_v43, %v963_v55  ;;  %v3637_v43 = vld [vmem:[%s6684_s3 + $0xf8] sm:$0xf0]  ;;  %v3612_v44 = vor.u32 %v4334_v40, %v3611_v45  ;;  %v3619_v48 = vld [vmem:[%s6684_s3 + $0xc8] sm:$0xf]  ;;  %v4323_v45 = vld [vmem:[%s6684_s3 + $0x74] sm:$0xf0] }
 0x42d   :  { %v972_v62 = vsel %vm969_vm8, %v971_v60, %v967_v59  ;;  %v916_v17 = vmul.f32 %v914_v1, %v893_v53  ;;  %v3640_v47 = vor.u32 %v4337_v42, %v3637_v43  ;;  %1225 = vmatpush.bf16.msra.mxu1 %v3632_v36  ;;  %v3621_v55 = vld [vmem:[%s6684_s3 + $0xd8] sm:$0xf0]  ;;  %v4328_v60 = vld [vmem:[%s6684_s3 + $0xa4] sm:$0xf]  ;;  %v4331_v1 = vld [vmem:[%s6684_s3 + $0xb4] sm:$0xf0]  ;;  %v3592_v43 = vor.u32 %v4325_v20, %v3589_v30 }
 0x42e   :  { %v995_v3 = vmul.f32 %v993_v2, %v972_v62  ;;  %1213 = vmatpush.bf16.msra.mxu0 %v3612_v44  ;;  %v4329_v2 = vld [vmem:[%s6684_s3 + $0xac] sm:$0xf]  ;;  %v4322_v42 = vld [vmem:[%s6684_s3 + $0x6c] sm:$0xf0]  ;;  %v3573_v40 = vld [vmem:[%s6684_s3 + $0x78] sm:$0xf0] }
 0x42f   :  { %1251 = vmatpush.bf16.msrb.mxu3 %v3640_v47  ;;  %v4321_v47 = vld [vmem:[%s6684_s3 + $0x6c] sm:$0xf] }
 0x431   :  { %1226 = vmatpush.bf16.msra.mxu1 %v3616_v38 }
 0x472   :  { %v919_v52 = vpop.permute.xlu2 %918 }
 0x473   :  { %v921_v54 = vmul.f32 %v919_v52, %v893_v53  ;;  %v4335_v52 = vld [vmem:[%s6684_s3 + $0xd4] sm:$0xf0]  ;;  %v4333_v53 = vld [vmem:[%s6684_s3 + $0xcc] sm:$0xf] }
 0x474   :  { %v3624_v59 = vor.u32 %v4333_v53, %v3621_v55  ;;  %v4316_v55 = vld [vmem:[%s6684_s3 + $0x44] sm:$0xf] }
 0x475   :  { %923 = vrot.lane.b32.xlu0 %v921_v54, %s4681_s23  ;;  %v3620_v54 = vor.u32 %v4335_v52, %v3619_v48  ;;  %v3547_v48 = vld [vmem:[%s6684_s3 + $0x40] sm:$0xf]  ;;  %v4318_v52 = vld [vmem:[%s6684_s3 + $0x4c] sm:$0xf0] }
 0x476   :  { %1252 = vmatpush.bf16.msrb.mxu3 %v3624_v59 }
 0x477   :  { %1239 = vmatpush.bf16.msrb.mxu2 %v3620_v54  ;;  %v3576_v54 = vor.u32 %v4321_v47, %v3573_v40  ;;  %v4309_v47 = vld [vmem:[%s6684_s3 + $0xc] sm:$0xf]  ;;  %v3525_v40 = vld [vmem:[%s6684_s3 + $0x18] sm:$0xf0] }
 0x47a   :  { %v998_v61 = vpop.permute.xlu2 %997 }
 0x47b   :  { %v1000_v63 = vmul.f32 %v998_v61, %v972_v62  ;;  %v3597_v61 = vld [vmem:[%s6684_s3 + $0xb0] sm:$0xf0]  ;;  %v3603_v62 = vld [vmem:[%s6684_s3 + $0xa8] sm:$0xf] }
 0x47d   :  { %1002 = vrot.lane.b32.xlu2 %v1000_v63, %s4681_s23  ;;  %v3596_v63 = vor.u32 %v4330_v58, %v3595_v56  ;;  %v3549_v56 = vld [vmem:[%s6684_s3 + $0x50] sm:$0xf0]  ;;  %v3555_v58 = vld [vmem:[%s6684_s3 + $0x48] sm:$0xf] }
 0x47f   :  { %1214 = vmatpush.bf16.msra.mxu0 %v3596_v63  ;;  %v3548_v63 = vor.u32 %v4318_v52, %v3547_v48 }
 0x4d7   :  { %v1003_v4 = vpop.permute.xlu2 %1002 }
 0x4d8   :  { %v5313_v9 = vadd.f32 %v1003_v4, %v995_v3  ;;  %v3605_v3 = vld [vmem:[%s6684_s3 + $0xb8] sm:$0xf0] }
 0x4da   :  { %4536 = vtanh.f32 %v5313_v9 }
 0x4e0   :  { %v4537_v16 = vpop.eup %4536 }
 0x4e1   :  { %1008 = vrot.lane.b32.xlu1 %v4537_v16, %s4681_s23  ;;  %v3600_v16 = vor.u32 %v4328_v60, %v3597_v61  ;;  %v4319_v60 = vld [vmem:[%s6684_s3 + $0x54] sm:$0xf0]  ;;  %v4317_v61 = vld [vmem:[%s6684_s3 + $0x4c] sm:$0xf] }
 0x4e3   :  { %1227 = vmatpush.bf16.msra.mxu1 %v3600_v16 }
 0x4e7   :  { %v924_v18 = vpop.permute.xlu0 %923 }
 0x4e8   :  { %v926_v19 = vadd.f32 %v924_v18, %v916_v17  ;;  %v3604_v17 = vor.u32 %v4331_v1, %v3603_v62  ;;  %v3579_v18 = vld [vmem:[%s6684_s3 + $0x80] sm:$0xf]  ;;  %v3557_v62 = vld [vmem:[%s6684_s3 + $0x58] sm:$0xf0]  ;;  %v3552_v1 = vor.u32 %v4316_v55, %v3549_v56 }
 0x4ea   :  { %4538 = vtanh.f32 %v926_v19  ;;  %1240 = vmatpush.bf16.msrb.mxu2 %v3604_v17  ;;  %v3512_v17 = vmul.f32 -1.442695, %v5305_v24  ;;  %v3533_v24 = vld [vmem:[%s6684_s3 + $0x30] sm:$0xf0] }
 0x4eb   :  { %4540 = vpow2.f32 %v3510_v21  ;;  %v3608_v21 = vor.u32 %v4329_v2, %v3605_v3  ;;  %v3556_v2 = vor.u32 %v4319_v60, %v3555_v58  ;;  %v3560_v3 = vor.u32 %v4317_v61, %v3557_v62 }
 0x4ed   :  { %1253 = vmatpush.bf16.msrb.mxu3 %v3608_v21  ;;  %v4314_v21 = vld [vmem:[%s6684_s3 + $0x2c] sm:$0xf0] }
 0x4f0   :  { %v4539_v35 = vpop.eup %4538 }
 0x4f1   :  { %929 = vrot.lane.b32.xlu0 %v4539_v35, %s4681_s23  ;;  %v4541_v22 = vpop.eup %4540  ;;  %v4324_v35 = vld [vmem:[%s6684_s3 + $0x84] sm:$0xf]  ;;  %1254 = vmatpush.bf16.msrb.mxu3 %v3592_v43  ;;  %v3517_v43 = vld [vmem:[%s6684_s3 + $0x10] sm:$0xf0] }
 0x4f2   :  { %v5320_v23 = vadd.f32 1.0, %v4541_v22  ;;  %v3581_v22 = vld [vmem:[%s6684_s3 + $0x90] sm:$0xf0] }
 0x4f3   :  { %v3584_v36 = vor.u32 %v4324_v35, %v3581_v22  ;;  %v3531_v35 = vld [vmem:[%s6684_s3 + $0x20] sm:$0xf] }
 0x4f4   :  { %4542 = vrcp.f32 %v5320_v23  ;;  %v904_v27 = vand.u32 2147483647, %v5320_v23  ;;  %v906_v28 = vand.u32 2147483648, %v5320_v23  ;;  %vm900_vm1 = vweird.f32 %v5320_v23 }
 0x4f5   :  { %1228 = vmatpush.bf16.msra.mxu1 %v3584_v36  ;;  %1255 = vmatpush.bf16.msrb.mxu3 %v3576_v54  ;;  %4544 = vpow2.f32 %v3512_v17  ;;  %v3532_v22 = vor.u32 %v4314_v21, %v3531_v35  ;;  %v4310_v36 = vld [vmem:[%s6684_s3 + $0xc] sm:$0xf0]  ;;  %v141_v35 = vadd.f32 %v5281_v6, %v4797_v39 }
 0x4f6   :  { %vm5435_vm12 = vcmp.eq.f32.partialorder %v904_v27, 8.507059e+37  ;;  %v907_v29 = vor.u32 1.1754944e-38, %v906_v28  ;;  %v3563_v27 = vld [vmem:[%s6684_s3 + $0x60] sm:$0xf]  ;;  %v3571_v28 = vld [vmem:[%s6684_s3 + $0x68] sm:$0xf] }
 0x4f7   :  { %v3572_v53 = vor.u32 %v4323_v45, %v3571_v28 }
 0x4f9   :  { %934 = vrot.lane.b32.xlu0 %v926_v19, %s4681_s23  ;;  %v4326_v19 = vld [vmem:[%s6684_s3 + $0x8c] sm:$0xf0]  ;;  %1256 = vmatpush.bf16.msrb.mxu3 %v3560_v3 }
 0x4fa   :  { %v5323_v41 = vpop.eup %4542  ;;  %v3580_v33 = vor.u32 %v4326_v19, %v3579_v18 }
 0x4fb   :  { %v896_v25 = vmul.f32 %v5323_v41, %v5320_v23  ;;  %vm901_vm9 = vweird.f32 %v5323_v41  ;;  %v3565_v23 = vld [vmem:[%s6684_s3 + $0x70] sm:$0xf0]  ;;  %v4545_v18 = vpop.eup %4544 }
 0x4fc   :  { %vm5431_vm10 = vmor %vm900_vm1, %vm901_vm9  ;;  %1215 = vmatpush.bf16.msra.mxu0 %v3580_v33  ;;  %v958_v19 = vadd.f32 1.0, %v4545_v18  ;;  %v3541_v33 = vld [vmem:[%s6684_s3 + $0x38] sm:$0xf0] }
 0x4fd   :  { %v897_v26 = vsub.f32 1.0, %v896_v25  ;;  %v3587_v25 = vld [vmem:[%s6684_s3 + $0x88] sm:$0xf] }
 0x4fe   :  { %4546 = vrcp.f32 %v958_v19  ;;  %vm979_vm15 = vweird.f32 %v958_v19  ;;  %v983_v48 = vand.u32 2147483647, %v958_v19 }
 0x4ff   :  { %v898_v51 = vmul.f32 %v5323_v41, %v897_v26  ;;  %v4327_v26 = vld [vmem:[%s6684_s3 + $0x94] sm:$0xf0] }
 0x500   :  { %v3588_v37 = vor.u32 %v4327_v26, %v3587_v25  ;;  %v3539_v25 = vld [vmem:[%s6684_s3 + $0x28] sm:$0xf]  ;;  %v4315_v26 = vld [vmem:[%s6684_s3 + $0x34] sm:$0xf0]  ;;  %vm984_vm2 = vcmp.eq.f32.partialorder %v983_v48, 8.507059e+37 }
 0x501   :  { %v899_v4 = vadd.f32 %v5323_v41, %v898_v51  ;;  %v3564_v51 = vor.u32 %v4322_v42, %v3563_v27  ;;  %v3540_v31 = vor.u32 %v4315_v26, %v3539_v25 }
 0x502   :  { %1241 = vmatpush.bf16.msrb.mxu2 %v3588_v37  ;;  %v4308_v37 = vld [vmem:[%s6684_s3 + $0x4] sm:$0xf] }
 0x503   :  { %v903_v34 = vsel %vm5431_vm10, %v5323_v41, %v899_v4  ;;  %v4320_v41 = vld [vmem:[%s6684_s3 + $0x64] sm:$0xf]  ;;  %1216 = vmatpush.bf16.msra.mxu0 %v3564_v51  ;;  %v3520_v28 = vor.u32 %v4308_v37, %v3517_v43 }
 0x504   :  { %v908_v49 = vsel %vm5435_vm12, %v907_v29, %v903_v34  ;;  %v3568_v38 = vor.u32 %v4320_v41, %v3565_v23  ;;  %v4547_v20 = vpop.eup %4546  ;;  %v3544_v34 = vor.u32 %v4313_v32, %v3541_v33  ;;  %v3515_v29 = vld [vmem:[%s6684_s3] sm:$0xf]  ;;  %v3523_v41 = vld [vmem:[%s6684_s3 + $0x8] sm:$0xf]  ;;  %v4311_v23 = vld [vmem:[%s6684_s3 + $0x14] sm:$0xf0] }
 0x505   :  { %v975_v27 = vmul.f32 %v4547_v20, %v958_v19  ;;  %v3516_v42 = vor.u32 %v4310_v36, %v3515_v29  ;;  %v3524_v45 = vor.u32 %v4311_v23, %v3523_v41  ;;  %vm980_vm13 = vweird.f32 %v4547_v20 }
 0x506   :  { %1229 = vmatpush.bf16.msra.mxu1 %v3568_v38  ;;  %1242 = vmatpush.bf16.msrb.mxu2 %v3572_v53  ;;  %v985_v38 = vand.u32 2147483648, %v958_v19  ;;  %vm981_vm0 = vmor %vm979_vm15, %vm980_vm13 }
 0x507   :  { %1217 = vmatpush.bf16.msra.mxu0 %v3548_v63  ;;  %1257 = vmatpush.bf16.msrb.mxu3 %v3544_v34  ;;  %v112_v63 = vadd.f32 %v5279_v5, %v4837_v0 }
 0x508   :  { %v986_v53 = vor.u32 1.1754944e-38, %v985_v38 }
 0x50a   :  { %1230 = vmatpush.bf16.msra.mxu1 %v3552_v1  ;;  %1243 = vmatpush.bf16.msrb.mxu2 %v3556_v2 }
 0x50b   :  { %1218 = vmatpush.bf16.msra.mxu0 %v3532_v22 }
 0x50e   :  { %1244 = vmatpush.bf16.msrb.mxu2 %v3540_v31 }
 0x50f   :  { %1219 = vmatpush.bf16.msra.mxu0 %v3516_v42 }
 0x512   :  { %1245 = vmatpush.bf16.msrb.mxu2 %v3524_v45 }
 0x553   :  { %v1009_v54 = vpop.permute.xlu1 %1008 }
 0x563   :  { %v930_v50 = vpop.permute.xlu0 %929 }
 0x564   :  { %v932_v44 = vmul.f32 %v930_v50, %v908_v49  ;;  %v3528_v49 = vor.u32 %v4309_v47, %v3525_v40  ;;  %v976_v50 = vsub.f32 1.0, %v975_v27 }
 0x566   :  { %v938_v59 = vpack.c.bf16 %v932_v44, %v932_v44  ;;  %1258 = vmatpush.bf16.msrb.mxu3 %v3528_v49  ;;  %v977_v51 = vmul.f32 %v4547_v20, %v976_v50 }
 0x568   :  { %940 = vrot.lane.b32.xlu2 %v938_v59, %s4681_s23  ;;  %v978_v44 = vadd.f32 %v4547_v20, %v977_v51 }
 0x56a   :  { %v982_v52 = vsel %vm981_vm0, %v4547_v20, %v978_v44 }
 0x56b   :  { %v935_v4 = vpop.permute.xlu0 %934  ;;  %v987_v55 = vsel %vm984_vm2, %v986_v53, %v982_v52 }
 0x56c   :  { %937 = vst.msk [vmem:[#allocation5] sm:$0xff] %vm223_vm6, %v935_v4  ;;  %v1011_v56 = vmul.f32 %v1009_v54, %v987_v55 }
 0x56e   :  { %v1017_v58 = vpack.c.bf16 %v1011_v56, %v1011_v56 }
 0x570   :  { %1013 = vrot.lane.b32.xlu2 %v5313_v9, %s4681_s23  ;;  %v4312_v9 = vld [vmem:[%s6684_s3 + $0x24] sm:$0xf] }
 0x571   :  { %v3536_v30 = vor.u32 %v4312_v9, %v3533_v24 }
 0x573   :  { %v1305_v16 = vld [vmem:[#allocation5] sm:$0xff]  ;;  %1231 = vmatpush.bf16.msra.mxu1 %v3536_v30 }
 0x574   :  { %1307 = vrot.lane.b32.xlu0 %v1305_v16, %s4681_s23 }
 0x577   :  { %1232 = vmatpush.bf16.msra.mxu1 %v3520_v28 }
 0x5c2   :  { %v941_v59 = vpop.permute.xlu2 %940 }
 0x5c3   :  { %943 = vst.msk [vmem:[#allocation3] sm:$0xf] %vm548_vm14, %v941_v59 }
 0x5c4   :  { %1018 = vst.msk [vmem:[#allocation3] sm:$0xf] %vm228_vm11, %v1017_v58 }
 0x5ca   :  { %v1014_v60 = vpop.permute.xlu2 %1013 }
 0x5cb   :  { %v1019_v61 = vld [vmem:[#allocation3] sm:$0xf]  ;;  %1016 = vst.msk [vmem:[#allocation4] sm:$0xff] %vm223_vm6, %v1014_v60 }
 0x5cc   :  { %1220 = vmatmul.bf16.vlgmr.msra.gmra.mxu0 %v1019_v61  ;;  %1233 = vmatmul.bf16.vlgmr.msra.gmra.mxu1 %v1019_v61 }
 0x5cd   :  { %1246 = vmatmul.bf16.vlgmr.msrb.gmra.mxu2 %v1019_v61  ;;  %1259 = vmatmul.bf16.vlgmr.msrb.gmra.mxu3 %v1019_v61 }
 0x5d2   :  { %v1384_v62 = vld [vmem:[#allocation4] sm:$0xff] }
 0x5d3   :  { %1386 = vrot.lane.b32.xlu0 %v1384_v62, %s4681_s23 }
 0x5e6   :  { %v1308_v56 = vpop.permute.xlu0 %1307 }
 0x645   :  { %v1387_v62 = vpop.permute.xlu0 %1386 }
 0x649   :  { %v1221_v1 = vpop.f32.mrf.mxu0  ;;  %v1234_v2 = vpop.f32.mrf.mxu1 }
 0x64a   :  { %v1343_v3 = vadd.f32 %v1221_v1, %v112_v63  ;;  %v5560_v21 = vadd.f32 %v1234_v2, %v141_v35 }
 0x64c   :  { %v3643_v20 = vmul.f32 -1.442695, %v1343_v3 }
 0x650   :  { %v1247_v4 = vpop.f32.mrf.mxu2  ;;  %v1260_v16 = vpop.f32.mrf.mxu3 }
 0x651   :  { %v5555_v17 = vadd.f32 %v1260_v16, %v5008_v46  ;;  %v1223_v18 = vpop.f32.mrf.mxu0  ;;  %v1236_v19 = vpop.f32.mrf.mxu1  ;;  %v1264_v25 = vadd.f32 %v1247_v4, %v5016_v57 }
 0x653   :  { %4548 = vtanh.f32 %v5555_v17  ;;  %v3641_v26 = vmul.f32 -1.442695, %v1264_v25  ;;  %v3642_v4 = vmul.f32 -1.442695, %v5555_v17 }
 0x654   :  { %4550 = vtanh.f32 %v5560_v21 }
 0x655   :  { %4552 = vpow2.f32 %v3641_v26 }
 0x656   :  { %4554 = vpow2.f32 %v3643_v20 }
 0x658   :  { %v1249_v9 = vpop.f32.mrf.mxu2  ;;  %v1262_v22 = vpop.f32.mrf.mxu3 }
 0x659   :  { %v4549_v5 = vpop.eup %4548 }
 0x65a   :  { %1312 = vrot.lane.b32.xlu1 %v4549_v5, %s4681_s23  ;;  %v4551_v24 = vpop.eup %4550 }
 0x65b   :  { %v4553_v30 = vpop.eup %4552 }
 0x65c   :  { %v1272_v6 = vadd.f32 1.0, %v4553_v30  ;;  %v4555_v31 = vpop.eup %4554 }
 0x65d   :  { %v1351_v32 = vadd.f32 1.0, %v4555_v31 }
 0x65e   :  { %4556 = vrcp.f32 %v1272_v6  ;;  %v1285_v41 = vand.u32 2147483648, %v1272_v6  ;;  %vm1279_vm4 = vweird.f32 %v1272_v6  ;;  %v1283_v23 = vand.u32 2147483647, %v1272_v6 }
 0x65f   :  { %4558 = vrcp.f32 %v1351_v32  ;;  %v1364_v44 = vand.u32 2147483648, %v1351_v32  ;;  %vm1358_vm9 = vweird.f32 %v1351_v32  ;;  %v1362_v38 = vand.u32 2147483647, %v1351_v32 }
 0x660   :  { %v1286_v47 = vor.u32 1.1754944e-38, %v1285_v41  ;;  %vm1284_vm7 = vcmp.eq.f32.partialorder %v1283_v23, 8.507059e+37 }
 0x661   :  { %v1365_v52 = vor.u32 1.1754944e-38, %v1364_v44  ;;  %vm1363_vm10 = vcmp.eq.f32.partialorder %v1362_v38, 8.507059e+37 }
 0x662   :  { %1391 = vrot.lane.b32.xlu1 %v4551_v24, %s4681_s23 }
 0x664   :  { %v4557_v33 = vpop.eup %4556 }
 0x665   :  { %v1275_v34 = vmul.f32 %v4557_v33, %v1272_v6  ;;  %v4559_v36 = vpop.eup %4558  ;;  %vm1280_vm3 = vweird.f32 %v4557_v33 }
 0x666   :  { %v1354_v27 = vmul.f32 %v4559_v36, %v1351_v32  ;;  %vm1281_vm5 = vmor %vm1279_vm4, %vm1280_vm3  ;;  %vm1359_vm8 = vweird.f32 %v4559_v36 }
 0x667   :  { %v1276_v29 = vsub.f32 1.0, %v1275_v34  ;;  %vm1360_vm1 = vmor %vm1358_vm9, %vm1359_vm8  ;;  %v3759_v34 = vld [vmem:[%s6684_s3 + $0xe0] sm:$0xf] }
 0x668   :  { %v1355_v43 = vsub.f32 1.0, %v1354_v27  ;;  %v3761_v27 = vld [vmem:[%s6684_s3 + $0xf0] sm:$0xf0] }
 0x669   :  { %v1277_v37 = vmul.f32 %v4557_v33, %v1276_v29  ;;  %v4370_v29 = vld [vmem:[%s6684_s3 + $0xec] sm:$0xf0] }
 0x66a   :  { %v1356_v45 = vmul.f32 %v4559_v36, %v1355_v43  ;;  %v4371_v43 = vld [vmem:[%s6684_s3 + $0xf4] sm:$0xf0] }
 0x66b   :  { %v1278_v42 = vadd.f32 %v4557_v33, %v1277_v37  ;;  %v3760_v37 = vor.u32 %v4370_v29, %v3759_v34  ;;  %v4354_v34 = vld [vmem:[%s6684_s3 + $0x6c] sm:$0xf0]  ;;  %v4352_v29 = vld [vmem:[%s6684_s3 + $0x64] sm:$0xf] }
 0x66c   :  { %v1357_v51 = vadd.f32 %v4559_v36, %v1356_v45  ;;  %v3769_v45 = vld [vmem:[%s6684_s3 + $0xf8] sm:$0xf0] }
 0x66d   :  { %v1282_v28 = vsel %vm1281_vm5, %v4557_v33, %v1278_v42  ;;  %v3767_v42 = vld [vmem:[%s6684_s3 + $0xe8] sm:$0xf]  ;;  %1606 = vmatpush.bf16.msrb.mxu0 %v3760_v37 }
 0x66e   :  { %v1287_v49 = vsel %vm1284_vm7, %v1286_v47, %v1282_v28  ;;  %v1361_v48 = vsel %vm1360_vm1, %v4559_v36, %v1357_v51  ;;  %v4368_v36 = vld [vmem:[%s6684_s3 + $0xe4] sm:$0xf]  ;;  %v3768_v23 = vor.u32 %v4371_v43, %v3767_v42  ;;  %v4369_v28 = vld [vmem:[%s6684_s3 + $0xec] sm:$0xf]  ;;  %v3743_v47 = vld [vmem:[%s6684_s3 + $0xc0] sm:$0xf] }
 0x66f   :  { %v1366_v54 = vsel %vm1363_vm10, %v1365_v52, %v1361_v48  ;;  %v1310_v58 = vmul.f32 %v1308_v56, %v1287_v49  ;;  %v3764_v41 = vor.u32 %v4368_v36, %v3761_v27  ;;  %v3745_v51 = vld [vmem:[%s6684_s3 + $0xd0] sm:$0xf0]  ;;  %v3751_v48 = vld [vmem:[%s6684_s3 + $0xc8] sm:$0xf]  ;;  %v4367_v52 = vld [vmem:[%s6684_s3 + $0xd4] sm:$0xf0] }
 0x670   :  { %v1389_v63 = vmul.f32 %v1387_v62, %v1366_v54  ;;  %1632 = vmatpush.bf16.msra.mxu2 %v3768_v23  ;;  %v3727_v56 = vld [vmem:[%s6684_s3 + $0xa0] sm:$0xf]  ;;  %v3735_v62 = vld [vmem:[%s6684_s3 + $0xa8] sm:$0xf]  ;;  %v3697_v36 = vld [vmem:[%s6684_s3 + $0x70] sm:$0xf0] }
 0x671   :  { %1619 = vmatpush.bf16.msrb.mxu1 %v3764_v41  ;;  %v3700_v27 = vor.u32 %v4352_v29, %v3697_v36  ;;  %v3703_v42 = vld [vmem:[%s6684_s3 + $0x68] sm:$0xf]  ;;  %v4355_v43 = vld [vmem:[%s6684_s3 + $0x74] sm:$0xf0]  ;;  %v4353_v41 = vld [vmem:[%s6684_s3 + $0x6c] sm:$0xf] }
 0x672   :  { %v3704_v23 = vor.u32 %v4355_v43, %v3703_v42 }
 0x6cc   :  { %v1313_v40 = vpop.permute.xlu1 %1312 }
 0x6cd   :  { %v1315_v50 = vmul.f32 %v1313_v40, %v1287_v49  ;;  %v3772_v40 = vor.u32 %v4369_v28, %v3769_v45  ;;  %v4366_v49 = vld [vmem:[%s6684_s3 + $0xcc] sm:$0xf0]  ;;  %v3705_v28 = vld [vmem:[%s6684_s3 + $0x78] sm:$0xf0]  ;;  %v3679_v45 = vld [vmem:[%s6684_s3 + $0x40] sm:$0xf] }
 0x6ce   :  { %v3744_v44 = vor.u32 %v4366_v49, %v3743_v47  ;;  %v4350_v47 = vld [vmem:[%s6684_s3 + $0x4c] sm:$0xf0]  ;;  %v4348_v49 = vld [vmem:[%s6684_s3 + $0x44] sm:$0xf] }
 0x6cf   :  { %1317 = vrot.lane.b32.xlu2 %v1315_v50, %s4681_s23  ;;  %v4364_v50 = vld [vmem:[%s6684_s3 + $0xc4] sm:$0xf]  ;;  %1645 = vmatpush.bf16.msra.mxu3 %v3772_v40  ;;  %v3708_v40 = vor.u32 %v4353_v41, %v3705_v28 }
 0x6d0   :  { %v3748_v38 = vor.u32 %v4364_v50, %v3745_v51  ;;  %1607 = vmatpush.bf16.msrb.mxu0 %v3744_v44  ;;  %v3681_v50 = vld [vmem:[%s6684_s3 + $0x50] sm:$0xf0]  ;;  %v3687_v51 = vld [vmem:[%s6684_s3 + $0x48] sm:$0xf]  ;;  %v3680_v44 = vor.u32 %v4350_v47, %v3679_v45 }
 0x6d2   :  { %1620 = vmatpush.bf16.msrb.mxu1 %v3748_v38  ;;  %v4351_v38 = vld [vmem:[%s6684_s3 + $0x54] sm:$0xf0] }
 0x6d4   :  { %v1392_v53 = vpop.permute.xlu1 %1391 }
 0x6d5   :  { %v1394_v55 = vmul.f32 %v1392_v53, %v1366_v54  ;;  %v4365_v53 = vld [vmem:[%s6684_s3 + $0xcc] sm:$0xf]  ;;  %v3752_v54 = vor.u32 %v4367_v52, %v3751_v48  ;;  %v3689_v52 = vld [vmem:[%s6684_s3 + $0x58] sm:$0xf0] }
 0x6d6   :  { %v4349_v48 = vld [vmem:[%s6684_s3 + $0x4c] sm:$0xf] }
 0x6d7   :  { %1396 = vrot.lane.b32.xlu1 %v1394_v55, %s4681_s23  ;;  %v3753_v55 = vld [vmem:[%s6684_s3 + $0xd8] sm:$0xf0]  ;;  %1633 = vmatpush.bf16.msra.mxu2 %v3752_v54  ;;  %v3688_v54 = vor.u32 %v4351_v38, %v3687_v51 }
 0x729   :  { %v1318_v59 = vpop.permute.xlu2 %1317 }
 0x72a   :  { %v1320_v60 = vadd.f32 %v1318_v59, %v1310_v58  ;;  %v4362_v58 = vld [vmem:[%s6684_s3 + $0xac] sm:$0xf0]  ;;  %v3756_v59 = vor.u32 %v4365_v53, %v3753_v55  ;;  %v3684_v53 = vor.u32 %v4348_v49, %v3681_v50  ;;  %v3692_v55 = vor.u32 %v4349_v48, %v3689_v52 }
 0x72c   :  { %4560 = vtanh.f32 %v1320_v60  ;;  %1646 = vmatpush.bf16.msra.mxu3 %v3756_v59  ;;  %v4344_v59 = vld [vmem:[%s6684_s3 + $0x24] sm:$0xf] }
 0x732   :  { %v4561_v61 = vpop.eup %4560 }
 0x733   :  { %1323 = vrot.lane.b32.xlu2 %v4561_v61, %s4681_s23  ;;  %v3729_v61 = vld [vmem:[%s6684_s3 + $0xb0] sm:$0xf0] }
 0x73b   :  { %1328 = vrot.lane.b32.xlu2 %v1320_v60, %s4681_s23  ;;  %v4360_v60 = vld [vmem:[%s6684_s3 + $0xa4] sm:$0xf] }
 0x749   :  { %v1397_v1 = vpop.permute.xlu1 %1396 }
 0x74a   :  { %v1399_v2 = vadd.f32 %v1397_v1, %v1389_v63  ;;  %v3728_v63 = vor.u32 %v4362_v58, %v3727_v56  ;;  %v4363_v1 = vld [vmem:[%s6684_s3 + $0xb4] sm:$0xf0]  ;;  %v3663_v56 = vld [vmem:[%s6684_s3 + $0x20] sm:$0xf]  ;;  %v4346_v58 = vld [vmem:[%s6684_s3 + $0x2c] sm:$0xf0] }
 0x74c   :  { %4562 = vtanh.f32 %v1399_v2  ;;  %1608 = vmatpush.bf16.msrb.mxu0 %v3728_v63  ;;  %v4347_v63 = vld [vmem:[%s6684_s3 + $0x34] sm:$0xf0] }
 0x74d   :  { %4564 = vpow2.f32 %v3642_v4  ;;  %v3732_v4 = vor.u32 %v4360_v60, %v3729_v61  ;;  %v3664_v60 = vor.u32 %v4346_v58, %v3663_v56  ;;  %v3665_v61 = vld [vmem:[%s6684_s3 + $0x30] sm:$0xf0] }
 0x74f   :  { %1621 = vmatpush.bf16.msrb.mxu1 %v3732_v4  ;;  %v3673_v4 = vld [vmem:[%s6684_s3 + $0x38] sm:$0xf0] }
 0x752   :  { %v4563_v3 = vpop.eup %4562 }
 0x753   :  { %1402 = vrot.lane.b32.xlu0 %v4563_v3, %s4681_s23  ;;  %v4565_v16 = vpop.eup %4564  ;;  %v3737_v3 = vld [vmem:[%s6684_s3 + $0xb8] sm:$0xf0] }
 0x754   :  { %v1273_v18 = vadd.f32 1.0, %v4565_v16  ;;  %v3736_v16 = vor.u32 %v4363_v1, %v3735_v62  ;;  %v3671_v62 = vld [vmem:[%s6684_s3 + $0x28] sm:$0xf]  ;;  %v3668_v1 = vor.u32 %v4344_v59, %v3665_v61 }
 0x756   :  { %4566 = vrcp.f32 %v1273_v18  ;;  %v1300_v24 = vand.u32 2147483648, %v1273_v18  ;;  %vm1294_vm13 = vweird.f32 %v1273_v18  ;;  %v1298_v25 = vand.u32 2147483647, %v1273_v18  ;;  %1634 = vmatpush.bf16.msra.mxu2 %v3736_v16  ;;  %v3647_v16 = vld [vmem:[%s6684_s3] sm:$0xf] }
 0x758   :  { %v1301_v20 = vor.u32 1.1754944e-38, %v1300_v24  ;;  %vm1299_vm0 = vcmp.eq.f32.partialorder %v1298_v25, 8.507059e+37  ;;  %v4356_v24 = vld [vmem:[%s6684_s3 + $0x84] sm:$0xf] }
 0x75c   :  { %v4567_v19 = vpop.eup %4566 }
 0x75d   :  { %v1290_v35 = vmul.f32 %v4567_v19, %v1273_v18  ;;  %vm1295_vm12 = vweird.f32 %v4567_v19 }
 0x75e   :  { %vm1296_vm15 = vmor %vm1294_vm13, %vm1295_vm12 }
 0x75f   :  { %v1291_v9 = vsub.f32 1.0, %v1290_v35 }
 0x761   :  { %v1292_v22 = vmul.f32 %v4567_v19, %v1291_v9 }
 0x763   :  { %v1293_v5 = vadd.f32 %v4567_v19, %v1292_v22  ;;  %v3711_v22 = vld [vmem:[%s6684_s3 + $0x80] sm:$0xf] }
 0x765   :  { %v1297_v26 = vsel %vm1296_vm15, %v4567_v19, %v1293_v5  ;;  %v3644_v19 = vmul.f32 -1.442695, %v5560_v21  ;;  %v4358_v5 = vld [vmem:[%s6684_s3 + $0x8c] sm:$0xf0]  ;;  %v3713_v21 = vld [vmem:[%s6684_s3 + $0x90] sm:$0xf0] }
 0x766   :  { %v1302_v30 = vsel %vm1299_vm0, %v1301_v20, %v1297_v26  ;;  %v3712_v25 = vor.u32 %v4358_v5, %v3711_v22  ;;  %v3719_v26 = vld [vmem:[%s6684_s3 + $0x88] sm:$0xf]  ;;  %v4359_v20 = vld [vmem:[%s6684_s3 + $0x94] sm:$0xf0]  ;;  %v4340_v22 = vld [vmem:[%s6684_s3 + $0x4] sm:$0xf] }
 0x767   :  { %4568 = vpow2.f32 %v3644_v19  ;;  %v3649_v5 = vld [vmem:[%s6684_s3 + $0x10] sm:$0xf0] }
 0x768   :  { %1609 = vmatpush.bf16.msrb.mxu0 %v3712_v25  ;;  %v3652_v25 = vor.u32 %v4340_v22, %v3649_v5 }
 0x76d   :  { %v4569_v35 = vpop.eup %4568 }
 0x76e   :  { %v5649_v9 = vadd.f32 1.0, %v4569_v35  ;;  %v4342_v35 = vld [vmem:[%s6684_s3 + $0xc] sm:$0xf0] }
 0x770   :  { %4570 = vrcp.f32 %v5649_v9  ;;  %v1379_v29 = vand.u32 2147483648, %v5649_v9  ;;  %vm1373_vm3 = vweird.f32 %v5649_v9  ;;  %v1377_v36 = vand.u32 2147483647, %v5649_v9 }
 0x772   :  { %vm1378_vm5 = vcmp.eq.f32.partialorder %v1377_v36, 8.507059e+37 }
 0x78d   :  { %v1324_v6 = vpop.permute.xlu2 %1323 }
 0x78e   :  { %v1326_v17 = vmul.f32 %v1324_v6, %v1302_v30  ;;  %v3716_v30 = vor.u32 %v4356_v24, %v3713_v21  ;;  %v3720_v6 = vor.u32 %v4359_v20, %v3719_v26  ;;  %v3648_v24 = vor.u32 %v4342_v35, %v3647_v16  ;;  %v3655_v21 = vld [vmem:[%s6684_s3 + $0x8] sm:$0xf]  ;;  %v4343_v26 = vld [vmem:[%s6684_s3 + $0x14] sm:$0xf0]  ;;  %v4341_v20 = vld [vmem:[%s6684_s3 + $0xc] sm:$0xf] }
 0x790   :  { %v1332_v31 = vpack.c.bf16 %v1326_v17, %v1326_v17  ;;  %v4357_v17 = vld [vmem:[%s6684_s3 + $0x8c] sm:$0xf]  ;;  %1622 = vmatpush.bf16.msrb.mxu1 %v3716_v30  ;;  %1635 = vmatpush.bf16.msra.mxu2 %v3720_v6  ;;  %v3656_v30 = vor.u32 %v4343_v26, %v3655_v21  ;;  %v3657_v6 = vld [vmem:[%s6684_s3 + $0x18] sm:$0xf0] }
 0x792   :  { %1334 = vrot.lane.b32.xlu1 %v1332_v31, %s4681_s23  ;;  %v3721_v31 = vld [vmem:[%s6684_s3 + $0x98] sm:$0xf0] }
 0x794   :  { %1623 = vmatpush.bf16.msrb.mxu1 %v3700_v27  ;;  %1636 = vmatpush.bf16.msra.mxu2 %v3704_v23  ;;  %v1380_v27 = vor.u32 1.1754944e-38, %v1379_v29 }
 0x795   :  { %v1329_v32 = vpop.permute.xlu2 %1328 }
 0x796   :  { %1331 = vst.msk [vmem:[#allocation5] sm:$0xff] %vm223_vm6, %v1329_v32  ;;  %v3695_v32 = vld [vmem:[%s6684_s3 + $0x60] sm:$0xf] }
 0x797   :  { %v3696_v37 = vor.u32 %v4354_v34, %v3695_v32 }
 0x798   :  { %1624 = vmatpush.bf16.msrb.mxu1 %v3684_v53  ;;  %1637 = vmatpush.bf16.msra.mxu2 %v3688_v54  ;;  %v144_v54 = vadd.f32 %v5285_v8, %v4797_v39 }
 0x799   :  { %1610 = vmatpush.bf16.msrb.mxu0 %v3696_v37 }
 0x79a   :  { %1407 = vrot.lane.b32.xlu1 %v1399_v2, %s4681_s23  ;;  %v4361_v2 = vld [vmem:[%s6684_s3 + $0xac] sm:$0xf] }
 0x79b   :  { %v3740_v18 = vor.u32 %v4361_v2, %v3737_v3  ;;  %v3672_v2 = vor.u32 %v4347_v63, %v3671_v62  ;;  %v4345_v3 = vld [vmem:[%s6684_s3 + $0x2c] sm:$0xf] }
 0x79c   :  { %v3676_v19 = vor.u32 %v4345_v3, %v3673_v4  ;;  %1625 = vmatpush.bf16.msrb.mxu1 %v3668_v1 }
 0x79d   :  { %v1699_v33 = vld [vmem:[#allocation5] sm:$0xff]  ;;  %1647 = vmatpush.bf16.msra.mxu3 %v3740_v18  ;;  %1611 = vmatpush.bf16.msrb.mxu0 %v3680_v44  ;;  %v4571_v18 = vpop.eup %4570 }
 0x79e   :  { %1701 = vrot.lane.b32.xlu2 %v1699_v33, %s4681_s23  ;;  %v3724_v33 = vor.u32 %v4357_v17, %v3721_v31  ;;  %1638 = vmatpush.bf16.msra.mxu2 %v3672_v2  ;;  %v1369_v17 = vmul.f32 %v4571_v18, %v5649_v9  ;;  %v3660_v31 = vor.u32 %v4341_v20, %v3657_v6  ;;  %vm1374_vm2 = vweird.f32 %v4571_v18 }
 0x79f   :  { %vm1375_vm4 = vmor %vm1373_vm3, %vm1374_vm2 }
 0x7a0   :  { %1626 = vmatpush.bf16.msrb.mxu1 %v3652_v25  ;;  %v1370_v32 = vsub.f32 1.0, %v1369_v17 }
 0x7a1   :  { %1648 = vmatpush.bf16.msra.mxu3 %v3724_v33  ;;  %1612 = vmatpush.bf16.msrb.mxu0 %v3664_v60 }
 0x7a2   :  { %1639 = vmatpush.bf16.msra.mxu2 %v3656_v30  ;;  %v1371_v33 = vmul.f32 %v4571_v18, %v1370_v32 }
 0x7a4   :  { %v1372_v34 = vadd.f32 %v4571_v18, %v1371_v33 }
 0x7a5   :  { %1649 = vmatpush.bf16.msra.mxu3 %v3708_v40  ;;  %1613 = vmatpush.bf16.msrb.mxu0 %v3648_v24  ;;  %v115_v40 = vadd.f32 %v5283_v7, %v4837_v0 }
 0x7a6   :  { %v1376_v37 = vsel %vm1375_vm4, %v4571_v18, %v1372_v34 }
 0x7a7   :  { %v1381_v43 = vsel %vm1378_vm5, %v1380_v27, %v1376_v37 }
 0x7a9   :  { %1650 = vmatpush.bf16.msra.mxu3 %v3692_v55 }
 0x7ad   :  { %1651 = vmatpush.bf16.msra.mxu3 %v3676_v19 }
 0x7b1   :  { %1652 = vmatpush.bf16.msra.mxu3 %v3660_v31 }
 0x7c5   :  { %v1403_v42 = vpop.permute.xlu0 %1402 }
 0x7c6   :  { %v1405_v41 = vmul.f32 %v1403_v42, %v1381_v43 }
 0x7c8   :  { %v1411_v23 = vpack.c.bf16 %v1405_v41, %v1405_v41 }
 0x7f8   :  { %v1702_v42 = vpop.permute.xlu2 %1701 }
 0x804   :  { %v1335_v28 = vpop.permute.xlu1 %1334 }
 0x805   :  { %1337 = vst.msk [vmem:[#allocation3] sm:$0xf] %vm548_vm14, %v1335_v28 }
 0x806   :  { %1412 = vst.msk [vmem:[#allocation3] sm:$0xf] %vm228_vm11, %v1411_v23 }
 0x80c   :  { %v1408_v45 = vpop.permute.xlu1 %1407 }
 0x80d   :  { %1410 = vst.msk [vmem:[#allocation4] sm:$0xff] %vm223_vm6, %v1408_v45  ;;  %v1413_v47 = vld [vmem:[#allocation3] sm:$0xf] }
 0x80e   :  { %1614 = vmatmul.bf16.vlgmr.msrb.gmra.mxu0 %v1413_v47  ;;  %1627 = vmatmul.bf16.vlgmr.msrb.gmra.mxu1 %v1413_v47 }
 0x80f   :  { %1640 = vmatmul.bf16.vlgmr.msra.gmra.mxu2 %v1413_v47  ;;  %1653 = vmatmul.bf16.vlgmr.msra.gmra.mxu3 %v1413_v47 }
 0x814   :  { %v1778_v9 = vld [vmem:[#allocation4] sm:$0xff] }
 0x815   :  { %1780 = vrot.lane.b32.xlu2 %v1778_v9, %s4681_s23 }
 0x86f   :  { %v1781_v28 = vpop.permute.xlu2 %1780 }
 0x88b   :  { %v1615_v49 = vpop.f32.mrf.mxu0  ;;  %v1628_v50 = vpop.f32.mrf.mxu1 }
 0x88c   :  { %v1737_v51 = vadd.f32 %v1615_v49, %v115_v40  ;;  %v5788_v55 = vadd.f32 %v1628_v50, %v144_v54 }
 0x88e   :  { %v3775_v62 = vmul.f32 -1.442695, %v1737_v51 }
 0x892   :  { %v1641_v44 = vpop.f32.mrf.mxu2  ;;  %v1654_v38 = vpop.f32.mrf.mxu3 }
 0x893   :  { %v5783_v48 = vadd.f32 %v1654_v38, %v5008_v46  ;;  %v1617_v52 = vpop.f32.mrf.mxu0  ;;  %v1630_v53 = vpop.f32.mrf.mxu1  ;;  %v1658_v60 = vadd.f32 %v1641_v44, %v5016_v57 }
 0x895   :  { %4572 = vtanh.f32 %v5783_v48  ;;  %v3773_v61 = vmul.f32 -1.442695, %v1658_v60  ;;  %v3774_v50 = vmul.f32 -1.442695, %v5783_v48  ;;  %v3891_v48 = vld [vmem:[%s6684_s3 + $0xe0] sm:$0xf] }
 0x896   :  { %4574 = vtanh.f32 %v5788_v55  ;;  %v3893_v60 = vld [vmem:[%s6684_s3 + $0xf0] sm:$0xf0] }
 0x897   :  { %4576 = vpow2.f32 %v3773_v61  ;;  %v3899_v61 = vld [vmem:[%s6684_s3 + $0xe8] sm:$0xf] }
 0x898   :  { %4578 = vpow2.f32 %v3775_v62  ;;  %v4403_v62 = vld [vmem:[%s6684_s3 + $0xf4] sm:$0xf0] }
 0x89a   :  { %v1643_v56 = vpop.f32.mrf.mxu2  ;;  %v1656_v58 = vpop.f32.mrf.mxu3 }
 0x89b   :  { %v4573_v7 = vpop.eup %4572  ;;  %v4402_v58 = vld [vmem:[%s6684_s3 + $0xec] sm:$0xf0] }
 0x89c   :  { %1706 = vrot.lane.b32.xlu0 %v4573_v7, %s4681_s23  ;;  %v4575_v59 = vpop.eup %4574  ;;  %v4400_v7 = vld [vmem:[%s6684_s3 + $0xe4] sm:$0xf] }
 0x89d   :  { %v4577_v63 = vpop.eup %4576 }
 0x89e   :  { %v1666_v8 = vadd.f32 1.0, %v4577_v63  ;;  %v4579_v1 = vpop.eup %4578  ;;  %v3896_v63 = vor.u32 %v4400_v7, %v3893_v60 }
 0x89f   :  { %v1745_v2 = vadd.f32 1.0, %v4579_v1  ;;  %v4401_v1 = vld [vmem:[%s6684_s3 + $0xec] sm:$0xf] }
 0x8a0   :  { %4580 = vrcp.f32 %v1666_v8  ;;  %v1679_v24 = vand.u32 2147483648, %v1666_v8  ;;  %vm1673_vm8 = vweird.f32 %v1666_v8  ;;  %v1677_v25 = vand.u32 2147483647, %v1666_v8  ;;  %2013 = vmatpush.bf16.msra.mxu1 %v3896_v63  ;;  %v4387_v63 = vld [vmem:[%s6684_s3 + $0x74] sm:$0xf0] }
 0x8a1   :  { %4582 = vrcp.f32 %v1745_v2  ;;  %v1758_v32 = vand.u32 2147483648, %v1745_v2  ;;  %vm1752_vm12 = vweird.f32 %v1745_v2  ;;  %v1756_v33 = vand.u32 2147483647, %v1745_v2 }
 0x8a2   :  { %v1680_v20 = vor.u32 1.1754944e-38, %v1679_v24  ;;  %vm1678_vm1 = vcmp.eq.f32.partialorder %v1677_v25, 8.507059e+37  ;;  %v3883_v24 = vld [vmem:[%s6684_s3 + $0xc8] sm:$0xf]  ;;  %v4399_v25 = vld [vmem:[%s6684_s3 + $0xd4] sm:$0xf0] }
 0x8a3   :  { %v1759_v29 = vor.u32 1.1754944e-38, %v1758_v32  ;;  %vm1757_vm15 = vcmp.eq.f32.partialorder %v1756_v33, 8.507059e+37  ;;  %v3861_v32 = vld [vmem:[%s6684_s3 + $0xb0] sm:$0xf0]  ;;  %v3867_v33 = vld [vmem:[%s6684_s3 + $0xa8] sm:$0xf] }
 0x8a4   :  { %1785 = vrot.lane.b32.xlu0 %v4575_v59, %s4681_s23  ;;  %v3892_v59 = vor.u32 %v4402_v58, %v3891_v48 }
 0x8a6   :  { %v4581_v3 = vpop.eup %4580  ;;  %2000 = vmatpush.bf16.msra.mxu0 %v3892_v59 }
 0x8a7   :  { %v1669_v4 = vmul.f32 %v4581_v3, %v1666_v8  ;;  %v4583_v18 = vpop.eup %4582  ;;  %vm1674_vm7 = vweird.f32 %v4581_v3  ;;  %v3900_v8 = vor.u32 %v4403_v62, %v3899_v61  ;;  %v4386_v61 = vld [vmem:[%s6684_s3 + $0x6c] sm:$0xf0] }
 0x8a8   :  { %v1748_v35 = vmul.f32 %v4583_v18, %v1745_v2  ;;  %vm1675_vm9 = vmor %vm1673_vm8, %vm1674_vm7  ;;  %vm1753_vm10 = vweird.f32 %v4583_v18  ;;  %v3901_v2 = vld [vmem:[%s6684_s3 + $0xf8] sm:$0xf0] }
 0x8a9   :  { %v1670_v16 = vsub.f32 1.0, %v1669_v4  ;;  %vm1754_vm13 = vmor %vm1752_vm12, %vm1753_vm10  ;;  %v3904_v4 = vor.u32 %v4401_v1, %v3901_v2  ;;  %2026 = vmatpush.bf16.msrb.mxu2 %v3900_v8  ;;  %v4385_v8 = vld [vmem:[%s6684_s3 + $0x6c] sm:$0xf]  ;;  %v3837_v1 = vld [vmem:[%s6684_s3 + $0x78] sm:$0xf0] }
 0x8aa   :  { %v1749_v5 = vsub.f32 1.0, %v1748_v35 }
 0x8ab   :  { %v1671_v19 = vmul.f32 %v4581_v3, %v1670_v16  ;;  %v4398_v16 = vld [vmem:[%s6684_s3 + $0xcc] sm:$0xf0]  ;;  %2039 = vmatpush.bf16.msrb.mxu3 %v3904_v4 }
 0x8ac   :  { %v1750_v26 = vmul.f32 %v4583_v18, %v1749_v5 }
 0x8ad   :  { %v1672_v22 = vadd.f32 %v4581_v3, %v1671_v19  ;;  %v3877_v19 = vld [vmem:[%s6684_s3 + $0xd0] sm:$0xf0] }
 0x8ae   :  { %v1751_v31 = vadd.f32 %v4583_v18, %v1750_v26  ;;  %v3884_v26 = vor.u32 %v4399_v25, %v3883_v24  ;;  %v4380_v24 = vld [vmem:[%s6684_s3 + $0x44] sm:$0xf]  ;;  %v3813_v25 = vld [vmem:[%s6684_s3 + $0x50] sm:$0xf0] }
 0x8af   :  { %v1676_v21 = vsel %vm1675_vm9, %v4581_v3, %v1672_v22  ;;  %v3875_v3 = vld [vmem:[%s6684_s3 + $0xc0] sm:$0xf] }
 0x8b0   :  { %v1681_v6 = vsel %vm1678_vm1, %v1680_v20, %v1676_v21  ;;  %v1755_v34 = vsel %vm1754_vm13, %v4583_v18, %v1751_v31  ;;  %v4396_v18 = vld [vmem:[%s6684_s3 + $0xc4] sm:$0xf]  ;;  %v3876_v22 = vor.u32 %v4398_v16, %v3875_v3  ;;  %v4397_v21 = vld [vmem:[%s6684_s3 + $0xcc] sm:$0xf]  ;;  %v3885_v20 = vld [vmem:[%s6684_s3 + $0xd8] sm:$0xf0]  ;;  %2027 = vmatpush.bf16.msrb.mxu2 %v3884_v26 }
 0x8b1   :  { %v1760_v37 = vsel %vm1757_vm15, %v1759_v29, %v1755_v34  ;;  %v1704_v43 = vmul.f32 %v1702_v42, %v1681_v6  ;;  %v3880_v5 = vor.u32 %v4396_v18, %v3877_v19  ;;  %v4392_v31 = vld [vmem:[%s6684_s3 + $0xa4] sm:$0xf]  ;;  %v4395_v29 = vld [vmem:[%s6684_s3 + $0xb4] sm:$0xf0]  ;;  %v3811_v19 = vld [vmem:[%s6684_s3 + $0x40] sm:$0xf] }
 0x8b2   :  { %v1783_v45 = vmul.f32 %v1781_v28, %v1760_v37  ;;  %2001 = vmatpush.bf16.msra.mxu0 %v3876_v22  ;;  %v3864_v42 = vor.u32 %v4392_v31, %v3861_v32  ;;  %v4388_v28 = vld [vmem:[%s6684_s3 + $0x84] sm:$0xf]  ;;  %v3816_v31 = vor.u32 %v4380_v24, %v3813_v25 }
 0x8b3   :  { %2014 = vmatpush.bf16.msra.mxu1 %v3880_v5  ;;  %v3840_v5 = vor.u32 %v4385_v8, %v3837_v1 }
 0x8b7   :  { %2015 = vmatpush.bf16.msra.mxu1 %v3864_v42  ;;  %v3795_v42 = vld [vmem:[%s6684_s3 + $0x20] sm:$0xf] }
 0x90e   :  { %v1707_v30 = vpop.permute.xlu0 %1706 }
 0x90f   :  { %v1709_v17 = vmul.f32 %v1707_v30, %v1681_v6  ;;  %v3859_v30 = vld [vmem:[%s6684_s3 + $0xa0] sm:$0xf]  ;;  %v4394_v6 = vld [vmem:[%s6684_s3 + $0xac] sm:$0xf0] }
 0x910   :  { %v3860_v34 = vor.u32 %v4394_v6, %v3859_v30  ;;  %v4381_v30 = vld [vmem:[%s6684_s3 + $0x4c] sm:$0xf]  ;;  %v3821_v6 = vld [vmem:[%s6684_s3 + $0x58] sm:$0xf0] }
 0x911   :  { %1711 = vrot.lane.b32.xlu1 %v1709_v17, %s4681_s23  ;;  %v3888_v17 = vor.u32 %v4397_v21, %v3885_v20  ;;  %v3819_v21 = vld [vmem:[%s6684_s3 + $0x48] sm:$0xf]  ;;  %v4383_v20 = vld [vmem:[%s6684_s3 + $0x54] sm:$0xf0] }
 0x912   :  { %2002 = vmatpush.bf16.msra.mxu0 %v3860_v34  ;;  %v3820_v32 = vor.u32 %v4383_v20, %v3819_v21 }
 0x913   :  { %2040 = vmatpush.bf16.msrb.mxu3 %v3888_v17 }
 0x916   :  { %v1786_v36 = vpop.permute.xlu0 %1785 }
 0x917   :  { %v1788_v27 = vmul.f32 %v1786_v36, %v1760_v37  ;;  %v4393_v36 = vld [vmem:[%s6684_s3 + $0xac] sm:$0xf]  ;;  %v3869_v37 = vld [vmem:[%s6684_s3 + $0xb8] sm:$0xf0] }
 0x919   :  { %1790 = vrot.lane.b32.xlu0 %v1788_v27, %s4681_s23 }
 0x983   :  { %v1712_v41 = vpop.permute.xlu1 %1711 }
 0x984   :  { %v1714_v23 = vadd.f32 %v1712_v41, %v1704_v43  ;;  %v3868_v43 = vor.u32 %v4395_v29, %v3867_v33  ;;  %v3843_v41 = vld [vmem:[%s6684_s3 + $0x80] sm:$0xf]  ;;  %v3824_v33 = vor.u32 %v4381_v30, %v3821_v6 }
 0x986   :  { %4584 = vtanh.f32 %v1714_v23  ;;  %2028 = vmatpush.bf16.msrb.mxu2 %v3868_v43  ;;  %v4378_v43 = vld [vmem:[%s6684_s3 + $0x2c] sm:$0xf0] }
 0x98b   :  { %v1791_v47 = vpop.permute.xlu0 %1790 }
 0x98c   :  { %v4585_v9 = vpop.eup %4584  ;;  %v5796_v40 = vadd.f32 %v1791_v47, %v1783_v45  ;;  %v3872_v45 = vor.u32 %v4393_v36, %v3869_v37  ;;  %v3845_v47 = vld [vmem:[%s6684_s3 + $0x90] sm:$0xf0]  ;;  %v3776_v36 = vmul.f32 -1.442695, %v5788_v55 }
 0x98d   :  { %1717 = vrot.lane.b32.xlu1 %v4585_v9, %s4681_s23  ;;  %v3851_v9 = vld [vmem:[%s6684_s3 + $0x88] sm:$0xf]  ;;  %v3848_v59 = vor.u32 %v4388_v28, %v3845_v47  ;;  %v3797_v55 = vld [vmem:[%s6684_s3 + $0x30] sm:$0xf0]  ;;  %v4379_v28 = vld [vmem:[%s6684_s3 + $0x34] sm:$0xf0] }
 0x98e   :  { %4586 = vtanh.f32 %v5796_v40  ;;  %2041 = vmatpush.bf16.msrb.mxu3 %v3872_v45 }
 0x98f   :  { %4588 = vpow2.f32 %v3774_v50  ;;  %v4389_v50 = vld [vmem:[%s6684_s3 + $0x8c] sm:$0xf]  ;;  %2016 = vmatpush.bf16.msra.mxu1 %v3848_v59 }
 0x994   :  { %v4587_v49 = vpop.eup %4586 }
 0x995   :  { %1796 = vrot.lane.b32.xlu2 %v4587_v49, %s4681_s23  ;;  %1722 = vrot.lane.b32.xlu1 %v1714_v23, %s4681_s23  ;;  %v4589_v51 = vpop.eup %4588  ;;  %v4390_v23 = vld [vmem:[%s6684_s3 + $0x8c] sm:$0xf0]  ;;  %v4391_v49 = vld [vmem:[%s6684_s3 + $0x94] sm:$0xf0] }
 0x996   :  { %v5803_v44 = vadd.f32 1.0, %v4589_v51  ;;  %v3853_v51 = vld [vmem:[%s6684_s3 + $0x98] sm:$0xf0]  ;;  %v3844_v48 = vor.u32 %v4390_v23, %v3843_v41  ;;  %v3852_v60 = vor.u32 %v4391_v49, %v3851_v9  ;;  %v3796_v41 = vor.u32 %v4378_v43, %v3795_v42  ;;  %v3803_v23 = vld [vmem:[%s6684_s3 + $0x28] sm:$0xf] }
 0x997   :  { %v3856_v62 = vor.u32 %v4389_v50, %v3853_v51  ;;  %v3804_v47 = vor.u32 %v4379_v28, %v3803_v23  ;;  %v4377_v9 = vld [vmem:[%s6684_s3 + $0x2c] sm:$0xf]  ;;  %v3805_v49 = vld [vmem:[%s6684_s3 + $0x38] sm:$0xf0]  ;;  %v3779_v50 = vld [vmem:[%s6684_s3] sm:$0xf] }
 0x998   :  { %4590 = vrcp.f32 %v5803_v44  ;;  %v1692_v54 = vand.u32 2147483647, %v5803_v44  ;;  %v1694_v56 = vand.u32 2147483648, %v5803_v44  ;;  %vm1688_vm2 = vweird.f32 %v5803_v44  ;;  %2003 = vmatpush.bf16.msra.mxu0 %v3844_v48  ;;  %2029 = vmatpush.bf16.msrb.mxu2 %v3852_v60  ;;  %v4372_v48 = vld [vmem:[%s6684_s3 + $0x4] sm:$0xf] }
 0x999   :  { %2042 = vmatpush.bf16.msrb.mxu3 %v3856_v62  ;;  %4592 = vpow2.f32 %v3776_v36  ;;  %v3787_v60 = vld [vmem:[%s6684_s3 + $0x8] sm:$0xf] }
 0x99a   :  { %vm5918_vm4 = vcmp.eq.f32.partialorder %v1692_v54, 8.507059e+37  ;;  %v1695_v7 = vor.u32 1.1754944e-38, %v1694_v56  ;;  %v3827_v54 = vld [vmem:[%s6684_s3 + $0x60] sm:$0xf]  ;;  %v3835_v56 = vld [vmem:[%s6684_s3 + $0x68] sm:$0xf] }
 0x99b   :  { %v3828_v4 = vor.u32 %v4386_v61, %v3827_v54  ;;  %v3836_v22 = vor.u32 %v4387_v63, %v3835_v56  ;;  %v4375_v54 = vld [vmem:[%s6684_s3 + $0x14] sm:$0xf0]  ;;  %v4373_v61 = vld [vmem:[%s6684_s3 + $0xc] sm:$0xf] }
 0x99c   :  { %v3788_v62 = vor.u32 %v4375_v54, %v3787_v60 }
 0x99d   :  { %2004 = vmatpush.bf16.msra.mxu0 %v3828_v4  ;;  %2030 = vmatpush.bf16.msrb.mxu2 %v3836_v22 }
 0x99e   :  { %v5806_v38 = vpop.eup %4590  ;;  %2043 = vmatpush.bf16.msrb.mxu3 %v3840_v5 }
 0x99f   :  { %v1684_v52 = vmul.f32 %v5806_v38, %v5803_v44  ;;  %vm1689_vm0 = vweird.f32 %v5806_v38  ;;  %v3829_v44 = vld [vmem:[%s6684_s3 + $0x70] sm:$0xf0]  ;;  %v4593_v37 = vpop.eup %4592 }
 0x9a0   :  { %vm5914_vm3 = vmor %vm1688_vm2, %vm1689_vm0 }
 0x9a1   :  { %v1685_v53 = vsub.f32 1.0, %v1684_v52  ;;  %2031 = vmatpush.bf16.msrb.mxu2 %v3820_v32  ;;  %v3808_v52 = vor.u32 %v4377_v9, %v3805_v49 }
 0x9a2   :  { %2044 = vmatpush.bf16.msrb.mxu3 %v3824_v33 }
 0x9a3   :  { %v1686_v35 = vmul.f32 %v5806_v38, %v1685_v53  ;;  %v4374_v53 = vld [vmem:[%s6684_s3 + $0xc] sm:$0xf0] }
 0x9a5   :  { %v1687_v27 = vadd.f32 %v5806_v38, %v1686_v35  ;;  %v4382_v35 = vld [vmem:[%s6684_s3 + $0x4c] sm:$0xf0]  ;;  %2032 = vmatpush.bf16.msrb.mxu2 %v3804_v47 }
 0x9a6   :  { %v3812_v17 = vor.u32 %v4382_v35, %v3811_v19  ;;  %2045 = vmatpush.bf16.msrb.mxu3 %v3808_v52 }
 0x9a7   :  { %v1691_v58 = vsel %vm5914_vm3, %v5806_v38, %v1687_v27  ;;  %v4384_v38 = vld [vmem:[%s6684_s3 + $0x64] sm:$0xf]  ;;  %v1746_v27 = vadd.f32 1.0, %v4593_v37 }
 0x9a8   :  { %v1696_v2 = vsel %vm5918_vm4, %v1695_v7, %v1691_v58  ;;  %v3832_v18 = vor.u32 %v4384_v38, %v3829_v44  ;;  %2005 = vmatpush.bf16.msra.mxu0 %v3812_v17  ;;  %v3781_v58 = vld [vmem:[%s6684_s3 + $0x10] sm:$0xf0]  ;;  %v3780_v7 = vor.u32 %v4374_v53, %v3779_v50  ;;  %v3789_v38 = vld [vmem:[%s6684_s3 + $0x18] sm:$0xf0] }
 0x9a9   :  { %4594 = vrcp.f32 %v1746_v27  ;;  %v3784_v59 = vor.u32 %v4372_v48, %v3781_v58  ;;  %v3792_v56 = vor.u32 %v4373_v61, %v3789_v38  ;;  %2033 = vmatpush.bf16.msrb.mxu2 %v3788_v62  ;;  %vm1767_vm7 = vweird.f32 %v1746_v27 }
 0x9aa   :  { %2017 = vmatpush.bf16.msra.mxu1 %v3832_v18 }
 0x9ab   :  { %2046 = vmatpush.bf16.msrb.mxu3 %v3792_v56 }
 0x9ac   :  { %2006 = vmatpush.bf16.msra.mxu0 %v3796_v41 }
 0x9ae   :  { %2018 = vmatpush.bf16.msra.mxu1 %v3816_v31 }
 0x9af   :  { %v4595_v51 = vpop.eup %4594 }
 0x9b0   :  { %v1763_v44 = vmul.f32 %v4595_v51, %v1746_v27  ;;  %2007 = vmatpush.bf16.msra.mxu0 %v3780_v7  ;;  %vm1768_vm5 = vweird.f32 %v4595_v51 }
 0x9b1   :  { %vm1769_vm8 = vmor %vm1767_vm7, %vm1768_vm5 }
 0x9b2   :  { %v1764_v63 = vsub.f32 1.0, %v1763_v44 }
 0x9b4   :  { %v1765_v8 = vmul.f32 %v4595_v51, %v1764_v63 }
 0x9b6   :  { %v1766_v1 = vadd.f32 %v4595_v51, %v1765_v8 }
 0x9b8   :  { %v1770_v4 = vsel %vm1769_vm8, %v4595_v51, %v1766_v1 }
 0x9ef   :  { %v1797_v18 = vpop.permute.xlu2 %1796 }
 0x9ff   :  { %v1718_v3 = vpop.permute.xlu1 %1717 }
 0xa00   :  { %v1720_v16 = vmul.f32 %v1718_v3, %v1696_v2  ;;  %v1773_v2 = vand.u32 2147483648, %v1746_v27  ;;  %v1771_v3 = vand.u32 2147483647, %v1746_v27 }
 0xa02   :  { %v1726_v26 = vpack.c.bf16 %v1720_v16, %v1720_v16  ;;  %v1774_v16 = vor.u32 1.1754944e-38, %v1773_v2  ;;  %vm1772_vm9 = vcmp.eq.f32.partialorder %v1771_v3, 8.507059e+37 }
 0xa04   :  { %1728 = vrot.lane.b32.xlu0 %v1726_v26, %s4681_s23  ;;  %v1775_v19 = vsel %vm1772_vm9, %v1774_v16, %v1770_v4  ;;  %v117_v26 = vadd.f32 %v5287_v10, %v4837_v0 }
 0xa05   :  { %v1799_v35 = vmul.f32 %v1797_v18, %v1775_v19 }
 0xa07   :  { %v1723_v34 = vpop.permute.xlu1 %1722  ;;  %v1805_v22 = vpack.c.bf16 %v1799_v35, %v1799_v35 }
 0xa08   :  { %1725 = vst.msk [vmem:[#allocation5] sm:$0xff] %vm223_vm6, %v1723_v34 }
 0xa0c   :  { %1801 = vrot.lane.b32.xlu0 %v5796_v40, %s4681_s23  ;;  %v4376_v40 = vld [vmem:[%s6684_s3 + $0x24] sm:$0xf] }
 0xa0d   :  { %v3800_v45 = vor.u32 %v4376_v40, %v3797_v55 }
 0xa0f   :  { %v2093_v29 = vld [vmem:[#allocation5] sm:$0xff]  ;;  %2019 = vmatpush.bf16.msra.mxu1 %v3800_v45 }
 0xa10   :  { %2095 = vrot.lane.b32.xlu1 %v2093_v29, %s4681_s23  ;;  %v146_v29 = vadd.f32 %v5289_v11, %v4797_v39 }
 0xa13   :  { %2020 = vmatpush.bf16.msra.mxu1 %v3784_v59 }
 0xa76   :  { %v1729_v5 = vpop.permute.xlu0 %1728 }
 0xa77   :  { %1731 = vst.msk [vmem:[#allocation3] sm:$0xf] %vm548_vm14, %v1729_v5 }
 0xa78   :  { %1806 = vst.msk [vmem:[#allocation3] sm:$0xf] %vm228_vm11, %v1805_v22 }
 0xa7e   :  { %v1802_v24 = vpop.permute.xlu0 %1801 }
 0xa7f   :  { %1804 = vst.msk [vmem:[#allocation4] sm:$0xff] %vm223_vm6, %v1802_v24  ;;  %v1807_v25 = vld [vmem:[#allocation3] sm:$0xf] }
 0xa80   :  { %2008 = vmatmul.bf16.vlgmr.msra.gmra.mxu0 %v1807_v25  ;;  %2021 = vmatmul.bf16.vlgmr.msra.gmra.mxu1 %v1807_v25 }
 0xa81   :  { %2034 = vmatmul.bf16.vlgmr.msrb.gmra.mxu2 %v1807_v25  ;;  %2047 = vmatmul.bf16.vlgmr.msrb.gmra.mxu3 %v1807_v25 }
 0xa82   :  { %v2096_v4 = vpop.permute.xlu1 %2095 }
 0xa86   :  { %v2172_v21 = vld [vmem:[#allocation4] sm:$0xff] }
 0xa87   :  { %2174 = vrot.lane.b32.xlu1 %v2172_v21, %s4681_s23 }
 0xaf9   :  { %v2175_v16 = vpop.permute.xlu1 %2174 }
 0xafd   :  { %v2009_v20 = vpop.f32.mrf.mxu0  ;;  %v2022_v30 = vpop.f32.mrf.mxu1 }
 0xafe   :  { %v2131_v6 = vadd.f32 %v2009_v20, %v117_v26  ;;  %v6043_v36 = vadd.f32 %v2022_v30, %v146_v29  ;;  %v4434_v29 = vld [vmem:[%s6684_s3 + $0xec] sm:$0xf0] }
 0xb00   :  { %v3907_v41 = vmul.f32 -1.442695, %v2131_v6 }
 0xb04   :  { %v2035_v17 = vpop.f32.mrf.mxu2  ;;  %v2048_v31 = vpop.f32.mrf.mxu3 }
 0xb05   :  { %v6038_v32 = vadd.f32 %v2048_v31, %v5008_v46  ;;  %v2011_v33 = vpop.f32.mrf.mxu0  ;;  %v2024_v34 = vpop.f32.mrf.mxu1  ;;  %v2052_v43 = vadd.f32 %v2035_v17, %v5016_v57 }
 0xb07   :  { %4596 = vtanh.f32 %v6038_v32  ;;  %v3905_v40 = vmul.f32 -1.442695, %v2052_v43  ;;  %v3906_v26 = vmul.f32 -1.442695, %v6038_v32  ;;  %v4023_v32 = vld [vmem:[%s6684_s3 + $0xe0] sm:$0xf] }
 0xb08   :  { %4598 = vtanh.f32 %v6043_v36  ;;  %v4435_v43 = vld [vmem:[%s6684_s3 + $0xf4] sm:$0xf0] }
 0xb09   :  { %4600 = vpow2.f32 %v3905_v40 }
 0xb0a   :  { %4602 = vpow2.f32 %v3907_v41 }
 0xb0c   :  { %v2037_v37 = vpop.f32.mrf.mxu2  ;;  %v2050_v27 = vpop.f32.mrf.mxu3 }
 0xb0d   :  { %v4597_v10 = vpop.eup %4596  ;;  %v4432_v37 = vld [vmem:[%s6684_s3 + $0xe4] sm:$0xf]  ;;  %v4024_v27 = vor.u32 %v4434_v29, %v4023_v32 }
 0xb0e   :  { %2100 = vrot.lane.b32.xlu2 %v4597_v10, %s4681_s23  ;;  %v4599_v42 = vpop.eup %4598  ;;  %v4025_v10 = vld [vmem:[%s6684_s3 + $0xf0] sm:$0xf0] }
 0xb0f   :  { %v4601_v55 = vpop.eup %4600  ;;  %v4028_v40 = vor.u32 %v4432_v37, %v4025_v10  ;;  %2394 = vmatpush.bf16.msrb.mxu0 %v4024_v27  ;;  %v4418_v27 = vld [vmem:[%s6684_s3 + $0x6c] sm:$0xf0] }
 0xb10   :  { %v2060_v11 = vadd.f32 1.0, %v4601_v55  ;;  %v4603_v23 = vpop.eup %4602  ;;  %v4433_v55 = vld [vmem:[%s6684_s3 + $0xec] sm:$0xf] }
 0xb11   :  { %v2139_v28 = vadd.f32 1.0, %v4603_v23  ;;  %v4007_v23 = vld [vmem:[%s6684_s3 + $0xc0] sm:$0xf]  ;;  %2407 = vmatpush.bf16.msrb.mxu1 %v4028_v40  ;;  %v3969_v40 = vld [vmem:[%s6684_s3 + $0x78] sm:$0xf0] }
 0xb12   :  { %4604 = vrcp.f32 %v2060_v11  ;;  %v2073_v48 = vand.u32 2147483648, %v2060_v11  ;;  %vm2067_vm10 = vweird.f32 %v2060_v11  ;;  %v2071_v58 = vand.u32 2147483647, %v2060_v11 }
 0xb13   :  { %4606 = vrcp.f32 %v2139_v28  ;;  %v2152_v44 = vand.u32 2147483648, %v2139_v28  ;;  %vm2146_vm0 = vweird.f32 %v2139_v28  ;;  %v2150_v56 = vand.u32 2147483647, %v2139_v28 }
 0xb14   :  { %v2074_v60 = vor.u32 1.1754944e-38, %v2073_v48  ;;  %vm2072_vm13 = vcmp.eq.f32.partialorder %v2071_v58, 8.507059e+37  ;;  %v4429_v48 = vld [vmem:[%s6684_s3 + $0xcc] sm:$0xf] }
 0xb15   :  { %v2153_v8 = vor.u32 1.1754944e-38, %v2152_v44  ;;  %vm2151_vm3 = vcmp.eq.f32.partialorder %v2150_v56, 8.507059e+37  ;;  %v4427_v56 = vld [vmem:[%s6684_s3 + $0xb4] sm:$0xf0] }
 0xb16   :  { %2179 = vrot.lane.b32.xlu2 %v4599_v42, %s4681_s23  ;;  %v4031_v42 = vld [vmem:[%s6684_s3 + $0xe8] sm:$0xf] }
 0xb17   :  { %v4032_v41 = vor.u32 %v4435_v43, %v4031_v42  ;;  %v4419_v42 = vld [vmem:[%s6684_s3 + $0x74] sm:$0xf0]  ;;  %v4417_v43 = vld [vmem:[%s6684_s3 + $0x6c] sm:$0xf] }
 0xb18   :  { %v4605_v45 = vpop.eup %4604 }
 0xb19   :  { %v2063_v47 = vmul.f32 %v4605_v45, %v2060_v11  ;;  %v4607_v49 = vpop.eup %4606  ;;  %vm2068_vm1 = vweird.f32 %v4605_v45  ;;  %v4033_v11 = vld [vmem:[%s6684_s3 + $0xf8] sm:$0xf0]  ;;  %2420 = vmatpush.bf16.msra.mxu2 %v4032_v41 }
 0xb1a   :  { %v2142_v51 = vmul.f32 %v4607_v49, %v2139_v28  ;;  %vm2069_vm12 = vmor %vm2067_vm10, %vm2068_vm1  ;;  %vm2147_vm15 = vweird.f32 %v4607_v49  ;;  %v4036_v28 = vor.u32 %v4433_v55, %v4033_v11 }
 0xb1b   :  { %v2064_v9 = vsub.f32 1.0, %v2063_v47  ;;  %vm2148_vm2 = vmor %vm2146_vm0, %vm2147_vm15  ;;  %v4428_v47 = vld [vmem:[%s6684_s3 + $0xc4] sm:$0xf] }
 0xb1c   :  { %v2143_v53 = vsub.f32 1.0, %v2142_v51  ;;  %2433 = vmatpush.bf16.msra.mxu3 %v4036_v28 }
 0xb1d   :  { %v2065_v50 = vmul.f32 %v4605_v45, %v2064_v9  ;;  %v4009_v9 = vld [vmem:[%s6684_s3 + $0xd0] sm:$0xf0] }
 0xb1e   :  { %v2144_v59 = vmul.f32 %v4607_v49, %v2143_v53  ;;  %v4012_v51 = vor.u32 %v4428_v47, %v4009_v9  ;;  %v4431_v53 = vld [vmem:[%s6684_s3 + $0xd4] sm:$0xf0]  ;;  %v4414_v47 = vld [vmem:[%s6684_s3 + $0x4c] sm:$0xf0] }
 0xb1f   :  { %v2066_v52 = vadd.f32 %v4605_v45, %v2065_v50 }
 0xb20   :  { %v2145_v38 = vadd.f32 %v4607_v49, %v2144_v59  ;;  %v3991_v59 = vld [vmem:[%s6684_s3 + $0xa0] sm:$0xf]  ;;  %2408 = vmatpush.bf16.msrb.mxu1 %v4012_v51  ;;  %v3945_v51 = vld [vmem:[%s6684_s3 + $0x50] sm:$0xf0] }
 0xb21   :  { %v2070_v7 = vsel %vm2069_vm12, %v4605_v45, %v2066_v52  ;;  %v4430_v45 = vld [vmem:[%s6684_s3 + $0xcc] sm:$0xf0]  ;;  %v4015_v52 = vld [vmem:[%s6684_s3 + $0xc8] sm:$0xf] }
 0xb22   :  { %v2075_v61 = vsel %vm2072_vm13, %v2074_v60, %v2070_v7  ;;  %v2149_v63 = vsel %vm2148_vm2, %v4607_v49, %v2145_v38  ;;  %v4008_v50 = vor.u32 %v4430_v45, %v4007_v23  ;;  %v4016_v58 = vor.u32 %v4431_v53, %v4015_v52  ;;  %v4017_v7 = vld [vmem:[%s6684_s3 + $0xd8] sm:$0xf0]  ;;  %v4426_v60 = vld [vmem:[%s6684_s3 + $0xac] sm:$0xf0]  ;;  %v3999_v38 = vld [vmem:[%s6684_s3 + $0xa8] sm:$0xf] }
 0xb23   :  { %v2154_v2 = vsel %vm2151_vm3, %v2153_v8, %v2149_v63  ;;  %v2098_v5 = vmul.f32 %v2096_v4, %v2075_v61  ;;  %v3992_v44 = vor.u32 %v4426_v60, %v3991_v59  ;;  %v4425_v63 = vld [vmem:[%s6684_s3 + $0xac] sm:$0xf]  ;;  %v4001_v8 = vld [vmem:[%s6684_s3 + $0xb8] sm:$0xf0]  ;;  %v3975_v4 = vld [vmem:[%s6684_s3 + $0x80] sm:$0xf] }
 0xb24   :  { %v2177_v18 = vmul.f32 %v2175_v16, %v2154_v2  ;;  %2395 = vmatpush.bf16.msrb.mxu0 %v4008_v50  ;;  %2421 = vmatpush.bf16.msra.mxu2 %v4016_v58  ;;  %v4422_v16 = vld [vmem:[%s6684_s3 + $0x8c] sm:$0xf0]  ;;  %v3943_v45 = vld [vmem:[%s6684_s3 + $0x40] sm:$0xf]  ;;  %v4412_v50 = vld [vmem:[%s6684_s3 + $0x44] sm:$0xf] }
 0xb25   :  { %v3951_v52 = vld [vmem:[%s6684_s3 + $0x48] sm:$0xf]  ;;  %v4413_v58 = vld [vmem:[%s6684_s3 + $0x4c] sm:$0xf]  ;;  %v3944_v59 = vor.u32 %v4414_v47, %v3943_v45  ;;  %v3948_v60 = vor.u32 %v4412_v50, %v3945_v51  ;;  %v120_v51 = vadd.f32 %v5291_v12, %v4837_v0 }
 0xb28   :  { %2396 = vmatpush.bf16.msrb.mxu0 %v3992_v44  ;;  %v3908_v44 = vmul.f32 -1.442695, %v6043_v36  ;;  %v3929_v36 = vld [vmem:[%s6684_s3 + $0x30] sm:$0xf0] }
 0xb68   :  { %v2101_v54 = vpop.permute.xlu2 %2100 }
 0xb69   :  { %v2103_v62 = vmul.f32 %v2101_v54, %v2075_v61  ;;  %v4020_v54 = vor.u32 %v4429_v48, %v4017_v7  ;;  %v4424_v61 = vld [vmem:[%s6684_s3 + $0xa4] sm:$0xf]  ;;  %v4415_v48 = vld [vmem:[%s6684_s3 + $0x54] sm:$0xf0]  ;;  %v3953_v7 = vld [vmem:[%s6684_s3 + $0x58] sm:$0xf0] }
 0xb6b   :  { %2105 = vrot.lane.b32.xlu0 %v2103_v62, %s4681_s23  ;;  %v3993_v62 = vld [vmem:[%s6684_s3 + $0xb0] sm:$0xf0]  ;;  %2434 = vmatpush.bf16.msra.mxu3 %v4020_v54  ;;  %v3952_v54 = vor.u32 %v4415_v48, %v3951_v52 }
 0xb70   :  { %v2180_v1 = vpop.permute.xlu2 %2179 }
 0xb71   :  { %v2182_v3 = vmul.f32 %v2180_v1, %v2154_v2  ;;  %v3996_v2 = vor.u32 %v4424_v61, %v3993_v62  ;;  %v3956_v61 = vor.u32 %v4413_v58, %v3953_v7 }
 0xb73   :  { %2184 = vrot.lane.b32.xlu2 %v2182_v3, %s4681_s23  ;;  %v4000_v3 = vor.u32 %v4427_v56, %v3999_v38  ;;  %2409 = vmatpush.bf16.msrb.mxu1 %v3996_v2 }
 0xb75   :  { %2422 = vmatpush.bf16.msra.mxu2 %v4000_v3  ;;  %v3935_v3 = vld [vmem:[%s6684_s3 + $0x28] sm:$0xf] }
 0xbcd   :  { %v2185_v19 = vpop.permute.xlu2 %2184 }
 0xbce   :  { %v6051_v35 = vadd.f32 %v2185_v19, %v2177_v18  ;;  %v4420_v18 = vld [vmem:[%s6684_s3 + $0x84] sm:$0xf]  ;;  %v4004_v19 = vor.u32 %v4425_v63, %v4001_v8  ;;  %v3927_v8 = vld [vmem:[%s6684_s3 + $0x20] sm:$0xf] }
 0xbd0   :  { %4608 = vtanh.f32 %v6051_v35  ;;  %2435 = vmatpush.bf16.msra.mxu3 %v4004_v19  ;;  %v4409_v19 = vld [vmem:[%s6684_s3 + $0x2c] sm:$0xf] }
 0xbd6   :  { %v4609_v22 = vpop.eup %4608 }
 0xbd7   :  { %2190 = vrot.lane.b32.xlu1 %v4609_v22, %s4681_s23  ;;  %v3977_v22 = vld [vmem:[%s6684_s3 + $0x90] sm:$0xf0] }
 0xbd8   :  { %v3980_v29 = vor.u32 %v4420_v18, %v3977_v22  ;;  %v3937_v22 = vld [vmem:[%s6684_s3 + $0x38] sm:$0xf0] }
 0xbda   :  { %2410 = vmatpush.bf16.msrb.mxu1 %v3980_v29  ;;  %v4407_v29 = vld [vmem:[%s6684_s3 + $0x14] sm:$0xf0] }
 0xbdd   :  { %v2106_v24 = vpop.permute.xlu0 %2105 }
 0xbde   :  { %v2108_v25 = vadd.f32 %v2106_v24, %v2098_v5  ;;  %v3983_v5 = vld [vmem:[%s6684_s3 + $0x88] sm:$0xf]  ;;  %v4423_v24 = vld [vmem:[%s6684_s3 + $0x94] sm:$0xf0] }
 0xbdf   :  { %v3984_v37 = vor.u32 %v4423_v24, %v3983_v5  ;;  %v3911_v5 = vld [vmem:[%s6684_s3] sm:$0xf] }
 0xbe0   :  { %4610 = vtanh.f32 %v2108_v25 }
 0xbe1   :  { %4612 = vpow2.f32 %v3906_v26  ;;  %2423 = vmatpush.bf16.msra.mxu2 %v3984_v37  ;;  %v4404_v26 = vld [vmem:[%s6684_s3 + $0x4] sm:$0xf]  ;;  %v4405_v37 = vld [vmem:[%s6684_s3 + $0xc] sm:$0xf] }
 0xbe6   :  { %v4611_v21 = vpop.eup %4610 }
 0xbe7   :  { %2111 = vrot.lane.b32.xlu0 %v4611_v21, %s4681_s23  ;;  %v4613_v20 = vpop.eup %4612  ;;  %v3985_v21 = vld [vmem:[%s6684_s3 + $0x98] sm:$0xf0] }
 0xbe8   :  { %v6058_v30 = vadd.f32 1.0, %v4613_v20  ;;  %v3913_v20 = vld [vmem:[%s6684_s3 + $0x10] sm:$0xf0] }
 0xbea   :  { %4614 = vrcp.f32 %v6058_v30  ;;  %v2086_v33 = vand.u32 2147483647, %v6058_v30  ;;  %v2088_v34 = vand.u32 2147483648, %v6058_v30  ;;  %vm2082_vm5 = vweird.f32 %v6058_v30 }
 0xbeb   :  { %4616 = vpow2.f32 %v3908_v44 }
 0xbec   :  { %vm6173_vm8 = vcmp.eq.f32.partialorder %v2086_v33, 8.507059e+37  ;;  %v2089_v32 = vor.u32 1.1754944e-38, %v2088_v34  ;;  %v3959_v33 = vld [vmem:[%s6684_s3 + $0x60] sm:$0xf]  ;;  %v3967_v34 = vld [vmem:[%s6684_s3 + $0x68] sm:$0xf] }
 0xbed   :  { %v3960_v11 = vor.u32 %v4418_v27, %v3959_v33  ;;  %v3968_v9 = vor.u32 %v4419_v42, %v3967_v34  ;;  %v3921_v27 = vld [vmem:[%s6684_s3 + $0x18] sm:$0xf0] }
 0xbef   :  { %2116 = vrot.lane.b32.xlu0 %v2108_v25, %s4681_s23  ;;  %v4421_v25 = vld [vmem:[%s6684_s3 + $0x8c] sm:$0xf]  ;;  %2424 = vmatpush.bf16.msra.mxu2 %v3968_v9 }
 0xbf0   :  { %v6061_v6 = vpop.eup %4614  ;;  %v3988_v10 = vor.u32 %v4421_v25, %v3985_v21  ;;  %v3940_v25 = vor.u32 %v4409_v19, %v3937_v22  ;;  %v4406_v21 = vld [vmem:[%s6684_s3 + $0xc] sm:$0xf0] }
 0xbf1   :  { %v2078_v17 = vmul.f32 %v6061_v6, %v6058_v30  ;;  %vm2083_vm4 = vweird.f32 %v6061_v6  ;;  %v3961_v30 = vld [vmem:[%s6684_s3 + $0x70] sm:$0xf0]  ;;  %v4617_v56 = vpop.eup %4616 }
 0xbf2   :  { %vm6169_vm7 = vmor %vm2082_vm5, %vm2083_vm4  ;;  %2436 = vmatpush.bf16.msra.mxu3 %v3988_v10  ;;  %v2140_v63 = vadd.f32 1.0, %v4617_v56 }
 0xbf3   :  { %v2079_v31 = vsub.f32 1.0, %v2078_v17  ;;  %v3976_v17 = vor.u32 %v4422_v16, %v3975_v4  ;;  %2425 = vmatpush.bf16.msra.mxu2 %v3952_v54  ;;  %v4411_v4 = vld [vmem:[%s6684_s3 + $0x34] sm:$0xf0] }
 0xbf4   :  { %4618 = vrcp.f32 %v2140_v63  ;;  %v3936_v18 = vor.u32 %v4411_v4, %v3935_v3  ;;  %vm2161_vm1 = vweird.f32 %v2140_v63 }
 0xbf5   :  { %v2080_v49 = vmul.f32 %v6061_v6, %v2079_v31  ;;  %2397 = vmatpush.bf16.msrb.mxu0 %v3976_v17  ;;  %v3912_v17 = vor.u32 %v4406_v21, %v3911_v5 }
 0xbf7   :  { %v2081_v1 = vadd.f32 %v6061_v6, %v2080_v49  ;;  %v3972_v49 = vor.u32 %v4417_v43, %v3969_v40  ;;  %2426 = vmatpush.bf16.msra.mxu2 %v3936_v18  ;;  %v2167_v43 = vand.u32 2147483648, %v2140_v63  ;;  %v2165_v40 = vand.u32 2147483647, %v2140_v63 }
 0xbf9   :  { %v2085_v31 = vsel %vm6169_vm7, %v6061_v6, %v2081_v1  ;;  %v4416_v6 = vld [vmem:[%s6684_s3 + $0x64] sm:$0xf]  ;;  %2398 = vmatpush.bf16.msrb.mxu0 %v3960_v11  ;;  %2437 = vmatpush.bf16.msra.mxu3 %v3972_v49  ;;  %v4410_v1 = vld [vmem:[%s6684_s3 + $0x2c] sm:$0xf0]  ;;  %vm2166_vm12 = vcmp.eq.f32.partialorder %v2165_v40, 8.507059e+37 }
 0xbfa   :  { %v2090_v41 = vsel %vm6173_vm8, %v2089_v32, %v2085_v31  ;;  %v3964_v28 = vor.u32 %v4416_v6, %v3961_v30  ;;  %v3928_v2 = vor.u32 %v4410_v1, %v3927_v8  ;;  %v4619_v24 = vpop.eup %4618  ;;  %v3916_v31 = vor.u32 %v4404_v26, %v3913_v20  ;;  %v3919_v32 = vld [vmem:[%s6684_s3 + $0x8] sm:$0xf] }
 0xbfb   :  { %v3920_v33 = vor.u32 %v4407_v29, %v3919_v32  ;;  %v2157_v10 = vmul.f32 %v4619_v24, %v2140_v63  ;;  %v3924_v6 = vor.u32 %v4405_v37, %v3921_v27  ;;  %vm2162_vm9 = vweird.f32 %v4619_v24 }
 0xbfc   :  { %2411 = vmatpush.bf16.msrb.mxu1 %v3964_v28  ;;  %vm2163_vm10 = vmor %vm2161_vm1, %vm2162_vm9 }
 0xbfd   :  { %2399 = vmatpush.bf16.msrb.mxu0 %v3944_v59  ;;  %2438 = vmatpush.bf16.msra.mxu3 %v3956_v61  ;;  %v2158_v30 = vsub.f32 1.0, %v2157_v10  ;;  %v149_v61 = vadd.f32 %v5293_v13, %v4797_v39 }
 0xbfe   :  { %2427 = vmatpush.bf16.msra.mxu2 %v3920_v33 }
 0xbff   :  { %v2159_v34 = vmul.f32 %v4619_v24, %v2158_v30 }
 0xc00   :  { %2412 = vmatpush.bf16.msrb.mxu1 %v3948_v60 }
 0xc01   :  { %2400 = vmatpush.bf16.msrb.mxu0 %v3928_v2  ;;  %2439 = vmatpush.bf16.msra.mxu3 %v3940_v25  ;;  %v2160_v42 = vadd.f32 %v4619_v24, %v2159_v34 }
 0xc05   :  { %2401 = vmatpush.bf16.msrb.mxu0 %v3912_v17  ;;  %2440 = vmatpush.bf16.msra.mxu3 %v3924_v6 }
 0xc49   :  { %v2191_v11 = vpop.permute.xlu1 %2190 }
 0xc59   :  { %v2112_v55 = vpop.permute.xlu0 %2111 }
 0xc5a   :  { %v2114_v23 = vmul.f32 %v2112_v55, %v2090_v41  ;;  %v2164_v41 = vsel %vm2163_vm10, %v4619_v24, %v2160_v42  ;;  %v2168_v55 = vor.u32 1.1754944e-38, %v2167_v43 }
 0xc5c   :  { %v2120_v53 = vpack.c.bf16 %v2114_v23, %v2114_v23  ;;  %v2169_v23 = vsel %vm2166_vm12, %v2168_v55, %v2164_v41 }
 0xc5d   :  { %v2193_v28 = vmul.f32 %v2191_v11, %v2169_v23 }
 0xc5e   :  { %2122 = vrot.lane.b32.xlu2 %v2120_v53, %s4681_s23 }
 0xc5f   :  { %v2199_v45 = vpack.c.bf16 %v2193_v28, %v2193_v28 }
 0xc61   :  { %v2117_v62 = vpop.permute.xlu0 %2116 }
 0xc62   :  { %2119 = vst.msk [vmem:[#allocation5] sm:$0xff] %vm223_vm6, %v2117_v62 }
 0xc66   :  { %2195 = vrot.lane.b32.xlu2 %v6051_v35, %s4681_s23  ;;  %v4408_v35 = vld [vmem:[%s6684_s3 + $0x24] sm:$0xf] }
 0xc67   :  { %v3932_v16 = vor.u32 %v4408_v35, %v3929_v36 }
 0xc69   :  { %v2487_v38 = vld [vmem:[#allocation5] sm:$0xff]  ;;  %2413 = vmatpush.bf16.msrb.mxu1 %v3932_v16 }
 0xc6a   :  { %2489 = vrot.lane.b32.xlu0 %v2487_v38, %s4681_s23 }
 0xc6d   :  { %2414 = vmatpush.bf16.msrb.mxu1 %v3916_v31 }
 0xcb8   :  { %v2123_v47 = vpop.permute.xlu2 %2122 }
 0xcb9   :  { %2125 = vst.msk [vmem:[#allocation3] sm:$0xf] %vm548_vm14, %v2123_v47 }
 0xcba   :  { %2200 = vst.msk [vmem:[#allocation3] sm:$0xf] %vm228_vm11, %v2199_v45 }
 0xcc0   :  { %v2196_v9 = vpop.permute.xlu2 %2195 }
 0xcc1   :  { %2198 = vst.msk [vmem:[#allocation4] sm:$0xff] %vm223_vm6, %v2196_v9  ;;  %v2201_v49 = vld [vmem:[#allocation3] sm:$0xf] }
 0xcc2   :  { %2402 = vmatmul.bf16.vlgmr.msrb.gmra.mxu0 %v2201_v49  ;;  %2415 = vmatmul.bf16.vlgmr.msrb.gmra.mxu1 %v2201_v49 }
 0xcc3   :  { %2428 = vmatmul.bf16.vlgmr.msra.gmra.mxu2 %v2201_v49  ;;  %2441 = vmatmul.bf16.vlgmr.msra.gmra.mxu3 %v2201_v49 }
 0xcc8   :  { %v2566_v50 = vld [vmem:[#allocation4] sm:$0xff] }
 0xcc9   :  { %2568 = vrot.lane.b32.xlu0 %v2566_v50, %s4681_s23 }
 0xcdc   :  { %v2490_v43 = vpop.permute.xlu0 %2489 }
 0xd3b   :  { %v2569_v23 = vpop.permute.xlu0 %2568 }
 0xd3f   :  { %v2403_v52 = vpop.f32.mrf.mxu0  ;;  %v2416_v53 = vpop.f32.mrf.mxu1 }
 0xd40   :  { %v2525_v48 = vadd.f32 %v2403_v52, %v120_v51  ;;  %v6298_v62 = vadd.f32 %v2416_v53, %v149_v61 }
 0xd42   :  { %v4039_v1 = vmul.f32 -1.442695, %v2525_v48 }
 0xd46   :  { %v2429_v58 = vpop.f32.mrf.mxu2  ;;  %v2442_v7 = vpop.f32.mrf.mxu3 }
 0xd47   :  { %v6293_v59 = vadd.f32 %v2442_v7, %v5008_v46  ;;  %v2405_v60 = vpop.f32.mrf.mxu0  ;;  %v2418_v54 = vpop.f32.mrf.mxu1  ;;  %v2446_v63 = vadd.f32 %v2429_v58, %v5016_v57 }
 0xd49   :  { %4620 = vtanh.f32 %v6293_v59  ;;  %v4037_v8 = vmul.f32 -1.442695, %v2446_v63  ;;  %v4038_v49 = vmul.f32 -1.442695, %v6293_v59 }
 0xd4a   :  { %4622 = vtanh.f32 %v6298_v62 }
 0xd4b   :  { %4624 = vpow2.f32 %v4037_v8 }
 0xd4c   :  { %4626 = vpow2.f32 %v4039_v1  ;;  %v4155_v1 = vld [vmem:[%s6684_s3 + $0xe0] sm:$0xf] }
 0xd4e   :  { %v2431_v38 = vpop.f32.mrf.mxu2  ;;  %v2444_v44 = vpop.f32.mrf.mxu3 }
 0xd4f   :  { %v4621_v12 = vpop.eup %4620 }
 0xd50   :  { %2494 = vrot.lane.b32.xlu1 %v4621_v12, %s4681_s23  ;;  %v4623_v56 = vpop.eup %4622 }
 0xd51   :  { %v4625_v35 = vpop.eup %4624 }
 0xd52   :  { %v2454_v13 = vadd.f32 1.0, %v4625_v35  ;;  %v4627_v2 = vpop.eup %4626  ;;  %v4466_v35 = vld [vmem:[%s6684_s3 + $0xec] sm:$0xf0] }
 0xd53   :  { %v2533_v36 = vadd.f32 1.0, %v4627_v2  ;;  %v4156_v2 = vor.u32 %v4466_v35, %v4155_v1  ;;  %v4451_v1 = vld [vmem:[%s6684_s3 + $0x74] sm:$0xf0]  ;;  %v4449_v35 = vld [vmem:[%s6684_s3 + $0x6c] sm:$0xf] }
 0xd54   :  { %4628 = vrcp.f32 %v2454_v13  ;;  %v2467_v25 = vand.u32 2147483648, %v2454_v13  ;;  %vm2461_vm15 = vweird.f32 %v2454_v13  ;;  %v2465_v21 = vand.u32 2147483647, %v2454_v13 }
 0xd55   :  { %4630 = vrcp.f32 %v2533_v36  ;;  %v2546_v33 = vand.u32 2147483648, %v2533_v36  ;;  %vm2540_vm4 = vweird.f32 %v2533_v36  ;;  %v2544_v27 = vand.u32 2147483647, %v2533_v36  ;;  %2788 = vmatpush.bf16.msra.mxu0 %v4156_v2  ;;  %v4101_v2 = vld [vmem:[%s6684_s3 + $0x78] sm:$0xf0] }
 0xd56   :  { %v2468_v17 = vor.u32 1.1754944e-38, %v2467_v25  ;;  %vm2466_vm2 = vcmp.eq.f32.partialorder %v2465_v21, 8.507059e+37  ;;  %v4462_v25 = vld [vmem:[%s6684_s3 + $0xcc] sm:$0xf0]  ;;  %v4460_v21 = vld [vmem:[%s6684_s3 + $0xc4] sm:$0xf] }
 0xd57   :  { %v2547_v6 = vor.u32 1.1754944e-38, %v2546_v33  ;;  %vm2545_vm7 = vcmp.eq.f32.partialorder %v2544_v27, 8.507059e+37  ;;  %v4149_v33 = vld [vmem:[%s6684_s3 + $0xd8] sm:$0xf0]  ;;  %v4123_v27 = vld [vmem:[%s6684_s3 + $0xa0] sm:$0xf] }
 0xd58   :  { %2573 = vrot.lane.b32.xlu1 %v4623_v56, %s4681_s23 }
 0xd5a   :  { %v4629_v3 = vpop.eup %4628 }
 0xd5b   :  { %v2457_v4 = vmul.f32 %v4629_v3, %v2454_v13  ;;  %v4631_v18 = vpop.eup %4630  ;;  %vm2462_vm13 = vweird.f32 %v4629_v3  ;;  %v4464_v13 = vld [vmem:[%s6684_s3 + $0xe4] sm:$0xf] }
 0xd5c   :  { %v2536_v22 = vmul.f32 %v4631_v18, %v2533_v36  ;;  %vm2463_vm0 = vmor %vm2461_vm15, %vm2462_vm13  ;;  %vm2541_vm3 = vweird.f32 %v4631_v18  ;;  %v4157_v36 = vld [vmem:[%s6684_s3 + $0xf0] sm:$0xf0] }
 0xd5d   :  { %v2458_v16 = vsub.f32 1.0, %v2457_v4  ;;  %vm2542_vm5 = vmor %vm2540_vm4, %vm2541_vm3  ;;  %v4467_v4 = vld [vmem:[%s6684_s3 + $0xf4] sm:$0xf0] }
 0xd5e   :  { %v2537_v24 = vsub.f32 1.0, %v2536_v22  ;;  %v4165_v22 = vld [vmem:[%s6684_s3 + $0xf8] sm:$0xf0] }
 0xd5f   :  { %v2459_v19 = vmul.f32 %v4629_v3, %v2458_v16  ;;  %v4160_v16 = vor.u32 %v4464_v13, %v4157_v36  ;;  %v4075_v36 = vld [vmem:[%s6684_s3 + $0x40] sm:$0xf] }
 0xd60   :  { %v2538_v20 = vmul.f32 %v4631_v18, %v2537_v24 }
 0xd61   :  { %v2460_v5 = vadd.f32 %v4629_v3, %v2459_v19  ;;  %v4465_v19 = vld [vmem:[%s6684_s3 + $0xec] sm:$0xf]  ;;  %2801 = vmatpush.bf16.msra.mxu1 %v4160_v16  ;;  %v4444_v16 = vld [vmem:[%s6684_s3 + $0x44] sm:$0xf] }
 0xd62   :  { %v2539_v37 = vadd.f32 %v4631_v18, %v2538_v20  ;;  %v4168_v24 = vor.u32 %v4465_v19, %v4165_v22  ;;  %v4083_v19 = vld [vmem:[%s6684_s3 + $0x48] sm:$0xf] }
 0xd63   :  { %v2464_v26 = vsel %vm2463_vm0, %v4629_v3, %v2460_v5  ;;  %v4163_v3 = vld [vmem:[%s6684_s3 + $0xe8] sm:$0xf]  ;;  %v4139_v5 = vld [vmem:[%s6684_s3 + $0xc0] sm:$0xf] }
 0xd64   :  { %v2469_v32 = vsel %vm2466_vm2, %v2468_v17, %v2464_v26  ;;  %v2543_v10 = vsel %vm2542_vm5, %v4631_v18, %v2539_v37  ;;  %v4164_v18 = vor.u32 %v4467_v4, %v4163_v3  ;;  %v4141_v26 = vld [vmem:[%s6684_s3 + $0xd0] sm:$0xf0]  ;;  %v4140_v20 = vor.u32 %v4462_v25, %v4139_v5  ;;  %2827 = vmatpush.bf16.msrb.mxu3 %v4168_v24  ;;  %v4446_v3 = vld [vmem:[%s6684_s3 + $0x4c] sm:$0xf0]  ;;  %v4447_v5 = vld [vmem:[%s6684_s3 + $0x54] sm:$0xf0] }
 0xd65   :  { %v2548_v34 = vsel %vm2545_vm7, %v2547_v6, %v2543_v10  ;;  %v2492_v40 = vmul.f32 %v2490_v43, %v2469_v32  ;;  %v4144_v17 = vor.u32 %v4460_v21, %v4141_v26  ;;  %v4458_v10 = vld [vmem:[%s6684_s3 + $0xac] sm:$0xf0]  ;;  %v4104_v4 = vor.u32 %v4449_v35, %v4101_v2  ;;  %v4445_v24 = vld [vmem:[%s6684_s3 + $0x4c] sm:$0xf]  ;;  %v4085_v25 = vld [vmem:[%s6684_s3 + $0x58] sm:$0xf0] }
 0xd66   :  { %v2571_v28 = vmul.f32 %v2569_v23, %v2548_v34  ;;  %2814 = vmatpush.bf16.msrb.mxu2 %v4164_v18  ;;  %2789 = vmatpush.bf16.msra.mxu0 %v4140_v20  ;;  %v4124_v43 = vor.u32 %v4458_v10, %v4123_v27  ;;  %v4077_v18 = vld [vmem:[%s6684_s3 + $0x50] sm:$0xf0]  ;;  %v4076_v22 = vor.u32 %v4446_v3, %v4075_v36  ;;  %v4443_v27 = vld [vmem:[%s6684_s3 + $0x34] sm:$0xf0] }
 0xd67   :  { %2802 = vmatpush.bf16.msra.mxu1 %v4144_v17  ;;  %v4080_v21 = vor.u32 %v4444_v16, %v4077_v18  ;;  %v4084_v26 = vor.u32 %v4447_v5, %v4083_v19  ;;  %v4088_v20 = vor.u32 %v4445_v24, %v4085_v25  ;;  %v4059_v17 = vld [vmem:[%s6684_s3 + $0x20] sm:$0xf]  ;;  %v151_v16 = vadd.f32 %v5297_v15, %v4797_v39 }
 0xd6a   :  { %2790 = vmatpush.bf16.msra.mxu0 %v4124_v43 }
 0xdc2   :  { %v2495_v31 = vpop.permute.xlu1 %2494 }
 0xdc3   :  { %v2497_v29 = vmul.f32 %v2495_v31, %v2469_v32  ;;  %v4147_v31 = vld [vmem:[%s6684_s3 + $0xc8] sm:$0xf]  ;;  %v4463_v32 = vld [vmem:[%s6684_s3 + $0xd4] sm:$0xf0] }
 0xdc4   :  { %v4148_v37 = vor.u32 %v4463_v32, %v4147_v31  ;;  %v4442_v31 = vld [vmem:[%s6684_s3 + $0x2c] sm:$0xf0]  ;;  %v4440_v32 = vld [vmem:[%s6684_s3 + $0x24] sm:$0xf] }
 0xdc5   :  { %2499 = vrot.lane.b32.xlu2 %v2497_v29, %s4681_s23  ;;  %v4461_v29 = vld [vmem:[%s6684_s3 + $0xcc] sm:$0xf] }
 0xdc6   :  { %v4152_v6 = vor.u32 %v4461_v29, %v4149_v33  ;;  %2815 = vmatpush.bf16.msrb.mxu2 %v4148_v37  ;;  %v4060_v29 = vor.u32 %v4442_v31, %v4059_v17  ;;  %v4061_v37 = vld [vmem:[%s6684_s3 + $0x30] sm:$0xf0]  ;;  %v4067_v33 = vld [vmem:[%s6684_s3 + $0x28] sm:$0xf] }
 0xdc7   :  { %v4064_v10 = vor.u32 %v4440_v32, %v4061_v37 }
 0xdc8   :  { %2828 = vmatpush.bf16.msrb.mxu3 %v4152_v6  ;;  %v4068_v6 = vor.u32 %v4443_v27, %v4067_v33 }
 0xdca   :  { %v2574_v30 = vpop.permute.xlu1 %2573 }
 0xdcb   :  { %v2576_v42 = vmul.f32 %v2574_v30, %v2548_v34  ;;  %v4456_v30 = vld [vmem:[%s6684_s3 + $0xa4] sm:$0xf]  ;;  %v4125_v34 = vld [vmem:[%s6684_s3 + $0xb0] sm:$0xf0] }
 0xdcd   :  { %2578 = vrot.lane.b32.xlu1 %v2576_v42, %s4681_s23  ;;  %v4131_v42 = vld [vmem:[%s6684_s3 + $0xa8] sm:$0xf] }
 0xe1f   :  { %v2500_v41 = vpop.permute.xlu2 %2499 }
 0xe20   :  { %v2502_v55 = vadd.f32 %v2500_v41, %v2492_v40  ;;  %v4459_v40 = vld [vmem:[%s6684_s3 + $0xb4] sm:$0xf0]  ;;  %v4457_v41 = vld [vmem:[%s6684_s3 + $0xac] sm:$0xf] }
 0xe21   :  { %v4132_v23 = vor.u32 %v4459_v40, %v4131_v42  ;;  %v4043_v42 = vld [vmem:[%s6684_s3] sm:$0xf] }
 0xe22   :  { %4632 = vtanh.f32 %v2502_v55 }
 0xe23   :  { %2816 = vmatpush.bf16.msrb.mxu2 %v4132_v23 }
 0xe28   :  { %v4633_v11 = vpop.eup %4632 }
 0xe29   :  { %2505 = vrot.lane.b32.xlu2 %v4633_v11, %s4681_s23  ;;  %v4128_v11 = vor.u32 %v4456_v30, %v4125_v34  ;;  %v4441_v30 = vld [vmem:[%s6684_s3 + $0x2c] sm:$0xf]  ;;  %v4069_v34 = vld [vmem:[%s6684_s3 + $0x38] sm:$0xf0] }
 0xe2a   :  { %v4072_v40 = vor.u32 %v4441_v30, %v4069_v34 }
 0xe2b   :  { %2803 = vmatpush.bf16.msra.mxu1 %v4128_v11  ;;  %v4045_v11 = vld [vmem:[%s6684_s3 + $0x10] sm:$0xf0] }
 0xe31   :  { %2510 = vrot.lane.b32.xlu2 %v2502_v55, %s4681_s23  ;;  %v4133_v55 = vld [vmem:[%s6684_s3 + $0xb8] sm:$0xf0] }
 0xe3f   :  { %v2579_v45 = vpop.permute.xlu1 %2578 }
 0xe40   :  { %v2581_v47 = vadd.f32 %v2579_v45, %v2571_v28  ;;  %v4136_v28 = vor.u32 %v4457_v41, %v4133_v55  ;;  %v4040_v45 = vmul.f32 -1.442695, %v6298_v62  ;;  %v4109_v62 = vld [vmem:[%s6684_s3 + $0x90] sm:$0xf0]  ;;  %v4438_v41 = vld [vmem:[%s6684_s3 + $0xc] sm:$0xf0] }
 0xe41   :  { %v4436_v55 = vld [vmem:[%s6684_s3 + $0x4] sm:$0xf]  ;;  %v4044_v23 = vor.u32 %v4438_v41, %v4043_v42 }
 0xe42   :  { %4634 = vtanh.f32 %v2581_v47  ;;  %2829 = vmatpush.bf16.msrb.mxu3 %v4136_v28  ;;  %v4048_v28 = vor.u32 %v4436_v55, %v4045_v11 }
 0xe43   :  { %4636 = vpow2.f32 %v4038_v49  ;;  %v4107_v49 = vld [vmem:[%s6684_s3 + $0x80] sm:$0xf] }
 0xe48   :  { %v4635_v9 = vpop.eup %4634 }
 0xe49   :  { %2584 = vrot.lane.b32.xlu0 %v4635_v9, %s4681_s23  ;;  %v4637_v50 = vpop.eup %4636 }
 0xe4a   :  { %v2455_v51 = vadd.f32 1.0, %v4637_v50  ;;  %v4454_v50 = vld [vmem:[%s6684_s3 + $0x8c] sm:$0xf0] }
 0xe4c   :  { %4638 = vrcp.f32 %v2455_v51  ;;  %v2482_v60 = vand.u32 2147483648, %v2455_v51  ;;  %vm2476_vm9 = vweird.f32 %v2455_v51  ;;  %v2480_v54 = vand.u32 2147483647, %v2455_v51 }
 0xe4d   :  { %4640 = vpow2.f32 %v4040_v45  ;;  %v4051_v45 = vld [vmem:[%s6684_s3 + $0x8] sm:$0xf] }
 0xe4e   :  { %v2483_v38 = vor.u32 1.1754944e-38, %v2482_v60  ;;  %vm2481_vm10 = vcmp.eq.f32.partialorder %v2480_v54, 8.507059e+37  ;;  %v4453_v60 = vld [vmem:[%s6684_s3 + $0x8c] sm:$0xf]  ;;  %v4117_v54 = vld [vmem:[%s6684_s3 + $0x98] sm:$0xf0] }
 0xe52   :  { %v4639_v52 = vpop.eup %4638 }
 0xe53   :  { %v2472_v53 = vmul.f32 %v4639_v52, %v2455_v51  ;;  %vm2477_vm8 = vweird.f32 %v4639_v52  ;;  %v4452_v51 = vld [vmem:[%s6684_s3 + $0x84] sm:$0xf] }
 0xe54   :  { %vm2478_vm1 = vmor %vm2476_vm9, %vm2477_vm8 }
 0xe55   :  { %v2473_v48 = vsub.f32 1.0, %v2472_v53  ;;  %v4115_v53 = vld [vmem:[%s6684_s3 + $0x88] sm:$0xf] }
 0xe57   :  { %v2474_v58 = vmul.f32 %v4639_v52, %v2473_v48  ;;  %v4455_v48 = vld [vmem:[%s6684_s3 + $0x94] sm:$0xf0] }
 0xe59   :  { %v2475_v7 = vadd.f32 %v4639_v52, %v2474_v58  ;;  %v4112_v58 = vor.u32 %v4452_v51, %v4109_v62  ;;  %v4053_v51 = vld [vmem:[%s6684_s3 + $0x18] sm:$0xf0] }
 0xe5b   :  { %v2479_v61 = vsel %vm2478_vm1, %v4639_v52, %v2475_v7  ;;  %v4108_v52 = vor.u32 %v4454_v50, %v4107_v49  ;;  %v4116_v7 = vor.u32 %v4455_v48, %v4115_v53  ;;  %2804 = vmatpush.bf16.msra.mxu1 %v4112_v58  ;;  %v4437_v49 = vld [vmem:[%s6684_s3 + $0xc] sm:$0xf] }
 0xe5c   :  { %v2484_v44 = vsel %vm2481_vm10, %v2483_v38, %v2479_v61  ;;  %v4091_v61 = vld [vmem:[%s6684_s3 + $0x60] sm:$0xf]  ;;  %v4120_v38 = vor.u32 %v4453_v60, %v4117_v54  ;;  %v4056_v62 = vor.u32 %v4437_v49, %v4053_v51 }
 0xe5d   :  { %2791 = vmatpush.bf16.msra.mxu0 %v4108_v52  ;;  %2817 = vmatpush.bf16.msrb.mxu2 %v4116_v7 }
 0xe5e   :  { %2830 = vmatpush.bf16.msrb.mxu3 %v4120_v38 }
 0xe62   :  { %2831 = vmatpush.bf16.msrb.mxu3 %v4104_v4 }
 0xe66   :  { %2832 = vmatpush.bf16.msrb.mxu3 %v4088_v20 }
 0xe6a   :  { %2833 = vmatpush.bf16.msrb.mxu3 %v4072_v40 }
 0xe6e   :  { %2834 = vmatpush.bf16.msrb.mxu3 %v4056_v62 }
 0xe83   :  { %v2506_v12 = vpop.permute.xlu2 %2505 }
 0xe84   :  { %v2508_v59 = vmul.f32 %v2506_v12, %v2484_v44  ;;  %v4450_v44 = vld [vmem:[%s6684_s3 + $0x6c] sm:$0xf0]  ;;  %v4448_v12 = vld [vmem:[%s6684_s3 + $0x64] sm:$0xf] }
 0xe86   :  { %v2514_v56 = vpack.c.bf16 %v2508_v59, %v2508_v59  ;;  %v4093_v59 = vld [vmem:[%s6684_s3 + $0x70] sm:$0xf0] }
 0xe88   :  { %2516 = vrot.lane.b32.xlu1 %v2514_v56, %s4681_s23  ;;  %v4092_v56 = vor.u32 %v4450_v44, %v4091_v61 }
 0xe8a   :  { %2792 = vmatpush.bf16.msra.mxu0 %v4092_v56 }
 0xe8b   :  { %v2511_v63 = vpop.permute.xlu2 %2510 }
 0xe8c   :  { %2513 = vst.msk [vmem:[#allocation5] sm:$0xff] %vm223_vm6, %v2511_v63  ;;  %v4096_v63 = vor.u32 %v4448_v12, %v4093_v59 }
 0xe8e   :  { %2805 = vmatpush.bf16.msra.mxu1 %v4096_v63  ;;  %2793 = vmatpush.bf16.msra.mxu0 %v4076_v22 }
 0xe90   :  { %2589 = vrot.lane.b32.xlu1 %v2581_v47, %s4681_s23  ;;  %v4641_v47 = vpop.eup %4640 }
 0xe91   :  { %v6387_v9 = vadd.f32 1.0, %v4641_v47  ;;  %v4439_v47 = vld [vmem:[%s6684_s3 + $0x14] sm:$0xf0] }
 0xe92   :  { %2806 = vmatpush.bf16.msra.mxu1 %v4080_v21  ;;  %2794 = vmatpush.bf16.msra.mxu0 %v4060_v29  ;;  %v4052_v50 = vor.u32 %v4439_v47, %v4051_v45 }
 0xe93   :  { %v2881_v8 = vld [vmem:[#allocation5] sm:$0xff]  ;;  %4642 = vrcp.f32 %v6387_v9  ;;  %v2561_v7 = vand.u32 2147483648, %v6387_v9  ;;  %vm2555_vm13 = vweird.f32 %v6387_v9  ;;  %v2559_v60 = vand.u32 2147483647, %v6387_v9 }
 0xe94   :  { %2883 = vrot.lane.b32.xlu2 %v2881_v8, %s4681_s23  ;;  %v4099_v8 = vld [vmem:[%s6684_s3 + $0x68] sm:$0xf] }
 0xe95   :  { %v4100_v13 = vor.u32 %v4451_v1, %v4099_v8  ;;  %v2562_v61 = vor.u32 1.1754944e-38, %v2561_v7  ;;  %vm2560_vm0 = vcmp.eq.f32.partialorder %v2559_v60, 8.507059e+37 }
 0xe96   :  { %2807 = vmatpush.bf16.msra.mxu1 %v4064_v10  ;;  %2795 = vmatpush.bf16.msra.mxu0 %v4044_v23 }
 0xe97   :  { %2818 = vmatpush.bf16.msrb.mxu2 %v4100_v13 }
 0xe99   :  { %v4643_v43 = vpop.eup %4642 }
 0xe9a   :  { %v2551_v52 = vmul.f32 %v4643_v43, %v6387_v9  ;;  %2808 = vmatpush.bf16.msra.mxu1 %v4048_v28  ;;  %vm2556_vm12 = vweird.f32 %v4643_v43 }
 0xe9b   :  { %2819 = vmatpush.bf16.msrb.mxu2 %v4084_v26  ;;  %vm2557_vm15 = vmor %vm2555_vm13, %vm2556_vm12  ;;  %v122_v26 = vadd.f32 %v5295_v14, %v4837_v0 }
 0xe9c   :  { %v2552_v53 = vsub.f32 1.0, %v2551_v52 }
 0xe9e   :  { %v2553_v48 = vmul.f32 %v4643_v43, %v2552_v53 }
 0xe9f   :  { %2820 = vmatpush.bf16.msrb.mxu2 %v4068_v6 }
 0xea0   :  { %v2554_v58 = vadd.f32 %v4643_v43, %v2553_v48 }
 0xea2   :  { %v2558_v54 = vsel %vm2557_vm15, %v4643_v43, %v2554_v58 }
 0xea3   :  { %2821 = vmatpush.bf16.msrb.mxu2 %v4052_v50  ;;  %v2563_v44 = vsel %vm2560_vm0, %v2562_v61, %v2558_v54 }
 0xebb   :  { %v2585_v38 = vpop.permute.xlu0 %2584 }
 0xebc   :  { %v2587_v12 = vmul.f32 %v2585_v38, %v2563_v44 }
 0xebe   :  { %v2593_v59 = vpack.c.bf16 %v2587_v12, %v2587_v12 }
 0xeee   :  { %v2884_v62 = vpop.permute.xlu2 %2883 }
 0xefa   :  { %v2517_v56 = vpop.permute.xlu1 %2516 }
 0xefb   :  { %2519 = vst.msk [vmem:[#allocation3] sm:$0xf] %vm548_vm14, %v2517_v56 }
 0xefc   :  { %2594 = vst.msk [vmem:[#allocation3] sm:$0xf] %vm228_vm11, %v2593_v59 }
 0xf02   :  { %v2590_v63 = vpop.permute.xlu1 %2589 }
 0xf03   :  { %2592 = vst.msk [vmem:[#allocation4] sm:$0xff] %vm223_vm6, %v2590_v63  ;;  %v2595_v8 = vld [vmem:[#allocation3] sm:$0xf] }
 0xf04   :  { %2796 = vmatmul.bf16.vlgmr.msra.gmra.mxu0 %v2595_v8  ;;  %2809 = vmatmul.bf16.vlgmr.msra.gmra.mxu1 %v2595_v8 }
 0xf05   :  { %2822 = vmatmul.bf16.vlgmr.msrb.gmra.mxu2 %v2595_v8  ;;  %2835 = vmatmul.bf16.vlgmr.msrb.gmra.mxu3 %v2595_v8 }
 0xf0a   :  { %v2960_v9 = vld [vmem:[#allocation4] sm:$0xff] }
 0xf0b   :  { %2962 = vrot.lane.b32.xlu2 %v2960_v9, %s4681_s23 }
 0xf65   :  { %v2963_v7 = vpop.permute.xlu2 %2962 }
 0xf81   :  { %v2797_v1 = vpop.f32.mrf.mxu0  ;;  %v2810_v35 = vpop.f32.mrf.mxu1 }
 0xf82   :  { %v6524_v18 = vadd.f32 %v2810_v35, %v151_v16  ;;  %v2919_v20 = vadd.f32 %v2797_v1, %v122_v26  ;;  %v4233_v16 = vld [vmem:[%s6684_s3 + $0xf8] sm:$0xf0] }
 0xf84   :  { %v4171_v39 = vmul.f32 -1.442695, %v2919_v20 }
 0xf88   :  { %v2823_v13 = vpop.f32.mrf.mxu2  ;;  %v2836_v2 = vpop.f32.mrf.mxu3 }
 0xf89   :  { %v6519_v36 = vadd.f32 %v2836_v2, %v5008_v46  ;;  %v2799_v3 = vpop.f32.mrf.mxu0  ;;  %v2812_v4 = vpop.f32.mrf.mxu1  ;;  %v2840_v25 = vadd.f32 %v2823_v13, %v5016_v57  ;;  %v4231_v2 = vld [vmem:[%s6684_s3 + $0xe8] sm:$0xf] }
 0xf8a   :  { %v4483_v3 = vld [vmem:[%s6684_s3 + $0xf4] sm:$0xf0] }
 0xf8b   :  { %4644 = vtanh.f32 %v6519_v36  ;;  %v4169_v21 = vmul.f32 -1.442695, %v2840_v25  ;;  %v4170_v12 = vmul.f32 -1.442695, %v6519_v36  ;;  %v4482_v36 = vld [vmem:[%s6684_s3 + $0xec] sm:$0xf]  ;;  %v4232_v4 = vor.u32 %v4483_v3, %v4231_v2 }
 0xf8c   :  { %4646 = vtanh.f32 %v6524_v18  ;;  %v4480_v25 = vld [vmem:[%s6684_s3 + $0xcc] sm:$0xf] }
 0xf8d   :  { %4648 = vpow2.f32 %v4169_v21  ;;  %v4225_v21 = vld [vmem:[%s6684_s3 + $0xd8] sm:$0xf0]  ;;  %3086 = vmatpush.bf16.msrb.mxu0 %v4232_v4 }
 0xf8e   :  { %4650 = vpow2.f32 %v4171_v39  ;;  %v4228_v39 = vor.u32 %v4480_v25, %v4225_v21 }
 0xf90   :  { %v2825_v19 = vpop.f32.mrf.mxu2  ;;  %v2838_v22 = vpop.f32.mrf.mxu3 }
 0xf91   :  { %v4645_v5 = vpop.eup %4644  ;;  %v4223_v19 = vld [vmem:[%s6684_s3 + $0xc8] sm:$0xf]  ;;  %v4481_v22 = vld [vmem:[%s6684_s3 + $0xd4] sm:$0xf0] }
 0xf92   :  { %2888 = vrot.lane.b32.xlu0 %v4645_v5, %s4681_s23  ;;  %v4647_v24 = vpop.eup %4646  ;;  %v4224_v26 = vor.u32 %v4481_v22, %v4223_v19 }
 0xf93   :  { %v4649_v15 = vpop.eup %4648 }
 0xf94   :  { %v2848_v17 = vadd.f32 1.0, %v4649_v15  ;;  %v4651_v31 = vpop.eup %4650  ;;  %v4215_v15 = vld [vmem:[%s6684_s3 + $0xa8] sm:$0xf]  ;;  %3087 = vmatpush.bf16.msrb.mxu0 %v4224_v26 }
 0xf95   :  { %v2927_v32 = vadd.f32 1.0, %v4651_v31 }
 0xf96   :  { %4652 = vrcp.f32 %v2848_v17  ;;  %v2861_v0 = vand.u32 2147483648, %v2848_v17  ;;  %vm2855_vm3 = vweird.f32 %v2848_v17  ;;  %v2859_v14 = vand.u32 2147483647, %v2848_v17 }
 0xf97   :  { %4654 = vrcp.f32 %v2927_v32  ;;  %v2940_v28 = vand.u32 2147483648, %v2927_v32  ;;  %vm2934_vm8 = vweird.f32 %v2927_v32  ;;  %v2938_v45 = vand.u32 2147483647, %v2927_v32 }
 0xf98   :  { %v2862_v40 = vor.u32 1.1754944e-38, %v2861_v0  ;;  %vm2860_vm5 = vcmp.eq.f32.partialorder %v2859_v14, 8.507059e+37  ;;  %v4476_v0 = vld [vmem:[%s6684_s3 + $0x8c] sm:$0xf]  ;;  %v4209_v14 = vld [vmem:[%s6684_s3 + $0x98] sm:$0xf0] }
 0xf99   :  { %v2941_v49 = vor.u32 1.1754944e-38, %v2940_v28  ;;  %vm2939_vm1 = vcmp.eq.f32.partialorder %v2938_v45, 8.507059e+37 }
 0xf9a   :  { %2967 = vrot.lane.b32.xlu0 %v4647_v24, %s4681_s23  ;;  %v4236_v24 = vor.u32 %v4482_v36, %v4233_v16 }
 0xf9c   :  { %v4653_v29 = vpop.eup %4652  ;;  %3099 = vmatpush.bf16.msrb.mxu1 %v4236_v24 }
 0xf9d   :  { %v2851_v37 = vmul.f32 %v4653_v29, %v2848_v17  ;;  %v4655_v27 = vpop.eup %4654  ;;  %vm2856_vm2 = vweird.f32 %v4653_v29  ;;  %v4479_v17 = vld [vmem:[%s6684_s3 + $0xb4] sm:$0xf0] }
 0xf9e   :  { %v2930_v6 = vmul.f32 %v4655_v27, %v2927_v32  ;;  %vm2857_vm4 = vmor %vm2855_vm3, %vm2856_vm2  ;;  %vm2935_vm7 = vweird.f32 %v4655_v27  ;;  %v4478_v32 = vld [vmem:[%s6684_s3 + $0xac] sm:$0xf] }
 0xf9f   :  { %v2852_v33 = vsub.f32 1.0, %v2851_v37  ;;  %vm2936_vm9 = vmor %vm2934_vm8, %vm2935_vm7 }
 0xfa0   :  { %v2931_v34 = vsub.f32 1.0, %v2930_v6  ;;  %3100 = vmatpush.bf16.msrb.mxu1 %v4228_v39 }
 0xfa1   :  { %v2853_v10 = vmul.f32 %v4653_v29, %v2852_v33 }
 0xfa2   :  { %v2932_v43 = vmul.f32 %v4655_v27, %v2931_v34  ;;  %v4477_v34 = vld [vmem:[%s6684_s3 + $0x94] sm:$0xf0] }
 0xfa3   :  { %v2854_v30 = vadd.f32 %v4653_v29, %v2853_v10 }
 0xfa4   :  { %v2933_v23 = vadd.f32 %v4655_v27, %v2932_v43 }
 0xfa5   :  { %v2858_v42 = vsel %vm2857_vm4, %v4653_v29, %v2854_v30  ;;  %v4217_v29 = vld [vmem:[%s6684_s3 + $0xb8] sm:$0xf0]  ;;  %v4207_v30 = vld [vmem:[%s6684_s3 + $0x88] sm:$0xf] }
 0xfa6   :  { %v2863_v55 = vsel %vm2860_vm5, %v2862_v40, %v2858_v42  ;;  %v2937_v47 = vsel %vm2936_vm9, %v4655_v27, %v2933_v23  ;;  %v4216_v27 = vor.u32 %v4479_v17, %v4215_v15  ;;  %v4220_v6 = vor.u32 %v4478_v32, %v4217_v29  ;;  %v4201_v23 = vld [vmem:[%s6684_s3 + $0x78] sm:$0xf0] }
 0xfa7   :  { %v2942_v51 = vsel %vm2939_vm1, %v2941_v49, %v2937_v47  ;;  %v2886_v53 = vmul.f32 %v2884_v62, %v2863_v55  ;;  %v4208_v43 = vor.u32 %v4477_v34, %v4207_v30  ;;  %v4212_v40 = vor.u32 %v4476_v0, %v4209_v14  ;;  %v4191_v49 = vld [vmem:[%s6684_s3 + $0x48] sm:$0xf] }
 0xfa8   :  { %v2965_v60 = vmul.f32 %v2963_v7, %v2942_v51  ;;  %3088 = vmatpush.bf16.msrb.mxu0 %v4216_v27  ;;  %3101 = vmatpush.bf16.msrb.mxu1 %v4220_v6 }
 0xfac   :  { %3089 = vmatpush.bf16.msrb.mxu0 %v4208_v43  ;;  %3102 = vmatpush.bf16.msrb.mxu1 %v4212_v40 }
0x1004   :  { %v2889_v41 = vpop.permute.xlu0 %2888 }
0x1005   :  { %v2891_v11 = vmul.f32 %v2889_v41, %v2863_v55  ;;  %v4199_v41 = vld [vmem:[%s6684_s3 + $0x68] sm:$0xf]  ;;  %v4475_v55 = vld [vmem:[%s6684_s3 + $0x74] sm:$0xf0] }
0x1006   :  { %v4200_v45 = vor.u32 %v4475_v55, %v4199_v41 }
0x1007   :  { %2893 = vrot.lane.b32.xlu1 %v2891_v11, %s4681_s23  ;;  %v4474_v11 = vld [vmem:[%s6684_s3 + $0x6c] sm:$0xf] }
0x1008   :  { %v4204_v47 = vor.u32 %v4474_v11, %v4201_v23  ;;  %3090 = vmatpush.bf16.msrb.mxu0 %v4200_v45  ;;  %v3181_v45 = vld [vmem:[%s6687_s5 + $0x30] sm:$0xff] }
0x100a   :  { %3103 = vmatpush.bf16.msrb.mxu1 %v4204_v47  ;;  %v3180_v47 = vld [vmem:[%s6687_s5 + $0x28] sm:$0xff] }
0x100c   :  { %v2968_v50 = vpop.permute.xlu0 %2967 }
0x100d   :  { %v2970_v52 = vmul.f32 %v2968_v50, %v2942_v51  ;;  %v4473_v50 = vld [vmem:[%s6684_s3 + $0x54] sm:$0xf0]  ;;  %v4472_v51 = vld [vmem:[%s6684_s3 + $0x4c] sm:$0xf] }
0x100e   :  { %v4192_v62 = vor.u32 %v4473_v50, %v4191_v49  ;;  %v3179_v49 = vld [vmem:[%s6687_s5 + $0x20] sm:$0xff]  ;;  %v3178_v50 = vld [vmem:[%s6687_s5 + $0x18] sm:$0xff] }
0x100f   :  { %2972 = vrot.lane.b32.xlu0 %v2970_v52, %s4681_s23  ;;  %v4193_v52 = vld [vmem:[%s6684_s3 + $0x58] sm:$0xf0] }
0x1010   :  { %3091 = vmatpush.bf16.msrb.mxu0 %v4192_v62 }
0x1079   :  { %v2894_v48 = vpop.permute.xlu1 %2893 }
0x107a   :  { %v2896_v58 = vadd.f32 %v2894_v48, %v2886_v53  ;;  %v4196_v53 = vor.u32 %v4472_v51, %v4193_v52  ;;  %v3177_v51 = vld [vmem:[%s6687_s5 + $0x10] sm:$0xff]  ;;  %v3176_v52 = vld [vmem:[%s6687_s5 + $0x8] sm:$0xff] }
0x107c   :  { %4656 = vtanh.f32 %v2896_v58  ;;  %3104 = vmatpush.bf16.msrb.mxu1 %v4196_v53 }
0x1081   :  { %v2973_v54 = vpop.permute.xlu0 %2972 }
0x1082   :  { %v4657_v61 = vpop.eup %4656  ;;  %v6534_v38 = vadd.f32 %v2973_v54, %v2965_v60  ;;  %v4183_v54 = vld [vmem:[%s6684_s3 + $0x28] sm:$0xf] }
0x1083   :  { %2899 = vrot.lane.b32.xlu1 %v4657_v61, %s4681_s23  ;;  %v4471_v61 = vld [vmem:[%s6684_s3 + $0x34] sm:$0xf0] }
0x1084   :  { %4658 = vtanh.f32 %v6534_v38 }
0x1085   :  { %4660 = vpow2.f32 %v4170_v12  ;;  %v4184_v12 = vor.u32 %v4471_v61, %v4183_v54  ;;  %v3175_v61 = vld [vmem:[%s6687_s5] sm:$0xff] }
0x1087   :  { %3092 = vmatpush.bf16.msrb.mxu0 %v4184_v12 }
0x108a   :  { %v4659_v44 = vpop.eup %4658 }
0x108b   :  { %2978 = vrot.lane.b32.xlu2 %v4659_v44, %s4681_s23  ;;  %2904 = vrot.lane.b32.xlu1 %v2896_v58, %s4681_s23  ;;  %v4661_v59 = vpop.eup %4660  ;;  %v4172_v58 = vmul.f32 -1.442695, %v6524_v18  ;;  %v4470_v44 = vld [vmem:[%s6684_s3 + $0x2c] sm:$0xf]  ;;  %v4185_v18 = vld [vmem:[%s6684_s3 + $0x38] sm:$0xf0] }
0x108c   :  { %v2849_v56 = vadd.f32 1.0, %v4661_v59  ;;  %v4469_v59 = vld [vmem:[%s6684_s3 + $0x14] sm:$0xf0] }
0x108e   :  { %4662 = vrcp.f32 %v2849_v56  ;;  %v2876_v35 = vand.u32 2147483648, %v2849_v56  ;;  %vm2870_vm12 = vweird.f32 %v2849_v56  ;;  %v2874_v5 = vand.u32 2147483647, %v2849_v56 }
0x108f   :  { %4664 = vpow2.f32 %v4172_v58 }
0x1090   :  { %v2877_v31 = vor.u32 1.1754944e-38, %v2876_v35  ;;  %vm2875_vm15 = vcmp.eq.f32.partialorder %v2874_v5, 8.507059e+37 }
0x1094   :  { %v4663_v63 = vpop.eup %4662 }
0x1095   :  { %v2866_v8 = vmul.f32 %v4663_v63, %v2849_v56  ;;  %vm2871_vm10 = vweird.f32 %v4663_v63  ;;  %v4665_v7 = vpop.eup %4664  ;;  %v4188_v56 = vor.u32 %v4470_v44, %v4185_v18 }
0x1096   :  { %vm2872_vm13 = vmor %vm2870_vm12, %vm2871_vm10  ;;  %v2928_v60 = vadd.f32 1.0, %v4665_v7  ;;  %vm3210_vm12 = vcmask 15360  }
0x1097   :  { %v2867_v9 = vsub.f32 1.0, %v2866_v8  ;;  %v4177_v8 = vld [vmem:[%s6684_s3 + $0x18] sm:$0xf0]  ;;  %3105 = vmatpush.bf16.msrb.mxu1 %v4188_v56 }
0x1098   :  { %4666 = vrcp.f32 %v2928_v60  ;;  %v2955_v4 = vand.u32 2147483648, %v2928_v60  ;;  %vm2949_vm2 = vweird.f32 %v2928_v60  ;;  %v2953_v16 = vand.u32 2147483647, %v2928_v60 }
0x1099   :  { %v2868_v1 = vmul.f32 %v4663_v63, %v2867_v9 }
0x109a   :  { %v2956_v22 = vor.u32 1.1754944e-38, %v2955_v4  ;;  %vm2954_vm4 = vcmp.eq.f32.partialorder %v2953_v16, 8.507059e+37 }
0x109b   :  { %v2869_v13 = vadd.f32 %v4663_v63, %v2868_v1 }
0x109d   :  { %v2873_v20 = vsel %vm2872_vm13, %v4663_v63, %v2869_v13  ;;  %v4468_v63 = vld [vmem:[%s6684_s3 + $0xc] sm:$0xf] }
0x109e   :  { %v2878_v37 = vsel %vm2875_vm15, %v2877_v31, %v2873_v20  ;;  %v4667_v9 = vpop.eup %4666  ;;  %v4180_v35 = vor.u32 %v4468_v63, %v4177_v8 }
0x109f   :  { %v2945_v13 = vmul.f32 %v4667_v9, %v2928_v60  ;;  %vm2950_vm0 = vweird.f32 %v4667_v9 }
0x10a0   :  { %3106 = vmatpush.bf16.msrb.mxu1 %v4180_v35  ;;  %vm2951_vm3 = vmor %vm2949_vm2, %vm2950_vm0 }
0x10a1   :  { %v2946_v2 = vsub.f32 1.0, %v2945_v13 }
0x10a3   :  { %v2947_v3 = vmul.f32 %v4667_v9, %v2946_v2  ;;  %v4487_v2 = vld [vmem:[%s6688_s6] ss:$0 sm:$0xff] }
0x10a5   :  { %v2948_v36 = vadd.f32 %v4667_v9, %v2947_v3 }
0x10a7   :  { %v2952_v19 = vsel %vm2951_vm3, %v4667_v9, %v2948_v36 }
0x10a8   :  { %v2957_v24 = vsel %vm2954_vm4, %v2956_v22, %v2952_v19 }
0x10e5   :  { %v2979_v5 = vpop.permute.xlu2 %2978 }
0x10e6   :  { %v2981_v25 = vmul.f32 %v2979_v5, %v2957_v24 }
0x10e8   :  { %v2987_v21 = vpack.c.bf16 %v2981_v25, %v2981_v25 }
0x10f5   :  { %v2900_v33 = vpop.permute.xlu1 %2899 }
0x10f6   :  { %v2902_v10 = vmul.f32 %v2900_v33, %v2878_v37 }
0x10f8   :  { %v2908_v42 = vpack.c.bf16 %v2902_v10, %v2902_v10 }
0x10fa   :  { %2910 = vrot.lane.b32.xlu0 %v2908_v42, %s4681_s23 }
0x10fd   :  { %v2905_v28 = vpop.permute.xlu1 %2904 }
0x10fe   :  { %2907 = vst.msk [vmem:[#allocation5] sm:$0xff] %vm223_vm6, %v2905_v28  ;;  %v3182_v28 = vld [vmem:[%s6687_s5 + $0x38] sm:$0xff] }
0x10ff   :  { %3198 = vmatpush.msra.mxu2 %v3182_v28 }
0x1101   :  { %3199 = vmatpush.msra.mxu2 %v3181_v45 }
0x1103   :  { %3200 = vmatpush.msra.mxu2 %v3180_v47 }
0x1105   :  { %v3153_v48 = vld [vmem:[#allocation5] sm:$0xff]  ;;  %3201 = vmatpush.msra.mxu2 %v3179_v49 }
0x1106   :  { %3155 = vrot.lane.b32.xlu0 %v3153_v48, %s4681_s23 }
0x1107   :  { %3202 = vmatpush.msra.mxu2 %v3178_v50 }
0x1109   :  { %3203 = vmatpush.msra.mxu2 %v3177_v51 }
0x110b   :  { %3204 = vmatpush.msra.mxu2 %v3176_v52 }
0x110d   :  { %3205 = vmatpush.msra.mxu2 %v3175_v61 }
0x110e   :  { %2983 = vrot.lane.b32.xlu0 %v6534_v38, %s4681_s23  ;;  %v4175_v38 = vld [vmem:[%s6684_s3 + $0x8] sm:$0xf] }
0x110f   :  { %v4176_v1 = vor.u32 %v4469_v59, %v4175_v38 }
0x1111   :  { %3093 = vmatpush.bf16.msrb.mxu0 %v4176_v1 }
0x116c   :  { %v2911_v26 = vpop.permute.xlu0 %2910 }
0x116d   :  { %2913 = vst.msk [vmem:[#allocation3] sm:$0xf] %vm548_vm14, %v2911_v26 }
0x116e   :  { %2988 = vst.msk [vmem:[#allocation3] sm:$0xf] %vm228_vm11, %v2987_v21 }
0x1175   :  { %v2989_v20 = vld [vmem:[#allocation3] sm:$0xf] }
0x1176   :  { %3094 = vmatmul.bf16.vlgmr.msrb.gmra.mxu0 %v2989_v20  ;;  %3107 = vmatmul.bf16.vlgmr.msrb.gmra.mxu1 %v2989_v20 }
0x1178   :  { %v3156_v39 = vpop.permute.xlu0 %3155 }
0x1180   :  { %v2984_v15 = vpop.permute.xlu0 %2983 }
0x1181   :  { %2986 = vst.msk [vmem:[#allocation4] sm:$0xff] %vm223_vm6, %v2984_v15 }
0x11f3   :  { %v3095_v17 = vpop.f32.mrf.mxu0  ;;  %v3108_v31 = vpop.f32.mrf.mxu1 }
0x11f4   :  { %v3113_v32 = vadd.f32 %v3108_v31, %v5008_v46  ;;  %v3112_v27 = vadd.f32 %v3095_v17, %v5016_v57 }
0x11f6   :  { %4668 = vtanh.f32 %v3113_v32  ;;  %v4237_v10 = vmul.f32 -1.442695, %v3112_v27  ;;  %v4238_v7 = vmul.f32 -1.442695, %v3113_v32 }
0x11f8   :  { %4670 = vpow2.f32 %v4237_v10 }
0x11fb   :  { %v3097_v29 = vpop.f32.mrf.mxu0  ;;  %v3110_v37 = vpop.f32.mrf.mxu1 }
0x11fc   :  { %v4669_v33 = vpop.eup %4668 }
0x11fd   :  { %3160 = vrot.lane.b32.xlu2 %v4669_v33, %s4681_s23 }
0x11fe   :  { %v4671_v6 = vpop.eup %4670 }
0x11ff   :  { %v3120_v30 = vadd.f32 1.0, %v4671_v6 }
0x1201   :  { %4672 = vrcp.f32 %v3120_v30  ;;  %v3133_v46 = vand.u32 2147483648, %v3120_v30  ;;  %vm3127_vm14 = vweird.f32 %v3120_v30  ;;  %v3131_v40 = vand.u32 2147483647, %v3120_v30 }
0x1203   :  { %v3134_v55 = vor.u32 1.1754944e-38, %v3133_v46  ;;  %vm3132_vm7 = vcmp.eq.f32.partialorder %v3131_v40, 8.507059e+37 }
0x1207   :  { %v4673_v34 = vpop.eup %4672 }
0x1208   :  { %v3123_v0 = vmul.f32 %v4673_v34, %v3120_v30  ;;  %vm3128_vm11 = vweird.f32 %v4673_v34 }
0x1209   :  { %vm3129_vm5 = vmor %vm3127_vm14, %vm3128_vm11 }
0x120a   :  { %v3124_v14 = vsub.f32 1.0, %v3123_v0 }
0x120c   :  { %v3125_v42 = vmul.f32 %v4673_v34, %v3124_v14 }
0x120e   :  { %v3126_v43 = vadd.f32 %v4673_v34, %v3125_v42 }
0x1210   :  { %v3130_v41 = vsel %vm3129_vm5, %v4673_v34, %v3126_v43 }
0x1211   :  { %v3135_v57 = vsel %vm3132_vm7, %v3134_v55, %v3130_v41 }
0x1212   :  { %v3158_v62 = vmul.f32 %v3156_v39, %v3135_v57 }
0x1257   :  { %v3161_v11 = vpop.permute.xlu2 %3160 }
0x1258   :  { %v3163_v23 = vmul.f32 %v3161_v11, %v3135_v57 }
0x125a   :  { %3165 = vrot.lane.b32.xlu1 %v3163_v23, %s4681_s23 }
0x12cc   :  { %v3166_v53 = vpop.permute.xlu1 %3165 }
0x12cd   :  { %v3168_v48 = vadd.f32 %v3166_v53, %v3158_v62 }
0x12cf   :  { %4674 = vtanh.f32 %v3168_v48 }
0x12d0   :  { %4676 = vpow2.f32 %v4238_v7 }
0x12d5   :  { %v4675_v58 = vpop.eup %4674 }
0x12d6   :  { %3171 = vrot.lane.b32.xlu2 %v4675_v58, %s4681_s23  ;;  %v4677_v60 = vpop.eup %4676 }
0x12d7   :  { %v3121_v54 = vadd.f32 1.0, %v4677_v60 }
0x12d9   :  { %4678 = vrcp.f32 %v3121_v54  ;;  %v3148_v56 = vand.u32 2147483648, %v3121_v54  ;;  %vm3142_vm9 = vweird.f32 %v3121_v54  ;;  %v3146_v63 = vand.u32 2147483647, %v3121_v54 }
0x12db   :  { %v3149_v9 = vor.u32 1.1754944e-38, %v3148_v56  ;;  %vm3147_vm10 = vcmp.eq.f32.partialorder %v3146_v63, 8.507059e+37 }
0x12df   :  { %v4679_v44 = vpop.eup %4678 }
0x12e0   :  { %v3138_v12 = vmul.f32 %v4679_v44, %v3121_v54  ;;  %vm3143_vm8 = vweird.f32 %v4679_v44 }
0x12e1   :  { %vm3144_vm1 = vmor %vm3142_vm9, %vm3143_vm8 }
0x12e2   :  { %v3139_v18 = vsub.f32 1.0, %v3138_v12 }
0x12e4   :  { %v3140_v38 = vmul.f32 %v4679_v44, %v3139_v18 }
0x12e6   :  { %v3141_v59 = vadd.f32 %v4679_v44, %v3140_v38 }
0x12e8   :  { %v3145_v8 = vsel %vm3144_vm1, %v4679_v44, %v3141_v59 }
0x12e9   :  { %v3150_v1 = vsel %vm3147_vm10, %v3149_v9, %v3145_v8 }
0x1330   :  { %v3172_v35 = vpop.permute.xlu2 %3171 }
0x1331   :  { %v3174_v13 = vmul.f32 %v3172_v35, %v3150_v1 }
0x1333   :  { %4239 = vmatmul.msk.f32.vlgmr.msra.gmra.mxu2 %vm223_vm6, %v3174_v13 }
0x13b6   :  { %v3207_v3 = vpop.f32.mrf.mxu2 }
0x13b7   :  { %v3208_v36 = vadd.f32 %v4487_v2, %v3207_v3 }
0x13b9   :  { %3211 = vst.msk [vmem:[%s6689_s7] sm:$0xff] %vm3210_vm12, %v3208_v36 }

</bundles_post_ra>
